<compile_context>
chip_gen: v7x
topology: tpu7x:2x2x1
jax: 0.10.0
libtpu: 0.0.40
codegen_flags: <defaults>
</compile_context>

<pallas_src>
import math

import jax
import jax.numpy as jnp
from jax.experimental import pallas as pl
from jax.experimental.pallas import tpu as pltpu

WIDTH = 128  # hidden width of the MLP (matches the PyTorch module)


def _gelu_tanh(x):
    # tanh-approximate GELU: 0.5*x*(1 + tanh(sqrt(2/pi)*(x + 0.044715*x^3)))
    c = 0.7978845608028654  # sqrt(2/pi)
    return 0.5 * x * (1.0 + jnp.tanh(c * (x + 0.044715 * (x * x * x))))


def _mlp_kernel(x_ref, *refs):
    """refs = [w0, b0, w1, b1, ..., w8, b8, out_ref]."""
    o_ref = refs[-1]
    wb_refs = refs[:-1]
    n_layers = len(wb_refs) // 2

    h = x_ref[...].astype(jnp.float32)
    for li in range(n_layers):
        w = wb_refs[2 * li][...]          # (in, out)
        b = wb_refs[2 * li + 1][...]      # (1, out) -> broadcasts over rows
        h = jnp.dot(h, w,
                    preferred_element_type=jnp.float32,
                    precision=jax.lax.Precision.HIGHEST) + b
        if li < n_layers - 1:             # GELU on all but the final layer
            h = _gelu_tanh(h)
    o_ref[...] = h.astype(o_ref.dtype)


def mlp_gelu_forward(x, params, *, batch_tile=256):
    """Fused forward of the 9-layer MLP.

    x:      (B, ...) image batch, flattened to (B, 784).
    params: list of (W, b) with W of shape (in, out) (JAX convention, i.e.
            y = x @ W + b), last layer (128, 10).
    Returns (B, 10) float32 logits.
    """
    B = x.shape[0]
    xf = jnp.reshape(x, (B, -1)).astype(jnp.float32)
    in_dim = xf.shape[1]
    out_dim = params[-1][0].shape[1]

    # Pad the final layer to a lane-dense 128-wide output (unmasked vst),
    # biases to (1, out) for 2-D VMEM layout.
    prepped = []
    for i, (w, b) in enumerate(params):
        w = w.astype(jnp.float32)
        b = b.astype(jnp.float32)
        if i == len(params) - 1 and w.shape[1] < WIDTH:
            w = jnp.pad(w, ((0, 0), (0, WIDTH - w.shape[1])))
            b = jnp.pad(b, (0, WIDTH - b.shape[0]))
        prepped.append((w, jnp.reshape(b, (1, -1))))

    # Batch tiling: sublane-aligned tile, pad batch only up to one tile multiple.
    tb = min(batch_tile, ((B + 7) // 8) * 8)
    tb = max(8, (tb // 8) * 8)
    b_pad = pl.cdiv(B, tb) * tb
    if b_pad != B:
        xf = jnp.pad(xf, ((0, b_pad - B), (0, 0)))
    grid = (b_pad // tb,)

    in_specs = [pl.BlockSpec((tb, in_dim), lambda i: (i, 0))]
    flat_wb = []
    for w, b in prepped:
        in_specs.append(pl.BlockSpec(w.shape, lambda i: (0, 0)))  # resident
        in_specs.append(pl.BlockSpec(b.shape, lambda i: (0, 0)))  # resident
        flat_wb.extend([w, b])

    n_gelu = len(prepped) - 1
    flops = 2 * b_pad * sum(w.shape[0] * w.shape[1] for w, _ in prepped)
    transcendentals = b_pad * WIDTH * n_gelu
    bytes_accessed = 4 * (xf.size
                          + sum(w.size + b.size for w, b in prepped)
                          + b_pad * WIDTH)

    out = pl.pallas_call(
        _mlp_kernel,
        out_shape=jax.ShapeDtypeStruct((b_pad, WIDTH), jnp.float32),
        grid=grid,
        in_specs=in_specs,
        out_specs=pl.BlockSpec((tb, WIDTH), lambda i: (i, 0)),
        compiler_params=pltpu.CompilerParams(
            dimension_semantics=("parallel",)),
        cost_estimate=pl.CostEstimate(
            flops=flops,
            transcendentals=transcendentals,
            bytes_accessed=bytes_accessed),
    )(xf, *flat_wb)

    return out[:B, :out_dim]


def mlp_gelu_ref(x, params):
    """Pure-JAX reference (same tanh-GELU and matmul precision)."""
    h = jnp.reshape(x, (x.shape[0], -1)).astype(jnp.float32)
    n = len(params)
    for i, (w, b) in enumerate(params):
        h = jnp.dot(h, w, precision=jax.lax.Precision.HIGHEST) + b
        if i < n - 1:
            h = _gelu_tanh(h)
    return h


if __name__ == "__main__":
    key = jax.random.PRNGKey(0)
    B = 2
    k_x, k_p = jax.random.split(key)

    # FMNIST-shaped input batch: (B, 1, 28, 28).
    x = jax.random.normal(k_x, (B, 1, 28, 28), dtype=jnp.float32)

    # Build the 9 Linear layers: 784->128, 7x(128->128), 128->10.
    dims = [28 * 28] + [WIDTH] * 8 + [10]
    params = []
    for i in range(len(dims) - 1):
        k_p, kw, kb = jax.random.split(k_p, 3)
        bound = 1.0 / math.sqrt(dims[i])   # PyTorch-style uniform init
        w = jax.random.uniform(kw, (dims[i], dims[i + 1]), jnp.float32,
                               -bound, bound)
        b = jax.random.uniform(kb, (dims[i + 1],), jnp.float32, -bound, bound)
        params.append((w, b))

    out = mlp_gelu_forward(x, params)
    out = jax.block_until_ready(out)

    ref = mlp_gelu_ref(x, params)
    assert out.shape == (B, 10) and out.dtype == jnp.float32
    assert jnp.allclose(out, ref, atol=1e-4, rtol=1e-3), "mismatch vs reference"

    print("KERNEL_OK")
</pallas_src>

<mosaic_0001>
module attributes {stable_mosaic.version = 11 : i64} {
  func.func @_mlp_kernel(%arg0: i32, %arg1: memref<8x784xf32, #tpu.memory_space<vmem>>, %arg2: memref<784x128xf32, #tpu.memory_space<vmem>>, %arg3: memref<1x128xf32, #tpu.memory_space<vmem>>, %arg4: memref<128x128xf32, #tpu.memory_space<vmem>>, %arg5: memref<1x128xf32, #tpu.memory_space<vmem>>, %arg6: memref<128x128xf32, #tpu.memory_space<vmem>>, %arg7: memref<1x128xf32, #tpu.memory_space<vmem>>, %arg8: memref<128x128xf32, #tpu.memory_space<vmem>>, %arg9: memref<1x128xf32, #tpu.memory_space<vmem>>, %arg10: memref<128x128xf32, #tpu.memory_space<vmem>>, %arg11: memref<1x128xf32, #tpu.memory_space<vmem>>, %arg12: memref<128x128xf32, #tpu.memory_space<vmem>>, %arg13: memref<1x128xf32, #tpu.memory_space<vmem>>, %arg14: memref<128x128xf32, #tpu.memory_space<vmem>>, %arg15: memref<1x128xf32, #tpu.memory_space<vmem>>, %arg16: memref<128x128xf32, #tpu.memory_space<vmem>>, %arg17: memref<1x128xf32, #tpu.memory_space<vmem>>, %arg18: memref<128x128xf32, #tpu.memory_space<vmem>>, %arg19: memref<1x128xf32, #tpu.memory_space<vmem>>, %arg20: memref<8x128xf32, #tpu.memory_space<vmem>>) attributes {dimension_semantics = [#tpu.dimension_semantics<parallel>], iteration_bounds = array<i64: 1>, scalar_prefetch = 0 : i64, scratch_operands = 0 : i64, tpu.core_type = #tpu.core_type<tc>, window_params = [{transform_indices = @transform_0, window_bounds = array<i64: 8, 784>}, {pipeline_mode = #tpu.pipeline_mode<synchronous>, transform_indices = @transform_1, window_bounds = array<i64: 784, 128>}, {pipeline_mode = #tpu.pipeline_mode<synchronous>, transform_indices = @transform_2, window_bounds = array<i64: 1, 128>}, {pipeline_mode = #tpu.pipeline_mode<synchronous>, transform_indices = @transform_3, window_bounds = array<i64: 128, 128>}, {pipeline_mode = #tpu.pipeline_mode<synchronous>, transform_indices = @transform_4, window_bounds = array<i64: 1, 128>}, {pipeline_mode = #tpu.pipeline_mode<synchronous>, transform_indices = @transform_5, window_bounds = array<i64: 128, 128>}, {pipeline_mode = #tpu.pipeline_mode<synchronous>, transform_indices = @transform_6, window_bounds = array<i64: 1, 128>}, {pipeline_mode = #tpu.pipeline_mode<synchronous>, transform_indices = @transform_7, window_bounds = array<i64: 128, 128>}, {pipeline_mode = #tpu.pipeline_mode<synchronous>, transform_indices = @transform_8, window_bounds = array<i64: 1, 128>}, {pipeline_mode = #tpu.pipeline_mode<synchronous>, transform_indices = @transform_9, window_bounds = array<i64: 128, 128>}, {pipeline_mode = #tpu.pipeline_mode<synchronous>, transform_indices = @transform_10, window_bounds = array<i64: 1, 128>}, {pipeline_mode = #tpu.pipeline_mode<synchronous>, transform_indices = @transform_11, window_bounds = array<i64: 128, 128>}, {pipeline_mode = #tpu.pipeline_mode<synchronous>, transform_indices = @transform_12, window_bounds = array<i64: 1, 128>}, {pipeline_mode = #tpu.pipeline_mode<synchronous>, transform_indices = @transform_13, window_bounds = array<i64: 128, 128>}, {pipeline_mode = #tpu.pipeline_mode<synchronous>, transform_indices = @transform_14, window_bounds = array<i64: 1, 128>}, {pipeline_mode = #tpu.pipeline_mode<synchronous>, transform_indices = @transform_15, window_bounds = array<i64: 128, 128>}, {pipeline_mode = #tpu.pipeline_mode<synchronous>, transform_indices = @transform_16, window_bounds = array<i64: 1, 128>}, {pipeline_mode = #tpu.pipeline_mode<synchronous>, transform_indices = @transform_17, window_bounds = array<i64: 128, 128>}, {pipeline_mode = #tpu.pipeline_mode<synchronous>, transform_indices = @transform_18, window_bounds = array<i64: 1, 128>}, {transform_indices = @transform_19, window_bounds = array<i64: 8, 128>}]} {
    %c0 = arith.constant 0 : index
    %c0_0 = arith.constant 0 : index
    %0 = vector.load %arg1[%c0, %c0_0] : memref<8x784xf32, #tpu.memory_space<vmem>>, vector<8x784xf32>
    %c0_1 = arith.constant 0 : index
    %c0_2 = arith.constant 0 : index
    %1 = vector.load %arg2[%c0_1, %c0_2] : memref<784x128xf32, #tpu.memory_space<vmem>>, vector<784x128xf32>
    %c0_3 = arith.constant 0 : index
    %c0_4 = arith.constant 0 : index
    %2 = vector.load %arg3[%c0_3, %c0_4] : memref<1x128xf32, #tpu.memory_space<vmem>>, vector<1x128xf32>
    %cst = arith.constant dense<0.000000e+00> : vector<8x128xf32>
    %3 = tpu.matmul %0, %1, %cst {dimension_numbers = #tpu.dot_dimension_numbers<[1], [0], [0], [1], [0, 0, 1, 1], [], []>, precision = #tpu.contract_precision<fp32>} : vector<8x784xf32>, vector<784x128xf32>, vector<8x128xf32> -> vector<8x128xf32>
    %4 = vector.broadcast %2 : vector<1x128xf32> to vector<8x128xf32>
    %5 = arith.addf %3, %4 : vector<8x128xf32>
    %cst_5 = arith.constant 5.000000e-01 : f32
    %6 = vector.broadcast %cst_5 : f32 to vector<8x128xf32>
    %7 = arith.mulf %6, %5 : vector<8x128xf32>
    %8 = arith.mulf %5, %5 : vector<8x128xf32>
    %9 = arith.mulf %8, %5 : vector<8x128xf32>
    %cst_6 = arith.constant 4.471500e-02 : f32
    %10 = vector.broadcast %cst_6 : f32 to vector<8x128xf32>
    %11 = arith.mulf %10, %9 : vector<8x128xf32>
    %12 = arith.addf %5, %11 : vector<8x128xf32>
    %cst_7 = arith.constant 0.797884583 : f32
    %13 = vector.broadcast %cst_7 : f32 to vector<8x128xf32>
    %14 = arith.mulf %13, %12 : vector<8x128xf32>
    %15 = math.tanh %14 : vector<8x128xf32>
    %cst_8 = arith.constant 1.000000e+00 : f32
    %16 = vector.broadcast %cst_8 : f32 to vector<8x128xf32>
    %17 = arith.addf %16, %15 : vector<8x128xf32>
    %18 = arith.mulf %7, %17 : vector<8x128xf32>
    %c0_9 = arith.constant 0 : index
    %c0_10 = arith.constant 0 : index
    %19 = vector.load %arg4[%c0_9, %c0_10] : memref<128x128xf32, #tpu.memory_space<vmem>>, vector<128x128xf32>
    %c0_11 = arith.constant 0 : index
    %c0_12 = arith.constant 0 : index
    %20 = vector.load %arg5[%c0_11, %c0_12] : memref<1x128xf32, #tpu.memory_space<vmem>>, vector<1x128xf32>
    %cst_13 = arith.constant dense<0.000000e+00> : vector<8x128xf32>
    %21 = tpu.matmul %18, %19, %cst_13 {dimension_numbers = #tpu.dot_dimension_numbers<[1], [0], [0], [1], [0, 0, 1, 1], [], []>, precision = #tpu.contract_precision<fp32>} : vector<8x128xf32>, vector<128x128xf32>, vector<8x128xf32> -> vector<8x128xf32>
    %22 = vector.broadcast %20 : vector<1x128xf32> to vector<8x128xf32>
    %23 = arith.addf %21, %22 : vector<8x128xf32>
    %cst_14 = arith.constant 5.000000e-01 : f32
    %24 = vector.broadcast %cst_14 : f32 to vector<8x128xf32>
    %25 = arith.mulf %24, %23 : vector<8x128xf32>
    %26 = arith.mulf %23, %23 : vector<8x128xf32>
    %27 = arith.mulf %26, %23 : vector<8x128xf32>
    %cst_15 = arith.constant 4.471500e-02 : f32
    %28 = vector.broadcast %cst_15 : f32 to vector<8x128xf32>
    %29 = arith.mulf %28, %27 : vector<8x128xf32>
    %30 = arith.addf %23, %29 : vector<8x128xf32>
    %cst_16 = arith.constant 0.797884583 : f32
    %31 = vector.broadcast %cst_16 : f32 to vector<8x128xf32>
    %32 = arith.mulf %31, %30 : vector<8x128xf32>
    %33 = math.tanh %32 : vector<8x128xf32>
    %cst_17 = arith.constant 1.000000e+00 : f32
    %34 = vector.broadcast %cst_17 : f32 to vector<8x128xf32>
    %35 = arith.addf %34, %33 : vector<8x128xf32>
    %36 = arith.mulf %25, %35 : vector<8x128xf32>
    %c0_18 = arith.constant 0 : index
    %c0_19 = arith.constant 0 : index
    %37 = vector.load %arg6[%c0_18, %c0_19] : memref<128x128xf32, #tpu.memory_space<vmem>>, vector<128x128xf32>
    %c0_20 = arith.constant 0 : index
    %c0_21 = arith.constant 0 : index
    %38 = vector.load %arg7[%c0_20, %c0_21] : memref<1x128xf32, #tpu.memory_space<vmem>>, vector<1x128xf32>
    %cst_22 = arith.constant dense<0.000000e+00> : vector<8x128xf32>
    %39 = tpu.matmul %36, %37, %cst_22 {dimension_numbers = #tpu.dot_dimension_numbers<[1], [0], [0], [1], [0, 0, 1, 1], [], []>, precision = #tpu.contract_precision<fp32>} : vector<8x128xf32>, vector<128x128xf32>, vector<8x128xf32> -> vector<8x128xf32>
    %40 = vector.broadcast %38 : vector<1x128xf32> to vector<8x128xf32>
    %41 = arith.addf %39, %40 : vector<8x128xf32>
    %cst_23 = arith.constant 5.000000e-01 : f32
    %42 = vector.broadcast %cst_23 : f32 to vector<8x128xf32>
    %43 = arith.mulf %42, %41 : vector<8x128xf32>
    %44 = arith.mulf %41, %41 : vector<8x128xf32>
    %45 = arith.mulf %44, %41 : vector<8x128xf32>
    %cst_24 = arith.constant 4.471500e-02 : f32
    %46 = vector.broadcast %cst_24 : f32 to vector<8x128xf32>
    %47 = arith.mulf %46, %45 : vector<8x128xf32>
    %48 = arith.addf %41, %47 : vector<8x128xf32>
    %cst_25 = arith.constant 0.797884583 : f32
    %49 = vector.broadcast %cst_25 : f32 to vector<8x128xf32>
    %50 = arith.mulf %49, %48 : vector<8x128xf32>
    %51 = math.tanh %50 : vector<8x128xf32>
    %cst_26 = arith.constant 1.000000e+00 : f32
    %52 = vector.broadcast %cst_26 : f32 to vector<8x128xf32>
    %53 = arith.addf %52, %51 : vector<8x128xf32>
    %54 = arith.mulf %43, %53 : vector<8x128xf32>
    %c0_27 = arith.constant 0 : index
    %c0_28 = arith.constant 0 : index
    %55 = vector.load %arg8[%c0_27, %c0_28] : memref<128x128xf32, #tpu.memory_space<vmem>>, vector<128x128xf32>
    %c0_29 = arith.constant 0 : index
    %c0_30 = arith.constant 0 : index
    %56 = vector.load %arg9[%c0_29, %c0_30] : memref<1x128xf32, #tpu.memory_space<vmem>>, vector<1x128xf32>
    %cst_31 = arith.constant dense<0.000000e+00> : vector<8x128xf32>
    %57 = tpu.matmul %54, %55, %cst_31 {dimension_numbers = #tpu.dot_dimension_numbers<[1], [0], [0], [1], [0, 0, 1, 1], [], []>, precision = #tpu.contract_precision<fp32>} : vector<8x128xf32>, vector<128x128xf32>, vector<8x128xf32> -> vector<8x128xf32>
    %58 = vector.broadcast %56 : vector<1x128xf32> to vector<8x128xf32>
    %59 = arith.addf %57, %58 : vector<8x128xf32>
    %cst_32 = arith.constant 5.000000e-01 : f32
    %60 = vector.broadcast %cst_32 : f32 to vector<8x128xf32>
    %61 = arith.mulf %60, %59 : vector<8x128xf32>
    %62 = arith.mulf %59, %59 : vector<8x128xf32>
    %63 = arith.mulf %62, %59 : vector<8x128xf32>
    %cst_33 = arith.constant 4.471500e-02 : f32
    %64 = vector.broadcast %cst_33 : f32 to vector<8x128xf32>
    %65 = arith.mulf %64, %63 : vector<8x128xf32>
    %66 = arith.addf %59, %65 : vector<8x128xf32>
    %cst_34 = arith.constant 0.797884583 : f32
    %67 = vector.broadcast %cst_34 : f32 to vector<8x128xf32>
    %68 = arith.mulf %67, %66 : vector<8x128xf32>
    %69 = math.tanh %68 : vector<8x128xf32>
    %cst_35 = arith.constant 1.000000e+00 : f32
    %70 = vector.broadcast %cst_35 : f32 to vector<8x128xf32>
    %71 = arith.addf %70, %69 : vector<8x128xf32>
    %72 = arith.mulf %61, %71 : vector<8x128xf32>
    %c0_36 = arith.constant 0 : index
    %c0_37 = arith.constant 0 : index
    %73 = vector.load %arg10[%c0_36, %c0_37] : memref<128x128xf32, #tpu.memory_space<vmem>>, vector<128x128xf32>
    %c0_38 = arith.constant 0 : index
    %c0_39 = arith.constant 0 : index
    %74 = vector.load %arg11[%c0_38, %c0_39] : memref<1x128xf32, #tpu.memory_space<vmem>>, vector<1x128xf32>
    %cst_40 = arith.constant dense<0.000000e+00> : vector<8x128xf32>
    %75 = tpu.matmul %72, %73, %cst_40 {dimension_numbers = #tpu.dot_dimension_numbers<[1], [0], [0], [1], [0, 0, 1, 1], [], []>, precision = #tpu.contract_precision<fp32>} : vector<8x128xf32>, vector<128x128xf32>, vector<8x128xf32> -> vector<8x128xf32>
    %76 = vector.broadcast %74 : vector<1x128xf32> to vector<8x128xf32>
    %77 = arith.addf %75, %76 : vector<8x128xf32>
    %cst_41 = arith.constant 5.000000e-01 : f32
    %78 = vector.broadcast %cst_41 : f32 to vector<8x128xf32>
    %79 = arith.mulf %78, %77 : vector<8x128xf32>
    %80 = arith.mulf %77, %77 : vector<8x128xf32>
    %81 = arith.mulf %80, %77 : vector<8x128xf32>
    %cst_42 = arith.constant 4.471500e-02 : f32
    %82 = vector.broadcast %cst_42 : f32 to vector<8x128xf32>
    %83 = arith.mulf %82, %81 : vector<8x128xf32>
    %84 = arith.addf %77, %83 : vector<8x128xf32>
    %cst_43 = arith.constant 0.797884583 : f32
    %85 = vector.broadcast %cst_43 : f32 to vector<8x128xf32>
    %86 = arith.mulf %85, %84 : vector<8x128xf32>
    %87 = math.tanh %86 : vector<8x128xf32>
    %cst_44 = arith.constant 1.000000e+00 : f32
    %88 = vector.broadcast %cst_44 : f32 to vector<8x128xf32>
    %89 = arith.addf %88, %87 : vector<8x128xf32>
    %90 = arith.mulf %79, %89 : vector<8x128xf32>
    %c0_45 = arith.constant 0 : index
    %c0_46 = arith.constant 0 : index
    %91 = vector.load %arg12[%c0_45, %c0_46] : memref<128x128xf32, #tpu.memory_space<vmem>>, vector<128x128xf32>
    %c0_47 = arith.constant 0 : index
    %c0_48 = arith.constant 0 : index
    %92 = vector.load %arg13[%c0_47, %c0_48] : memref<1x128xf32, #tpu.memory_space<vmem>>, vector<1x128xf32>
    %cst_49 = arith.constant dense<0.000000e+00> : vector<8x128xf32>
    %93 = tpu.matmul %90, %91, %cst_49 {dimension_numbers = #tpu.dot_dimension_numbers<[1], [0], [0], [1], [0, 0, 1, 1], [], []>, precision = #tpu.contract_precision<fp32>} : vector<8x128xf32>, vector<128x128xf32>, vector<8x128xf32> -> vector<8x128xf32>
    %94 = vector.broadcast %92 : vector<1x128xf32> to vector<8x128xf32>
    %95 = arith.addf %93, %94 : vector<8x128xf32>
    %cst_50 = arith.constant 5.000000e-01 : f32
    %96 = vector.broadcast %cst_50 : f32 to vector<8x128xf32>
    %97 = arith.mulf %96, %95 : vector<8x128xf32>
    %98 = arith.mulf %95, %95 : vector<8x128xf32>
    %99 = arith.mulf %98, %95 : vector<8x128xf32>
    %cst_51 = arith.constant 4.471500e-02 : f32
    %100 = vector.broadcast %cst_51 : f32 to vector<8x128xf32>
    %101 = arith.mulf %100, %99 : vector<8x128xf32>
    %102 = arith.addf %95, %101 : vector<8x128xf32>
    %cst_52 = arith.constant 0.797884583 : f32
    %103 = vector.broadcast %cst_52 : f32 to vector<8x128xf32>
    %104 = arith.mulf %103, %102 : vector<8x128xf32>
    %105 = math.tanh %104 : vector<8x128xf32>
    %cst_53 = arith.constant 1.000000e+00 : f32
    %106 = vector.broadcast %cst_53 : f32 to vector<8x128xf32>
    %107 = arith.addf %106, %105 : vector<8x128xf32>
    %108 = arith.mulf %97, %107 : vector<8x128xf32>
    %c0_54 = arith.constant 0 : index
    %c0_55 = arith.constant 0 : index
    %109 = vector.load %arg14[%c0_54, %c0_55] : memref<128x128xf32, #tpu.memory_space<vmem>>, vector<128x128xf32>
    %c0_56 = arith.constant 0 : index
    %c0_57 = arith.constant 0 : index
    %110 = vector.load %arg15[%c0_56, %c0_57] : memref<1x128xf32, #tpu.memory_space<vmem>>, vector<1x128xf32>
    %cst_58 = arith.constant dense<0.000000e+00> : vector<8x128xf32>
    %111 = tpu.matmul %108, %109, %cst_58 {dimension_numbers = #tpu.dot_dimension_numbers<[1], [0], [0], [1], [0, 0, 1, 1], [], []>, precision = #tpu.contract_precision<fp32>} : vector<8x128xf32>, vector<128x128xf32>, vector<8x128xf32> -> vector<8x128xf32>
    %112 = vector.broadcast %110 : vector<1x128xf32> to vector<8x128xf32>
    %113 = arith.addf %111, %112 : vector<8x128xf32>
    %cst_59 = arith.constant 5.000000e-01 : f32
    %114 = vector.broadcast %cst_59 : f32 to vector<8x128xf32>
    %115 = arith.mulf %114, %113 : vector<8x128xf32>
    %116 = arith.mulf %113, %113 : vector<8x128xf32>
    %117 = arith.mulf %116, %113 : vector<8x128xf32>
    %cst_60 = arith.constant 4.471500e-02 : f32
    %118 = vector.broadcast %cst_60 : f32 to vector<8x128xf32>
    %119 = arith.mulf %118, %117 : vector<8x128xf32>
    %120 = arith.addf %113, %119 : vector<8x128xf32>
    %cst_61 = arith.constant 0.797884583 : f32
    %121 = vector.broadcast %cst_61 : f32 to vector<8x128xf32>
    %122 = arith.mulf %121, %120 : vector<8x128xf32>
    %123 = math.tanh %122 : vector<8x128xf32>
    %cst_62 = arith.constant 1.000000e+00 : f32
    %124 = vector.broadcast %cst_62 : f32 to vector<8x128xf32>
    %125 = arith.addf %124, %123 : vector<8x128xf32>
    %126 = arith.mulf %115, %125 : vector<8x128xf32>
    %c0_63 = arith.constant 0 : index
    %c0_64 = arith.constant 0 : index
    %127 = vector.load %arg16[%c0_63, %c0_64] : memref<128x128xf32, #tpu.memory_space<vmem>>, vector<128x128xf32>
    %c0_65 = arith.constant 0 : index
    %c0_66 = arith.constant 0 : index
    %128 = vector.load %arg17[%c0_65, %c0_66] : memref<1x128xf32, #tpu.memory_space<vmem>>, vector<1x128xf32>
    %cst_67 = arith.constant dense<0.000000e+00> : vector<8x128xf32>
    %129 = tpu.matmul %126, %127, %cst_67 {dimension_numbers = #tpu.dot_dimension_numbers<[1], [0], [0], [1], [0, 0, 1, 1], [], []>, precision = #tpu.contract_precision<fp32>} : vector<8x128xf32>, vector<128x128xf32>, vector<8x128xf32> -> vector<8x128xf32>
    %130 = vector.broadcast %128 : vector<1x128xf32> to vector<8x128xf32>
    %131 = arith.addf %129, %130 : vector<8x128xf32>
    %cst_68 = arith.constant 5.000000e-01 : f32
    %132 = vector.broadcast %cst_68 : f32 to vector<8x128xf32>
    %133 = arith.mulf %132, %131 : vector<8x128xf32>
    %134 = arith.mulf %131, %131 : vector<8x128xf32>
    %135 = arith.mulf %134, %131 : vector<8x128xf32>
    %cst_69 = arith.constant 4.471500e-02 : f32
    %136 = vector.broadcast %cst_69 : f32 to vector<8x128xf32>
    %137 = arith.mulf %136, %135 : vector<8x128xf32>
    %138 = arith.addf %131, %137 : vector<8x128xf32>
    %cst_70 = arith.constant 0.797884583 : f32
    %139 = vector.broadcast %cst_70 : f32 to vector<8x128xf32>
    %140 = arith.mulf %139, %138 : vector<8x128xf32>
    %141 = math.tanh %140 : vector<8x128xf32>
    %cst_71 = arith.constant 1.000000e+00 : f32
    %142 = vector.broadcast %cst_71 : f32 to vector<8x128xf32>
    %143 = arith.addf %142, %141 : vector<8x128xf32>
    %144 = arith.mulf %133, %143 : vector<8x128xf32>
    %c0_72 = arith.constant 0 : index
    %c0_73 = arith.constant 0 : index
    %145 = vector.load %arg18[%c0_72, %c0_73] : memref<128x128xf32, #tpu.memory_space<vmem>>, vector<128x128xf32>
    %c0_74 = arith.constant 0 : index
    %c0_75 = arith.constant 0 : index
    %146 = vector.load %arg19[%c0_74, %c0_75] : memref<1x128xf32, #tpu.memory_space<vmem>>, vector<1x128xf32>
    %cst_76 = arith.constant dense<0.000000e+00> : vector<8x128xf32>
    %147 = tpu.matmul %144, %145, %cst_76 {dimension_numbers = #tpu.dot_dimension_numbers<[1], [0], [0], [1], [0, 0, 1, 1], [], []>, precision = #tpu.contract_precision<fp32>} : vector<8x128xf32>, vector<128x128xf32>, vector<8x128xf32> -> vector<8x128xf32>
    %148 = vector.broadcast %146 : vector<1x128xf32> to vector<8x128xf32>
    %149 = arith.addf %147, %148 : vector<8x128xf32>
    %c0_77 = arith.constant 0 : index
    %c0_78 = arith.constant 0 : index
    %150 = vector.load %arg20[%c0_77, %c0_78] : memref<8x128xf32, #tpu.memory_space<vmem>>, vector<8x128xf32>
    tpu.vector_store %arg20[%c0_77, %c0_78], %149 {strides = array<i32>} : memref<8x128xf32, #tpu.memory_space<vmem>>, vector<8x128xf32>,
    return
  }
  func.func @transform_0(%arg0: i32) -> (i32, i32) {
    %c0_i32 = arith.constant 0 : i32
    %c0_i32_0 = arith.constant 0 : i32
    return %arg0, %c0_i32 : i32, i32
  }
  func.func @transform_1(%arg0: i32) -> (i32, i32) {
    %c0_i32 = arith.constant 0 : i32
    %c0_i32_0 = arith.constant 0 : i32
    %c0_i32_1 = arith.constant 0 : i32
    return %c0_i32, %c0_i32_0 : i32, i32
  }
  func.func @transform_2(%arg0: i32) -> (i32, i32) {
    %c0_i32 = arith.constant 0 : i32
    %c0_i32_0 = arith.constant 0 : i32
    %c0_i32_1 = arith.constant 0 : i32
    return %c0_i32, %c0_i32_0 : i32, i32
  }
  func.func @transform_3(%arg0: i32) -> (i32, i32) {
    %c0_i32 = arith.constant 0 : i32
    %c0_i32_0 = arith.constant 0 : i32
    %c0_i32_1 = arith.constant 0 : i32
    return %c0_i32, %c0_i32_0 : i32, i32
  }
  func.func @transform_4(%arg0: i32) -> (i32, i32) {
    %c0_i32 = arith.constant 0 : i32
    %c0_i32_0 = arith.constant 0 : i32
    %c0_i32_1 = arith.constant 0 : i32
    return %c0_i32, %c0_i32_0 : i32, i32
  }
  func.func @transform_5(%arg0: i32) -> (i32, i32) {
    %c0_i32 = arith.constant 0 : i32
    %c0_i32_0 = arith.constant 0 : i32
    %c0_i32_1 = arith.constant 0 : i32
    return %c0_i32, %c0_i32_0 : i32, i32
  }
  func.func @transform_6(%arg0: i32) -> (i32, i32) {
    %c0_i32 = arith.constant 0 : i32
    %c0_i32_0 = arith.constant 0 : i32
    %c0_i32_1 = arith.constant 0 : i32
    return %c0_i32, %c0_i32_0 : i32, i32
  }
  func.func @transform_7(%arg0: i32) -> (i32, i32) {
    %c0_i32 = arith.constant 0 : i32
    %c0_i32_0 = arith.constant 0 : i32
    %c0_i32_1 = arith.constant 0 : i32
    return %c0_i32, %c0_i32_0 : i32, i32
  }
  func.func @transform_8(%arg0: i32) -> (i32, i32) {
    %c0_i32 = arith.constant 0 : i32
    %c0_i32_0 = arith.constant 0 : i32
    %c0_i32_1 = arith.constant 0 : i32
    return %c0_i32, %c0_i32_0 : i32, i32
  }
  func.func @transform_9(%arg0: i32) -> (i32, i32) {
    %c0_i32 = arith.constant 0 : i32
    %c0_i32_0 = arith.constant 0 : i32
    %c0_i32_1 = arith.constant 0 : i32
    return %c0_i32, %c0_i32_0 : i32, i32
  }
  func.func @transform_10(%arg0: i32) -> (i32, i32) {
    %c0_i32 = arith.constant 0 : i32
    %c0_i32_0 = arith.constant 0 : i32
    %c0_i32_1 = arith.constant 0 : i32
    return %c0_i32, %c0_i32_0 : i32, i32
  }
  func.func @transform_11(%arg0: i32) -> (i32, i32) {
    %c0_i32 = arith.constant 0 : i32
    %c0_i32_0 = arith.constant 0 : i32
    %c0_i32_1 = arith.constant 0 : i32
    return %c0_i32, %c0_i32_0 : i32, i32
  }
  func.func @transform_12(%arg0: i32) -> (i32, i32) {
    %c0_i32 = arith.constant 0 : i32
    %c0_i32_0 = arith.constant 0 : i32
    %c0_i32_1 = arith.constant 0 : i32
    return %c0_i32, %c0_i32_0 : i32, i32
  }
  func.func @transform_13(%arg0: i32) -> (i32, i32) {
    %c0_i32 = arith.constant 0 : i32
    %c0_i32_0 = arith.constant 0 : i32
    %c0_i32_1 = arith.constant 0 : i32
    return %c0_i32, %c0_i32_0 : i32, i32
  }
  func.func @transform_14(%arg0: i32) -> (i32, i32) {
    %c0_i32 = arith.constant 0 : i32
    %c0_i32_0 = arith.constant 0 : i32
    %c0_i32_1 = arith.constant 0 : i32
    return %c0_i32, %c0_i32_0 : i32, i32
  }
  func.func @transform_15(%arg0: i32) -> (i32, i32) {
    %c0_i32 = arith.constant 0 : i32
    %c0_i32_0 = arith.constant 0 : i32
    %c0_i32_1 = arith.constant 0 : i32
    return %c0_i32, %c0_i32_0 : i32, i32
  }
  func.func @transform_16(%arg0: i32) -> (i32, i32) {
    %c0_i32 = arith.constant 0 : i32
    %c0_i32_0 = arith.constant 0 : i32
    %c0_i32_1 = arith.constant 0 : i32
    return %c0_i32, %c0_i32_0 : i32, i32
  }
  func.func @transform_17(%arg0: i32) -> (i32, i32) {
    %c0_i32 = arith.constant 0 : i32
    %c0_i32_0 = arith.constant 0 : i32
    %c0_i32_1 = arith.constant 0 : i32
    return %c0_i32, %c0_i32_0 : i32, i32
  }
  func.func @transform_18(%arg0: i32) -> (i32, i32) {
    %c0_i32 = arith.constant 0 : i32
    %c0_i32_0 = arith.constant 0 : i32
    %c0_i32_1 = arith.constant 0 : i32
    return %c0_i32, %c0_i32_0 : i32, i32
  }
  func.func @transform_19(%arg0: i32) -> (i32, i32) {
    %c0_i32 = arith.constant 0 : i32
    %c0_i32_0 = arith.constant 0 : i32
    return %arg0, %c0_i32 : i32, i32
  }
}

</mosaic_0001>

<bundles_post_ra>
// kernel: tpu_custom_call.1
= control target key start
LH: loop header
LB: loop body
LE: loop exit
PB: predicated region body
PF: predicated region fallthrough
CT: control target
= control target key end

     0   :  { %s17821_s0 = inlined_call_operand.hbm [shape: f32[8,784], index: 0, kind: input, shape index: {}]   ;;  %s17822_s1 = inlined_call_operand.hbm [shape: f32[784,128], index: 1, kind: input, shape index: {}]   ;;  %s17823_s2 = inlined_call_operand.vmem [shape: f32[1,128], index: 2, kind: input, shape index: {}]   ;;  %s17824_s3 = inlined_call_operand.hbm [shape: f32[128,128], index: 3, kind: input, shape index: {}]   ;;  %s17825_s4 = inlined_call_operand.vmem [shape: f32[1,128], index: 4, kind: input, shape index: {}]   ;;  %s17826_s5 = inlined_call_operand.hbm [shape: f32[128,128], index: 5, kind: input, shape index: {}]   ;;  %s17827_s6 = inlined_call_operand.vmem [shape: f32[1,128], index: 6, kind: input, shape index: {}]   ;;  %s17828_s7 = inlined_call_operand.hbm [shape: f32[128,128], index: 7, kind: input, shape index: {}]   ;;  %s17829_s8 = inlined_call_operand.vmem [shape: f32[1,128], index: 8, kind: input, shape index: {}]   ;;  %s17830_s9 = inlined_call_operand.hbm [shape: f32[128,128], index: 9, kind: input, shape index: {}]   ;;  %s17831_s10 = inlined_call_operand.vmem [shape: f32[1,128], index: 10, kind: input, shape index: {}]   ;;  %s17832_s11 = inlined_call_operand.hbm [shape: f32[128,128], index: 11, kind: input, shape index: {}]   ;;  %s17833_s12 = inlined_call_operand.vmem [shape: f32[1,128], index: 12, kind: input, shape index: {}]   ;;  %s17834_s13 = inlined_call_operand.hbm [shape: f32[128,128], index: 13, kind: input, shape index: {}]   ;;  %s17835_s14 = inlined_call_operand.vmem [shape: f32[1,128], index: 14, kind: input, shape index: {}]   ;;  %s17836_s15 = inlined_call_operand.hbm [shape: f32[128,128], index: 15, kind: input, shape index: {}]   ;;  %s17837_s16 = inlined_call_operand.vmem [shape: f32[1,128], index: 16, kind: input, shape index: {}]   ;;  %s17838_s17 = inlined_call_operand.hbm [shape: f32[128,128], index: 17, kind: input, shape index: {}]   ;;  %s17839_s18 = inlined_call_operand.vmem [shape: f32[1,128], index: 18, kind: input, shape index: {}]   ;;  %s17840_s19 = inlined_call_operand.hbm [shape: f32[8,128], index: 19, kind: output, shape index: {}]  }
   0x1   :  { %18081 = sst [smem:[#allocation39_spill]] %s17821_s0 }
   0x2   :  { %18082 = sst [smem:[#allocation40_spill]] %s17822_s1 }
   0x3   :  { %18083 = sst [smem:[#allocation41_spill]] %s17823_s2 }
   0x4   :  { %18084 = sst [smem:[#allocation42_spill]] %s17824_s3 }
   0x5   :  { %18085 = sst [smem:[#allocation43_spill]] %s17839_s18 }
   0x6   :  { %18086 = sst [smem:[#allocation44_spill]] %s17840_s19 }
   0x7   :  { %24 = vsyncpa [#allocation3], 0 }
   0x8   :  { %25 = vsyncpa [#allocation6], 0 }
   0x9   :  { %26 = vsyncpa [#allocation9], 0 }
   0xa   :  { %27 = vsyncpa [#allocation12], 0 }
   0xb   :  { %28 = vsyncpa [#allocation15], 0 }
   0xc   :  { %29 = vsyncpa [#allocation18], 0 }
   0xd   :  { %30 = vsyncpa [#allocation4], 0  ;;  %s14090_s0 = smov [#allocation5]   ;;  %s18087_s1 = sld [smem:[#allocation40_spill]] }
   0xe   :  { %s46_s30 = sshll.u32 %s14090_s0, 4  ;;  %s47_s30 = int_to_ptr.vmem [resolvable:$true] %s46_s30 }
  0x13   :  { %s13834_s22 = scalar_lea.hbm %s18087_s1, 12544 }
  0x14   :  { %p13835_p0 = scmp.ne.s32.totalorder %s18087_s1, %s13834_s22  ;;  %p13838_p1 = scmp.lt.u32.totalorder %s13834_s22, %s18087_s1 }
  0x16   :  { %p13840_p2 = pnand %p13838_p1, %p13835_p0 }
  0x18   :  { %13843 = shalt.err (!%p13840_p2)
}
  0x19   :  { %s13844_s3 = scalar_lea.vmem %s47_s30, 12544  ;;  %p13849_p4 = scmp.lt.s32.totalorder %s47_s30, %s47_s30 }
  0x1a   :  { %p13845_p3 = scmp.ne.s32.totalorder %s47_s30, %s13844_s3  ;;  %p13850_p5 = scmp.lt.s32.totalorder %s13844_s3, %s13844_s3 }
  0x1c   :  { %p13851_p6 = por %p13850_p5, %p13849_p4 }
  0x1e   :  { %p13852_p7 = pnand %p13851_p6, %p13845_p3 }
  0x20   :  { %13855 = shalt.err (!%p13852_p7)
}
  0x21   :  { %s14091_s26 = smov 128   ;;  %s14092_s27 = smov 8  }
  0x22   :  { %52 = dma.hbm_to_vmem [thread:$0]  %s18087_s1, 12544, %s47_s30, [#allocation6], %s14091_s26, %s14091_s26, %s14092_s27  }
  0x23   :  { %s14093_s0 = smov [#allocation8]   ;;  %s14094_s21 = smov [#allocation11]  }
  0x24   :  { %s74_s20 = sshll.u32 %s14093_s0, 4  ;;  %s102_s22 = sshll.u32 %s14094_s21, 4  ;;  %s75_s20 = int_to_ptr.vmem [resolvable:$true] %s74_s20  ;;  %s103_s22 = int_to_ptr.vmem [resolvable:$true] %s102_s22 }
  0x25   :  { %s13856_s24 = scalar_lea.hbm %s17826_s5, 2048 }
  0x26   :  { %p13857_p8 = scmp.ne.s32.totalorder %s17826_s5, %s13856_s24  ;;  %p13860_p9 = scmp.lt.u32.totalorder %s13856_s24, %s17826_s5 }
  0x28   :  { %p13862_p10 = pnand %p13860_p9, %p13857_p8 }
  0x2a   :  { %13865 = shalt.err (!%p13862_p10)
}
  0x2b   :  { %s13866_s30 = scalar_lea.vmem %s75_s20, 2048  ;;  %p13871_p12 = scmp.lt.s32.totalorder %s75_s20, %s75_s20 }
  0x2c   :  { %p13867_p11 = scmp.ne.s32.totalorder %s75_s20, %s13866_s30  ;;  %p13872_p13 = scmp.lt.s32.totalorder %s13866_s30, %s13866_s30 }
  0x2e   :  { %p13873_p0 = por %p13872_p13, %p13871_p12 }
  0x30   :  { %p13874_p1 = pnand %p13873_p0, %p13867_p11 }
  0x32   :  { %13877 = shalt.err (!%p13874_p1)
}
  0x33   :  { %80 = dma.hbm_to_vmem [thread:$0]  %s17826_s5, 2048, %s75_s20, [#allocation9], %s14091_s26, %s14091_s26, %s14092_s27  }
  0x34   :  { %s13878_s19 = scalar_lea.hbm %s17830_s9, 2048 }
  0x35   :  { %p13879_p2 = scmp.ne.s32.totalorder %s17830_s9, %s13878_s19  ;;  %p13882_p3 = scmp.lt.u32.totalorder %s13878_s19, %s17830_s9 }
  0x37   :  { %p13884_p4 = pnand %p13882_p3, %p13879_p2 }
  0x39   :  { %13887 = shalt.err (!%p13884_p4)
}
  0x3a   :  { %s13888_s24 = scalar_lea.vmem %s103_s22, 2048  ;;  %p13893_p6 = scmp.lt.s32.totalorder %s103_s22, %s103_s22 }
  0x3b   :  { %p13889_p5 = scmp.ne.s32.totalorder %s103_s22, %s13888_s24  ;;  %p13894_p7 = scmp.lt.s32.totalorder %s13888_s24, %s13888_s24 }
  0x3d   :  { %p13895_p8 = por %p13894_p7, %p13893_p6 }
  0x3f   :  { %p13896_p9 = pnand %p13895_p8, %p13889_p5 }
  0x41   :  { %13899 = shalt.err (!%p13896_p9)
}
  0x42   :  { %108 = dma.hbm_to_vmem [thread:$0]  %s17830_s9, 2048, %s103_s22, [#allocation12], %s14091_s26, %s14091_s26, %s14092_s27  }
  0x43   :  { %s14095_s25 = smov [#allocation14]   ;;  %s14096_s30 = smov [#allocation2]  }
  0x44   :  { %s130_s3 = sshll.u32 %s14095_s25, 4  ;;  %s37_s1 = sshll.u32 %s14096_s30, 4  ;;  %s131_s3 = int_to_ptr.vmem [resolvable:$true] %s130_s3  ;;  %s38_s1 = int_to_ptr.vmem [resolvable:$true] %s37_s1 }
  0x45   :  { %s13900_s18 = scalar_lea.hbm %s17834_s13, 2048 }
  0x46   :  { %p13901_p10 = scmp.ne.s32.totalorder %s17834_s13, %s13900_s18  ;;  %p13904_p11 = scmp.lt.u32.totalorder %s13900_s18, %s17834_s13 }
  0x48   :  { %p13906_p12 = pnand %p13904_p11, %p13901_p10 }
  0x4a   :  { %13909 = shalt.err (!%p13906_p12)
}
  0x4b   :  { %s13910_s9 = scalar_lea.vmem %s131_s3, 2048  ;;  %p13915_p0 = scmp.lt.s32.totalorder %s131_s3, %s131_s3 }
  0x4c   :  { %p13911_p13 = scmp.ne.s32.totalorder %s131_s3, %s13910_s9  ;;  %p13916_p1 = scmp.lt.s32.totalorder %s13910_s9, %s13910_s9 }
  0x4e   :  { %p13917_p2 = por %p13916_p1, %p13915_p0 }
  0x50   :  { %p13918_p3 = pnand %p13917_p2, %p13911_p13 }
  0x52   :  { %13921 = shalt.err (!%p13918_p3)
}
  0x53   :  { %136 = dma.hbm_to_vmem [thread:$0]  %s17834_s13, 2048, %s131_s3, [#allocation15], %s14091_s26, %s14091_s26, %s14092_s27  }
  0x54   :  { %s18088_s20 = sld [smem:[#allocation39_spill]] }
  0x5a   :  { %s13922_s25 = scalar_lea.hbm %s18088_s20, 896 }
  0x5b   :  { %p13923_p4 = scmp.ne.s32.totalorder %s18088_s20, %s13922_s25  ;;  %p13926_p5 = scmp.lt.u32.totalorder %s13922_s25, %s18088_s20 }
  0x5d   :  { %p13928_p6 = pnand %p13926_p5, %p13923_p4 }
  0x5f   :  { %13931 = shalt.err (!%p13928_p6)
}
  0x60   :  { %s13932_s19 = scalar_lea.vmem %s38_s1, 896  ;;  %p13937_p8 = scmp.lt.s32.totalorder %s38_s1, %s38_s1 }
  0x61   :  { %p13933_p7 = scmp.ne.s32.totalorder %s38_s1, %s13932_s19  ;;  %p13938_p9 = scmp.lt.s32.totalorder %s13932_s19, %s13932_s19 }
  0x63   :  { %p13939_p10 = por %p13938_p9, %p13937_p8 }
  0x65   :  { %p13940_p11 = pnand %p13939_p10, %p13933_p7 }
  0x67   :  { %13943 = shalt.err (!%p13940_p11)
}
  0x68   :  { %40 = dma.hbm_to_vmem [thread:$0]  %s18088_s20, 896, %s38_s1, [#allocation3]  }
  0x69   :  { %s14097_s0 = smov [#allocation7]   ;;  %s14098_s2 = smov [#allocation10]  }
  0x6a   :  { %s60_s21 = sshll.u32 %s14097_s0, 4  ;;  %s88_s9 = sshll.u32 %s14098_s2, 4  ;;  %s61_s21 = int_to_ptr.vmem [resolvable:$true] %s60_s21  ;;  %s89_s9 = int_to_ptr.vmem [resolvable:$true] %s88_s9 }
  0x6b   :  { %s18089_s24 = sld [smem:[#allocation42_spill]] }
  0x71   :  { %s13944_s5 = scalar_lea.hbm %s18089_s24, 2048 }
  0x72   :  { %p13945_p12 = scmp.ne.s32.totalorder %s18089_s24, %s13944_s5  ;;  %p13948_p13 = scmp.lt.u32.totalorder %s13944_s5, %s18089_s24 }
  0x74   :  { %p13950_p0 = pnand %p13948_p13, %p13945_p12 }
  0x76   :  { %13953 = shalt.err (!%p13950_p0)
}
  0x77   :  { %s13954_s1 = scalar_lea.vmem %s61_s21, 2048  ;;  %p13959_p2 = scmp.lt.s32.totalorder %s61_s21, %s61_s21 }
  0x78   :  { %p13955_p1 = scmp.ne.s32.totalorder %s61_s21, %s13954_s1  ;;  %p13960_p3 = scmp.lt.s32.totalorder %s13954_s1, %s13954_s1 }
  0x7a   :  { %p13961_p4 = por %p13960_p3, %p13959_p2 }
  0x7c   :  { %p13962_p5 = pnand %p13961_p4, %p13955_p1 }
  0x7e   :  { %13965 = shalt.err (!%p13962_p5)
}
  0x7f   :  { %66 = dma.hbm_to_vmem [thread:$0]  %s18089_s24, 2048, %s61_s21, [#allocation6], %s14091_s26, %s14091_s26, %s14092_s27  }
  0x80   :  { %s13966_s3 = scalar_lea.hbm %s17828_s7, 2048 }
  0x81   :  { %p13967_p6 = scmp.ne.s32.totalorder %s17828_s7, %s13966_s3  ;;  %p13970_p7 = scmp.lt.u32.totalorder %s13966_s3, %s17828_s7 }
  0x83   :  { %p13972_p8 = pnand %p13970_p7, %p13967_p6 }
  0x85   :  { %13975 = shalt.err (!%p13972_p8)
}
  0x86   :  { %s13976_s5 = scalar_lea.vmem %s89_s9, 2048  ;;  %p13981_p10 = scmp.lt.s32.totalorder %s89_s9, %s89_s9 }
  0x87   :  { %p13977_p9 = scmp.ne.s32.totalorder %s89_s9, %s13976_s5  ;;  %p13982_p11 = scmp.lt.s32.totalorder %s13976_s5, %s13976_s5 }
  0x89   :  { %p13983_p12 = por %p13982_p11, %p13981_p10 }
  0x8b   :  { %p13984_p13 = pnand %p13983_p12, %p13977_p9 }
  0x8d   :  { %13987 = shalt.err (!%p13984_p13)
}
  0x8e   :  { %94 = dma.hbm_to_vmem [thread:$0]  %s17828_s7, 2048, %s89_s9, [#allocation9], %s14091_s26, %s14091_s26, %s14092_s27  }
  0x8f   :  { %s14099_s25 = smov [#allocation13]   ;;  %s14100_s28 = smov [#allocation16]  }
  0x90   :  { %s116_s30 = sshll.u32 %s14099_s25, 4  ;;  %s144_s29 = sshll.u32 %s14100_s28, 4  ;;  %s117_s30 = int_to_ptr.vmem [resolvable:$true] %s116_s30  ;;  %s145_s29 = int_to_ptr.vmem [resolvable:$true] %s144_s29 }
  0x91   :  { %s13988_s18 = scalar_lea.hbm %s17832_s11, 2048 }
  0x92   :  { %p13989_p0 = scmp.ne.s32.totalorder %s17832_s11, %s13988_s18  ;;  %p13992_p1 = scmp.lt.u32.totalorder %s13988_s18, %s17832_s11 }
  0x94   :  { %p13994_p2 = pnand %p13992_p1, %p13989_p0 }
  0x96   :  { %13997 = shalt.err (!%p13994_p2)
}
  0x97   :  { %s13998_s7 = scalar_lea.vmem %s117_s30, 2048  ;;  %p14003_p4 = scmp.lt.s32.totalorder %s117_s30, %s117_s30 }
  0x98   :  { %p13999_p3 = scmp.ne.s32.totalorder %s117_s30, %s13998_s7  ;;  %p14004_p5 = scmp.lt.s32.totalorder %s13998_s7, %s13998_s7 }
  0x9a   :  { %p14005_p6 = por %p14004_p5, %p14003_p4 }
  0x9c   :  { %p14006_p7 = pnand %p14005_p6, %p13999_p3 }
  0x9e   :  { %14009 = shalt.err (!%p14006_p7)
}
  0x9f   :  { %122 = dma.hbm_to_vmem [thread:$0]  %s17832_s11, 2048, %s117_s30, [#allocation12], %s14091_s26, %s14091_s26, %s14092_s27  }
  0xa0   :  { %s14010_s5 = scalar_lea.hbm %s17836_s15, 2048 }
  0xa1   :  { %p14011_p8 = scmp.ne.s32.totalorder %s17836_s15, %s14010_s5  ;;  %p14014_p9 = scmp.lt.u32.totalorder %s14010_s5, %s17836_s15 }
  0xa3   :  { %p14016_p10 = pnand %p14014_p9, %p14011_p8 }
  0xa5   :  { %14019 = shalt.err (!%p14016_p10)
}
  0xa6   :  { %s14020_s1 = scalar_lea.vmem %s145_s29, 2048  ;;  %p14025_p12 = scmp.lt.s32.totalorder %s145_s29, %s145_s29 }
  0xa7   :  { %p14021_p11 = scmp.ne.s32.totalorder %s145_s29, %s14020_s1  ;;  %p14026_p13 = scmp.lt.s32.totalorder %s14020_s1, %s14020_s1 }
  0xa9   :  { %p14027_p0 = por %p14026_p13, %p14025_p12 }
  0xab   :  { %p14028_p1 = pnand %p14027_p0, %p14021_p11 }
  0xad   :  { %14031 = shalt.err (!%p14028_p1)
}
  0xae   :  { %150 = dma.hbm_to_vmem [thread:$0]  %s17836_s15, 2048, %s145_s29, [#allocation15], %s14091_s26, %s14091_s26, %s14092_s27  }
  0xaf   :  { %s14101_s20 = smov [#allocation17]   ;;  %s14032_s3 = scalar_lea.hbm %s17838_s17, 2048 }
  0xb0   :  { %s158_s18 = sshll.u32 %s14101_s20, 4  ;;  %p14033_p2 = scmp.ne.s32.totalorder %s17838_s17, %s14032_s3  ;;  %s159_s18 = int_to_ptr.vmem [resolvable:$true] %s158_s18 }
  0xb1   :  { %p14036_p3 = scmp.lt.u32.totalorder %s14032_s3, %s17838_s17 }
  0xb3   :  { %p14038_p4 = pnand %p14036_p3, %p14033_p2 }
  0xb5   :  { %14041 = shalt.err (!%p14038_p4)
}
  0xb6   :  { %s14042_s22 = scalar_lea.vmem %s159_s18, 2048  ;;  %p14047_p6 = scmp.lt.s32.totalorder %s159_s18, %s159_s18 }
  0xb7   :  { %p14043_p5 = scmp.ne.s32.totalorder %s159_s18, %s14042_s22  ;;  %p14048_p7 = scmp.lt.s32.totalorder %s14042_s22, %s14042_s22 }
  0xb9   :  { %p14049_p8 = por %p14048_p7, %p14047_p6 }
  0xbb   :  { %p14050_p9 = pnand %p14049_p8, %p14043_p5 }
  0xbd   :  { %14053 = shalt.err (!%p14050_p9)
}
  0xbe   :  { %164 = dma.hbm_to_vmem [thread:$0]  %s17838_s17, 2048, %s159_s18, [#allocation18], %s14091_s26, %s14091_s26, %s14092_s27  }
  0xbf   :  { %14076 = dma.done.wait [#allocation3], 896  }
  0xc0   :  { %14077 = vsyncadd [#allocation3], 4294966400 }
  0xc1   :  { %14078 = dma.done.wait [#allocation6], 14592  }
  0xc2   :  { %14079 = vsyncadd [#allocation6], 4294952704 }
  0xc3   :  { %14080 = dma.done.wait [#allocation9], 4096  }
  0xc4   :  { %14081 = vsyncadd [#allocation9], 4294963200 }
  0xc5   :  { %14082 = dma.done.wait [#allocation12], 4096  }
  0xc6   :  { %14083 = vsyncadd [#allocation12], 4294963200 }
  0xc7   :  { %14084 = dma.done.wait [#allocation15], 4096  }
  0xc8   :  { %14085 = vsyncadd [#allocation15], 4294963200 }
  0xc9   :  { %14086 = dma.done.wait [#allocation18], 2048  }
  0xca   :  { %14087 = vsyncadd [#allocation18], 4294965248  ;;  %v220_v0 = vld [vmem:[#allocation5 + $0x80] sm:$0xff]  ;;  %v221_v1 = vld [vmem:[#allocation5 + $0x88] sm:$0xff]  ;;  %s18236_s27 = sld [smem:[#allocation41_spill]]  ;;  %vm309_vm0 = vcmask 130048  }
  0xcb   :  { %v204_v2 = vld [vmem:[#allocation5] sm:$0xff]  ;;  %v362_v3 = vand.u32 4294901760, %v220_v0  ;;  %v365_v4 = vand.u32 4294901760, %v221_v1  ;;  %v205_v5 = vld [vmem:[#allocation5 + $0x8] sm:$0xff]  ;;  %v222_v7 = vld [vmem:[#allocation5 + $0x90] sm:$0xff]  ;;  %vm14103_vm1 = vmmov 0  }
  0xcc   :  { %v314_v6 = vand.u32 4294901760, %v204_v2  ;;  %v223_v8 = vld [vmem:[#allocation5 + $0x98] sm:$0xff]  ;;  %v317_v9 = vand.u32 4294901760, %v205_v5  ;;  %v368_v10 = vand.u32 4294901760, %v222_v7  ;;  %v206_v12 = vld [vmem:[#allocation5 + $0x10] sm:$0xff]  ;;  %v224_v18 = vld [vmem:[#allocation5 + $0xa0] sm:$0xff] }
  0xcd   :  { %v371_v11 = vand.u32 4294901760, %v223_v8  ;;  %v207_v13 = vld [vmem:[#allocation5 + $0x18] sm:$0xff]  ;;  %v14353_v14 = vpack.c.bf16 %v365_v4, %v362_v3  ;;  %v320_v16 = vand.u32 4294901760, %v206_v12  ;;  %v225_v19 = vld [vmem:[#allocation5 + $0xa8] sm:$0xff]  ;;  %v208_v23 = vld [vmem:[#allocation5 + $0x20] sm:$0xff]  ;;  %v374_v29 = vand.u32 4294901760, %v224_v18 }
  0xce   :  { %v14355_v15 = vsub.f32 %v204_v2, %v314_v6  ;;  %v323_v17 = vand.u32 4294901760, %v207_v13  ;;  %v14357_v20 = vpack.c.bf16 %v317_v9, %v314_v6  ;;  %v14359_v21 = vsub.f32 %v205_v5, %v317_v9  ;;  %v209_v24 = vld [vmem:[#allocation5 + $0x28] sm:$0xff]  ;;  %v226_v37 = vld [vmem:[#allocation5 + $0xb0] sm:$0xff]  ;;  %v227_v42 = vld [vmem:[#allocation5 + $0xb8] sm:$0xff]  ;;  %s18371_s20 = sld [smem:[#allocation43_spill]]  ;;  %s14105_s18 = smov [#allocation19]  }
  0xcf   :  { %v14361_v22 = vpack.c.bf16 %v371_v11, %v368_v10  ;;  %11959 = vmatprep.subr.bf16.mxu0 %v14353_v14  ;;  %v14364_v25 = vsub.f32 %v222_v7, %v368_v10  ;;  %v14366_v26 = vsub.f32 %v223_v8, %v371_v11  ;;  %v14370_v28 = vsub.f32 %v206_v12, %v320_v16  ;;  %v210_v55 = vld [vmem:[#allocation5 + $0x30] sm:$0xff]  ;;  %v211_v56 = vld [vmem:[#allocation5 + $0x38] sm:$0xff]  ;;  %v228_v5 = vld [vmem:[#allocation5 + $0xc0] sm:$0xff]  ;;  %s8749_s19 = sshll.u32 %s14105_s18, 4  ;;  %s8750_s19 = int_to_ptr.vmem [resolvable:$true] %s8749_s19 }
  0xd0   :  { %v14368_v27 = vpack.c.bf16 %v323_v17, %v320_v16  ;;  %11961 = vmatpush3.bf16.msra.mxu0 %v14357_v20  ;;  %v377_v30 = vand.u32 4294901760, %v225_v19  ;;  %v14373_v31 = vsub.f32 %v220_v0, %v362_v3  ;;  %v14375_v32 = vsub.f32 %v221_v1, %v365_v4  ;;  %v229_v6 = vld [vmem:[#allocation5 + $0xc8] sm:$0xff]  ;;  %v212_v11 = vld [vmem:[#allocation5 + $0x40] sm:$0xff]  ;;  %s14054_s13 = scalar_lea.vmem %s8750_s19, 128  ;;  %p14059_p11 = scmp.lt.s32.totalorder %s8750_s19, %s8750_s19 }
  0xd1   :  { %11963 = vmatprep.subr.bf16.mxu0 %v14361_v22  ;;  %v326_v33 = vand.u32 4294901760, %v208_v23  ;;  %v329_v34 = vand.u32 4294901760, %v209_v24  ;;  %v17860_v35 = vand.u32 4294901760, %v14355_v15  ;;  %v17859_v36 = vand.u32 4294901760, %v14359_v21  ;;  %p14055_p10 = scmp.ne.s32.totalorder %s8750_s19, %s14054_s13  ;;  %p14060_p12 = scmp.lt.s32.totalorder %s14054_s13, %s14054_s13 }
  0xd2   :  { %v14380_v38 = vsub.f32 %v207_v13, %v323_v17  ;;  %v14382_v39 = vpack.c.bf16 %v377_v30, %v374_v29  ;;  %v14384_v40 = vsub.f32 %v224_v18, %v374_v29  ;;  %v17864_v41 = vand.u32 4294901760, %v14373_v31  ;;  %v213_v29 = vld [vmem:[#allocation5 + $0x48] sm:$0xff] }
  0xd3   :  { %v14387_v43 = vsub.f32 %v225_v19, %v377_v30  ;;  %v17862_v44 = vand.u32 4294901760, %v14375_v32  ;;  %v14390_v45 = vpack.c.bf16 %v329_v34, %v326_v33  ;;  %v14392_v46 = vsub.f32 %v208_v23, %v326_v33  ;;  %p14061_p13 = por %p14060_p12, %p14059_p11 }
  0xd4   :  { %11965 = vmatpush3.bf16.msra.mxu0 %v14368_v27  ;;  %v541_v47 = vsub.f32 %v14373_v31, %v17864_v41  ;;  %v429_v48 = vsub.f32 %v14355_v15, %v17860_v35  ;;  %v436_v49 = vsub.f32 %v14359_v21, %v17859_v36  ;;  %v380_v50 = vand.u32 4294901760, %v226_v37  ;;  %v198_v41 = vld [vmem:[#allocation2 + $0x8] sm:$0xff] }
  0xd5   :  { %11967 = vmatprep.subr.bf16.mxu0 %v14382_v39  ;;  %v548_v51 = vsub.f32 %v14375_v32, %v17862_v44  ;;  %v383_v52 = vand.u32 4294901760, %v227_v42  ;;  %v17857_v53 = vand.u32 4294901760, %v14364_v25  ;;  %v17855_v54 = vand.u32 4294901760, %v14366_v26  ;;  %p14062_p0 = pnand %p14061_p13, %p14055_p10 }
  0xd6   :  { %v542_v57 = vand.u32 4294901760, %v541_v47  ;;  %v14410_v58 = vsub.f32 %v209_v24, %v329_v34  ;;  %v430_v59 = vand.u32 4294901760, %v429_v48  ;;  %v437_v60 = vand.u32 4294901760, %v436_v49 }
  0xd7   :  { %v549_v61 = vand.u32 4294901760, %v548_v51  ;;  %v14412_v62 = vpack.c.bf16 %v383_v52, %v380_v50  ;;  %v14414_v63 = vsub.f32 %v226_v37, %v380_v50  ;;  %v555_v0 = vsub.f32 %v14364_v25, %v17857_v53 }
  0xd8   :  { %11969 = vmatpush3.bf16.msra.mxu0 %v14390_v45  ;;  %v11992_v1 = vpack.c.bf16 %v437_v60, %v430_v59  ;;  %v562_v2 = vsub.f32 %v14366_v26, %v17855_v54  ;;  %v332_v3 = vand.u32 4294901760, %v210_v55  ;;  %v335_v4 = vand.u32 4294901760, %v211_v56  ;;  %v231_v59 = vld [vmem:[#allocation5 + $0xd8] sm:$0xff] }
  0xd9   :  { %v11990_v7 = vpack.c.bf16 %v549_v61, %v542_v57  ;;  %11971 = vmatprep.subr.bf16.mxu0 %v14412_v62  ;;  %v556_v8 = vand.u32 4294901760, %v555_v0  ;;  %v17854_v9 = vand.u32 4294901760, %v14370_v28  ;;  %v17852_v10 = vand.u32 4294901760, %v14380_v38  ;;  %v230_v57 = vld [vmem:[#allocation5 + $0xd0] sm:$0xff]  ;;  %v235_v54 = vld [vmem:[#allocation5 + $0xf8] sm:$0xff] }
  0xda   :  { %v14426_v12 = vsub.f32 %v227_v42, %v383_v52  ;;  %v563_v13 = vand.u32 4294901760, %v562_v2  ;;  %v14428_v16 = vpack.c.bf16 %v335_v4, %v332_v3  ;;  %v14430_v17 = vsub.f32 %v210_v55, %v332_v3 }
  0xdb   :  { %11991 = vmatprep.subr.bf16.mxu1 %v11990_v7  ;;  %v443_v18 = vsub.f32 %v14370_v28, %v17854_v9  ;;  %v450_v19 = vsub.f32 %v14380_v38, %v17852_v10  ;;  %v386_v23 = vand.u32 4294901760, %v228_v5  ;;  %v389_v24 = vand.u32 4294901760, %v229_v6  ;;  %v234_v9 = vld [vmem:[#allocation5 + $0xf0] sm:$0xff] }
  0xdc   :  { %11993 = vmatpush3.bf16.msra.mxu1 %v11992_v1  ;;  %v11994_v30 = vpack.c.bf16 %v563_v13, %v556_v8  ;;  %11973 = vmatpush3.bf16.msra.mxu0 %v14428_v16  ;;  %v17850_v33 = vand.u32 4294901760, %v14384_v40  ;;  %v17849_v34 = vand.u32 4294901760, %v14387_v43  ;;  %v338_v37 = vand.u32 4294901760, %v212_v11  ;;  %v214_v1 = vld [vmem:[#allocation5 + $0x50] sm:$0xff] }
  0xdd   :  { %v14441_v42 = vsub.f32 %v211_v56, %v335_v4  ;;  %v444_v47 = vand.u32 4294901760, %v443_v18  ;;  %v451_v48 = vand.u32 4294901760, %v450_v19  ;;  %v14443_v49 = vpack.c.bf16 %v389_v24, %v386_v23  ;;  %v215_v18 = vld [vmem:[#allocation5 + $0x58] sm:$0xff] }
  0xde   :  { %11995 = vmatprep.subr.bf16.mxu1 %v11994_v30  ;;  %v14445_v50 = vsub.f32 %v228_v5, %v386_v23  ;;  %v569_v51 = vsub.f32 %v14384_v40, %v17850_v33  ;;  %v576_v52 = vsub.f32 %v14387_v43, %v17849_v34  ;;  %v341_v55 = vand.u32 4294901760, %v213_v29 }
  0xdf   :  { %v11996_v56 = vpack.c.bf16 %v451_v48, %v444_v47  ;;  %11975 = vmatprep.subr.bf16.mxu0 %v14443_v49  ;;  %v14454_v60 = vsub.f32 %v229_v6, %v389_v24  ;;  %v17847_v61 = vand.u32 4294901760, %v14392_v46  ;;  %v17845_v0 = vand.u32 4294901760, %v14410_v58 }
  0xe0   :  { %v570_v2 = vand.u32 4294901760, %v569_v51  ;;  %v577_v3 = vand.u32 4294901760, %v576_v52  ;;  %v14458_v4 = vpack.c.bf16 %v341_v55, %v338_v37  ;;  %v14460_v5 = vsub.f32 %v212_v11, %v338_v37 }
  0xe1   :  { %11997 = vmatpush3.bf16.msra.mxu1 %v11996_v56  ;;  %v457_v7 = vsub.f32 %v14392_v46, %v17847_v61  ;;  %v464_v6 = vsub.f32 %v14410_v58, %v17845_v0  ;;  %v392_v8 = vand.u32 4294901760, %v230_v57  ;;  %v395_v13 = vand.u32 4294901760, %v231_v59  ;;  %v233_v0 = vld [vmem:[#allocation5 + $0xe8] sm:$0xff] }
  0xe2   :  { %v11998_v19 = vpack.c.bf16 %v577_v3, %v570_v2  ;;  %11977 = vmatpush3.bf16.msra.mxu0 %v14458_v4  ;;  %v17846_v23 = vand.u32 4294901760, %v14414_v63  ;;  %v17848_v11 = vand.u32 4294901760, %v14426_v12  ;;  %v344_v24 = vand.u32 4294901760, %v214_v1  ;;  %v232_v3 = vld [vmem:[#allocation5 + $0xe0] sm:$0xff] }
  0xe3   :  { %v14471_v30 = vsub.f32 %v213_v29, %v341_v55  ;;  %v458_v37 = vand.u32 4294901760, %v457_v7  ;;  %v465_v47 = vand.u32 4294901760, %v464_v6  ;;  %v14473_v48 = vpack.c.bf16 %v395_v13, %v392_v8  ;;  %v216_v6 = vld [vmem:[#allocation5 + $0x60] sm:$0xff] }
  0xe4   :  { %11999 = vmatprep.subr.bf16.mxu1 %v11998_v19  ;;  %v14475_v51 = vsub.f32 %v230_v57, %v392_v8  ;;  %v583_v52 = vsub.f32 %v14414_v63, %v17846_v23  ;;  %v590_v56 = vsub.f32 %v14426_v12, %v17848_v11  ;;  %v347_v2 = vand.u32 4294901760, %v215_v18  ;;  %v217_v11 = vld [vmem:[#allocation5 + $0x68] sm:$0xff] }
  0xe5   :  { %v12000_v29 = vpack.c.bf16 %v465_v47, %v458_v37  ;;  %11979 = vmatprep.subr.bf16.mxu0 %v14473_v48  ;;  %v14484_v55 = vsub.f32 %v231_v59, %v395_v13  ;;  %v17851_v7 = vand.u32 4294901760, %v14430_v17  ;;  %v17853_v57 = vand.u32 4294901760, %v14441_v42 }
  0xe6   :  { %v584_v8 = vand.u32 4294901760, %v583_v52  ;;  %v591_v19 = vand.u32 4294901760, %v590_v56  ;;  %v14488_v23 = vpack.c.bf16 %v347_v2, %v344_v24  ;;  %v14490_v61 = vsub.f32 %v214_v1, %v344_v24 }
  0xe7   :  { %12001 = vmatpush3.bf16.msra.mxu1 %v12000_v29  ;;  %v471_v37 = vsub.f32 %v14430_v17, %v17851_v7  ;;  %v478_v59 = vsub.f32 %v14441_v42, %v17853_v57  ;;  %v398_v13 = vand.u32 4294901760, %v232_v3  ;;  %v401_v47 = vand.u32 4294901760, %v233_v0 }
  0xe8   :  { %18090 = vst [vmem:[#allocation27_spill] sm:$0xff] %v14488_v23  ;;  %v12002_v34 = vpack.c.bf16 %v591_v19, %v584_v8  ;;  %11981 = vmatpush3.bf16.msra.mxu0 %v14488_v23  ;;  %v17856_v52 = vand.u32 4294901760, %v14445_v50  ;;  %v17858_v1 = vand.u32 4294901760, %v14454_v60  ;;  %v350_v24 = vand.u32 4294901760, %v216_v6 }
  0xe9   :  { %v14501_v56 = vsub.f32 %v215_v18, %v347_v2  ;;  %v472_v29 = vand.u32 4294901760, %v471_v37  ;;  %v479_v33 = vand.u32 4294901760, %v478_v59  ;;  %v14503_v7 = vpack.c.bf16 %v401_v47, %v398_v13  ;;  %v218_v37 = vld [vmem:[#allocation5 + $0x70] sm:$0xff] }
  0xea   :  { %12003 = vmatprep.subr.bf16.mxu1 %v12002_v34  ;;  %v14505_v10 = vsub.f32 %v232_v3, %v398_v13  ;;  %v597_v8 = vsub.f32 %v14445_v50, %v17856_v52  ;;  %v604_v19 = vsub.f32 %v14454_v60, %v17858_v1  ;;  %v353_v57 = vand.u32 4294901760, %v217_v11  ;;  %v219_v1 = vld [vmem:[#allocation5 + $0x78] sm:$0xff] }
  0xeb   :  { %18091 = vst [vmem:[#allocation28_spill] sm:$0xff] %v14503_v7  ;;  %v12004_v18 = vpack.c.bf16 %v479_v33, %v472_v29  ;;  %11983 = vmatprep.subr.bf16.mxu0 %v14503_v7  ;;  %v14514_v2 = vsub.f32 %v233_v0, %v401_v47  ;;  %v17861_v34 = vand.u32 4294901760, %v14460_v5  ;;  %v17863_v3 = vand.u32 4294901760, %v14471_v30 }
  0xec   :  { %v598_v59 = vand.u32 4294901760, %v597_v8  ;;  %v605_v13 = vand.u32 4294901760, %v604_v19  ;;  %v14518_v52 = vpack.c.bf16 %v353_v57, %v350_v24  ;;  %v14520_v53 = vsub.f32 %v216_v6, %v350_v24 }
  0xed   :  { %12005 = vmatpush3.bf16.msra.mxu1 %v12004_v18  ;;  %v485_v33 = vsub.f32 %v14460_v5, %v17861_v34  ;;  %v492_v0 = vsub.f32 %v14471_v30, %v17863_v3  ;;  %v404_v47 = vand.u32 4294901760, %v234_v9  ;;  %v407_v29 = vand.u32 4294901760, %v235_v54 }
  0xee   :  { %18092 = vst [vmem:[#allocation29_spill] sm:$0xff] %v14518_v52  ;;  %v12006_v36 = vpack.c.bf16 %v605_v13, %v598_v59  ;;  %11985 = vmatpush3.bf16.msra.mxu0 %v14518_v52  ;;  %v17867_v8 = vand.u32 4294901760, %v14475_v51  ;;  %v17868_v6 = vand.u32 4294901760, %v14484_v55  ;;  %v356_v24 = vand.u32 4294901760, %v218_v37 }
  0xef   :  { %v14531_v19 = vsub.f32 %v217_v11, %v353_v57  ;;  %v486_v18 = vand.u32 4294901760, %v485_v33  ;;  %v493_v35 = vand.u32 4294901760, %v492_v0  ;;  %v14533_v34 = vpack.c.bf16 %v407_v29, %v404_v47 }
  0xf0   :  { %12007 = vmatprep.subr.bf16.mxu1 %v12006_v36  ;;  %v14535_v44 = vsub.f32 %v234_v9, %v404_v47  ;;  %v611_v59 = vsub.f32 %v14475_v51, %v17867_v8  ;;  %v618_v13 = vsub.f32 %v14484_v55, %v17868_v6  ;;  %v359_v3 = vand.u32 4294901760, %v219_v1  ;;  %v197_v9 = vld [vmem:[#allocation2] sm:$0xff] }
  0xf1   :  { %18093 = vst [vmem:[#allocation30_spill] sm:$0xff] %v14533_v34  ;;  %v12008_v52 = vpack.c.bf16 %v493_v35, %v486_v18  ;;  %11987 = vmatprep.subr.bf16.mxu0 %v14533_v34  ;;  %v14544_v11 = vsub.f32 %v235_v54, %v407_v29  ;;  %v17869_v57 = vand.u32 4294901760, %v14490_v61  ;;  %v17870_v36 = vand.u32 4294901760, %v14501_v56 }
  0xf2   :  { %v612_v33 = vand.u32 4294901760, %v611_v59  ;;  %v619_v0 = vand.u32 4294901760, %v618_v13  ;;  %v14548_v47 = vpack.c.bf16 %v359_v3, %v356_v24  ;;  %v14550_v8 = vsub.f32 %v218_v37, %v356_v24 }
  0xf3   :  { %12009 = vmatpush3.bf16.msra.mxu1 %v12008_v52  ;;  %v499_v35 = vsub.f32 %v14490_v61, %v17869_v57  ;;  %v506_v54 = vsub.f32 %v14501_v56, %v17870_v36  ;;  %v14558_v29 = vand.u32 4294901760, %v198_v41  ;;  %v17873_v18 = vand.u32 4294901760, %v14505_v10 }
  0xf4   :  { %18094 = vst [vmem:[#allocation31_spill] sm:$0xff] %v14548_v47  ;;  %v12010_v6 = vpack.c.bf16 %v619_v0, %v612_v33  ;;  %11989 = vmatpush3.bf16.msra.mxu0 %v14548_v47  ;;  %v17879_v59 = vand.u32 4294901760, %v14514_v2  ;;  %v12022_v52 = vpack.c.bf16 %v14375_v32, %v14373_v31  ;;  %v14565_v37 = vand.u32 4294901760, %v197_v9 }
  0xf5   :  { %18095 = vst [vmem:[#allocation32_spill] sm:$0xff] %v14558_v29  ;;  %v500_v24 = vand.u32 4294901760, %v499_v35  ;;  %v507_v13 = vand.u32 4294901760, %v506_v54  ;;  %v14568_v57 = vsub.f32 %v198_v41, %v14558_v29  ;;  %v625_v36 = vsub.f32 %v14505_v10, %v17873_v18  ;;  %650 = vmatprep.mubr.f32.mxu1 %v14558_v29 }
  0xf6   :  { %12011 = vmatprep.subr.bf16.mxu1 %v12010_v6  ;;  %v632_v33 = vsub.f32 %v14514_v2, %v17879_v59  ;;  %12023 = vmatprep.subr.bf16.mxu0 %v12022_v52  ;;  %v14578_v0 = vsub.f32 %v197_v9, %v14565_v37  ;;  %v17878_v35 = vand.u32 4294901760, %v14520_v53  ;;  %v17880_v41 = vand.u32 4294901760, %v14531_v19 }
  0xf7   :  { %v14582_v54 = vsub.f32 %v219_v1, %v359_v3  ;;  %v12012_v47 = vpack.c.bf16 %v507_v13, %v500_v24  ;;  %v17881_v18 = vand.u32 4294901760, %v14568_v57  ;;  %v626_v34 = vand.u32 4294901760, %v625_v36 }
  0xf8   :  { %v633_v29 = vand.u32 4294901760, %v632_v33  ;;  %v417_v6 = vand.u32 4294901760, %v14578_v0  ;;  %v513_v52 = vsub.f32 %v14520_v53, %v17878_v35  ;;  %v520_v9 = vsub.f32 %v14531_v19, %v17880_v41 }
  0xf9   :  { %12013 = vmatpush3.bf16.msra.mxu1 %v12012_v47  ;;  %v412_v1 = vsub.f32 %v14568_v57, %v17881_v18  ;;  %v12024_v3 = vpack.c.bf16 %v14359_v21, %v14355_v15  ;;  %v17886_v36 = vand.u32 4294901760, %v14535_v44  ;;  %v17889_v24 = vand.u32 4294901760, %v14544_v11 }
  0xfa   :  { %v12014_v13 = vpack.c.bf16 %v633_v29, %v626_v34  ;;  %v418_v33 = vsub.f32 %v14578_v0, %v417_v6  ;;  %v514_v35 = vand.u32 4294901760, %v513_v52  ;;  %v521_v59 = vand.u32 4294901760, %v520_v9 }
  0xfb   :  { %v413_v41 = vand.u32 4294901760, %v412_v1  ;;  %v639_v47 = vsub.f32 %v14535_v44, %v17886_v36  ;;  %v646_v18 = vsub.f32 %v14544_v11, %v17889_v24  ;;  %v17888_v7 = vand.u32 4294901760, %v14550_v8 }
  0xfc   :  { %12015 = vmatprep.subr.bf16.mxu1 %v12014_v13  ;;  %v419_v23 = vand.u32 4294901760, %v418_v33  ;;  %v12016_v34 = vpack.c.bf16 %v521_v59, %v514_v35  ;;  %v12026_v29 = vpack.c.bf16 %v14366_v26, %v14364_v25  ;;  %v17887_v52 = vand.u32 4294901760, %v14582_v54 }
  0xfd   :  { %414 = vmatprep.mubr.f32.mxu0 %v413_v41  ;;  %v640_v9 = vand.u32 4294901760, %v639_v47  ;;  %v647_v1 = vand.u32 4294901760, %v646_v18  ;;  %v527_v36 = vsub.f32 %v14550_v8, %v17888_v7  ;;  %v12028_v33 = vpack.c.bf16 %v14380_v38, %v14370_v28 }
  0xfe   :  { %420 = vmatmul.mubr.f32.vlgmr.msra.gmra.mrb[0].mxu0 %v419_v23  ;;  %12017 = vmatpush3.bf16.msra.mxu1 %v12016_v34  ;;  %v534_v13 = vsub.f32 %v14582_v54, %v17887_v52  ;;  %v12030_v41 = vpack.c.bf16 %v14387_v43, %v14384_v40  ;;  %v12032_v23 = vpack.c.bf16 %v14410_v58, %v14392_v46  ;;  %v18097_v34 = vand.u32 4294901760, %v14375_v32 }
  0xff   :  { %12025 = vmatpush3.bf16.msra.mxu0 %v12024_v3  ;;  %v12018_v59 = vpack.c.bf16 %v647_v1, %v640_v9  ;;  %v528_v35 = vand.u32 4294901760, %v527_v36  ;;  %787 = vmatprep.mubr.f32.mxu0 %v14568_v57  ;;  %v12034_v47 = vpack.c.bf16 %v14426_v12, %v14414_v63  ;;  %v18096_v36 = vand.u32 4294901760, %v14373_v31 }
 0x100   :  { %12027 = vmatprep.subr.bf16.mxu0 %v12026_v29  ;;  %v535_v18 = vand.u32 4294901760, %v534_v13  ;;  %v18098_v1 = vand.u32 4294901760, %v14355_v15  ;;  %v18099_v29 = vand.u32 4294901760, %v14359_v21  ;;  %v18100_v52 = vand.u32 4294901760, %v14364_v25 }
 0x101   :  { %12019 = vmatprep.subr.bf16.mxu1 %v12018_v59  ;;  %v12086_v9 = vpack.c.bf16 %v18097_v34, %v18096_v36  ;;  %v18101_v59 = vand.u32 4294901760, %v14366_v26  ;;  %v18102_v24 = vand.u32 4294901760, %v14370_v28  ;;  %v18104_v31 = vand.u32 4294901760, %v14384_v40 }
 0x102   :  { %v12020_v3 = vpack.c.bf16 %v535_v18, %v528_v35  ;;  %v12088_v13 = vpack.c.bf16 %v18099_v29, %v18098_v1  ;;  %v18103_v35 = vand.u32 4294901760, %v14380_v38  ;;  %v18105_v32 = vand.u32 4294901760, %v14387_v43  ;;  %v18119_v29 = vld [vmem:[#allocation32_spill] sm:$0xff] }
 0x103   :  { %v12090_v7 = vpack.c.bf16 %v18101_v59, %v18100_v52  ;;  %12029 = vmatpush3.bf16.msra.mxu0 %v12028_v33  ;;  %v18106_v15 = vand.u32 4294901760, %v14392_v46  ;;  %v18107_v21 = vand.u32 4294901760, %v14410_v58  ;;  %v18108_v25 = vand.u32 4294901760, %v14414_v63  ;;  %v253_v59 = vld [vmem:[#allocation5 + $0x188] sm:$0xff] }
 0x104   :  { %v12092_v18 = vpack.c.bf16 %v18103_v35, %v18102_v24  ;;  %v12094_v36 = vpack.c.bf16 %v18105_v32, %v18104_v31  ;;  %v18109_v26 = vand.u32 4294901760, %v14426_v12  ;;  %12021 = vmatpush3.bf16.msra.mxu1 %v12020_v3  ;;  %12031 = vmatprep.subr.bf16.mxu0 %v12030_v41  ;;  %v18110_v28 = vand.u32 4294901760, %v14430_v17  ;;  %v236_v35 = vld [vmem:[#allocation5 + $0x100] sm:$0xff]  ;;  %v237_v31 = vld [vmem:[#allocation5 + $0x108] sm:$0xff] }
 0x105   :  { %v14651_v34 = vpack.c.bf16 %v18107_v21, %v18106_v15  ;;  %v18111_v38 = vand.u32 4294901760, %v14441_v42  ;;  %v18112_v43 = vand.u32 4294901760, %v14445_v50  ;;  %v18113_v46 = vand.u32 4294901760, %v14454_v60  ;;  %12055 = vmatprep.subr.bf16.mxu1 %v14353_v14  ;;  %v18120_v32 = vld [vmem:[#allocation29_spill] sm:$0xff]  ;;  %v18121_v15 = vld [vmem:[#allocation30_spill] sm:$0xff] }
 0x106   :  { %v14657_v52 = vpack.c.bf16 %v18109_v26, %v18108_v25  ;;  %v18114_v63 = vand.u32 4294901760, %v14460_v5  ;;  %v18115_v12 = vand.u32 4294901760, %v14471_v30  ;;  %v12036_v33 = vpack.c.bf16 %v14441_v42, %v14430_v17 }
 0x107   :  { %v14663_v40 = vpack.c.bf16 %v18111_v38, %v18110_v28  ;;  %v14669_v58 = vpack.c.bf16 %v18113_v46, %v18112_v43  ;;  %652 = vmatmul.mubr.f32.vlgmr.msra.gmra.mrb[0].mxu1 %v14565_v37  ;;  %12033 = vmatpush3.bf16.msra.mxu0 %v12032_v23  ;;  %v12038_v41 = vpack.c.bf16 %v14454_v60, %v14445_v50  ;;  %v18116_v3 = vand.u32 4294901760, %v14568_v57  ;;  %v18117_v57 = vld [vmem:[#allocation27_spill] sm:$0xff]  ;;  %v18118_v23 = vld [vmem:[#allocation28_spill] sm:$0xff]  ;;  %v254_v38 = vld [vmem:[#allocation5 + $0x190] sm:$0xff] }
 0x108   :  { %v14675_v24 = vpack.c.bf16 %v18115_v12, %v18114_v63  ;;  %12057 = vmatpush3.bf16.msra.mxu1 %v14357_v20  ;;  %12035 = vmatprep.subr.bf16.mxu0 %v12034_v47  ;;  %v12040_v1 = vpack.c.bf16 %v14471_v30, %v14460_v5  ;;  %v12042_v17 = vpack.c.bf16 %v14484_v55, %v14475_v51  ;;  %v252_v47 = vld [vmem:[#allocation5 + $0x180] sm:$0xff]  ;;  %v1227_v25 = vand.u32 4294901760, %v253_v59  ;;  %v18122_v28 = vld [vmem:[#allocation31_spill] sm:$0xff]  ;;  %v238_v46 = vld [vmem:[#allocation5 + $0x110] sm:$0xff] }
 0x109   :  { %12059 = vmatprep.subr.bf16.mxu1 %v14361_v22  ;;  %894 = vmatprep.mubr.f32.mxu1 %v18116_v3  ;;  %v12044_v42 = vpack.c.bf16 %v14501_v56, %v14490_v61  ;;  %v12046_v50 = vpack.c.bf16 %v14514_v2, %v14505_v10  ;;  %v12048_v60 = vpack.c.bf16 %v14531_v19, %v14520_v53  ;;  %v1224_v21 = vand.u32 4294901760, %v252_v47  ;;  %v239_v63 = vld [vmem:[#allocation5 + $0x118] sm:$0xff] }
 0x10a   :  { %v12050_v5 = vpack.c.bf16 %v14544_v11, %v14535_v44  ;;  %v12052_v30 = vpack.c.bf16 %v14582_v54, %v14550_v8  ;;  %v1176_v26 = vand.u32 4294901760, %v236_v35  ;;  %v14719_v12 = vsub.f32 %v253_v59, %v1227_v25 }
 0x10b   :  { %12037 = vmatpush3.bf16.msra.mxu0 %v12036_v33  ;;  %v14717_v43 = vsub.f32 %v252_v47, %v1224_v21 }
 0x10c   :  { %12061 = vmatpush3.bf16.msra.mxu1 %v14368_v27  ;;  %12039 = vmatprep.subr.bf16.mxu0 %v12038_v41  ;;  %v1230_v41 = vand.u32 4294901760, %v254_v38  ;;  %v17899_v59 = vand.u32 4294901760, %v14719_v12 }
 0x10d   :  { %12063 = vmatprep.subr.bf16.mxu1 %v14382_v39 }
 0x10f   :  { %12041 = vmatpush3.bf16.msra.mxu0 %v12040_v1  ;;  %v18125_v1 = vand.u32 4294901760, %v14490_v61 }
 0x110   :  { %12065 = vmatpush3.bf16.msra.mxu1 %v14390_v45  ;;  %12043 = vmatprep.subr.bf16.mxu0 %v12042_v17  ;;  %v18126_v17 = vand.u32 4294901760, %v14501_v56  ;;  %v18131_v56 = vand.u32 4294901760, %v14535_v44  ;;  %v240_v44 = vld [vmem:[#allocation5 + $0x120] sm:$0xff] }
 0x111   :  { %12067 = vmatprep.subr.bf16.mxu1 %v14412_v62 }
 0x113   :  { %12045 = vmatpush3.bf16.msra.mxu0 %v12044_v42  ;;  %v12108_v42 = vpack.c.bf16 %v18126_v17, %v18125_v1  ;;  %v258_v17 = vld [vmem:[#allocation5 + $0x1b0] sm:$0xff] }
 0x114   :  { %12069 = vmatpush3.bf16.msra.mxu1 %v14428_v16  ;;  %12047 = vmatprep.subr.bf16.mxu0 %v12046_v50  ;;  %v256_v50 = vld [vmem:[#allocation5 + $0x1a0] sm:$0xff] }
 0x115   :  { %12071 = vmatprep.subr.bf16.mxu1 %v14443_v49 }
 0x117   :  { %12049 = vmatpush3.bf16.msra.mxu0 %v12048_v60  ;;  %v257_v60 = vld [vmem:[#allocation5 + $0x1a8] sm:$0xff] }
 0x118   :  { %12073 = vmatpush3.bf16.msra.mxu1 %v14458_v4  ;;  %12051 = vmatprep.subr.bf16.mxu0 %v12050_v5 }
 0x119   :  { %12075 = vmatprep.subr.bf16.mxu1 %v14473_v48 }
 0x11b   :  { %12053 = vmatpush3.bf16.msra.mxu0 %v12052_v30  ;;  %v18134_v30 = vand.u32 4294901760, %v14582_v54 }
 0x11c   :  { %12077 = vmatpush3.bf16.msra.mxu1 %v18117_v57  ;;  %12087 = vmatprep.subr.bf16.mxu0 %v12086_v9  ;;  %v1179_v9 = vand.u32 4294901760, %v237_v31 }
 0x11d   :  { %12079 = vmatprep.subr.bf16.mxu1 %v18118_v23 }
 0x11e   :  { %790 = vmatmul.mubr.f32.vlgmr.msra.gmra.mrb[2].mxu0 %v14578_v0  ;;  %v14723_v33 = vsub.f32 %v237_v31, %v1179_v9  ;;  %v18127_v0 = vand.u32 4294901760, %v14505_v10  ;;  %v18132_v10 = vand.u32 4294901760, %v14544_v11 }
 0x11f   :  { %12089 = vmatpush3.bf16.msra.mxu0 %v12088_v13  ;;  %1064 = vmatprep.mubr.f32.mxu0 %v18119_v29  ;;  %v255_v13 = vld [vmem:[#allocation5 + $0x198] sm:$0xff] }
 0x120   :  { %12081 = vmatpush3.bf16.msra.mxu1 %v18120_v32  ;;  %12091 = vmatprep.subr.bf16.mxu0 %v12090_v7  ;;  %v14721_v7 = vsub.f32 %v236_v35, %v1176_v26  ;;  %v1233_v3 = vand.u32 4294901760, %v255_v13  ;;  %v14755_v5 = vpack.c.bf16 %v18132_v10, %v18131_v56  ;;  %v241_v35 = vld [vmem:[#allocation5 + $0x128] sm:$0xff]  ;;  %v17890_v31 = vand.u32 4294901760, %v14723_v33 }
 0x121   :  { %12083 = vmatprep.subr.bf16.mxu1 %v18121_v15 }
 0x122   :  { %v17896_v11 = vand.u32 4294901760, %v14721_v7  ;;  %v14773_v54 = vpack.c.bf16 %v1233_v3, %v1230_v41 }
 0x123   :  { %12093 = vmatpush3.bf16.msra.mxu0 %v12092_v18  ;;  %v18123_v18 = vand.u32 4294901760, %v14475_v51  ;;  %v1182_v51 = vand.u32 4294901760, %v238_v46 }
 0x124   :  { %12085 = vmatpush3.bf16.msra.mxu1 %v18122_v28  ;;  %12095 = vmatprep.subr.bf16.mxu0 %v12094_v36  ;;  %v18124_v36 = vand.u32 4294901760, %v14484_v55  ;;  %v1185_v55 = vand.u32 4294901760, %v239_v63  ;;  %18136 = vst [vmem:[#allocation28_spill] sm:$0xff] %v14773_v54 }
 0x125   :  { %12119 = vmatprep.subr.bf16.mxu1 %v14353_v14 }
 0x126   :  { %v12106_v14 = vpack.c.bf16 %v18124_v36, %v18123_v18  ;;  %v1239_v18 = vand.u32 4294901760, %v257_v60  ;;  %v14781_v36 = vpack.c.bf16 %v1185_v55, %v1182_v51 }
 0x127   :  { %898 = vmatmul.mubr.f32.vlgmr.msra.gmra.mrb[2].mxu1 %v417_v6  ;;  %12097 = vmatpush3.bf16.msra.mxu0 %v14651_v34  ;;  %v18128_v6 = vand.u32 4294901760, %v14514_v2  ;;  %v18133_v2 = vand.u32 4294901760, %v14550_v8  ;;  %v14771_v8 = vpack.c.bf16 %v1179_v9, %v1176_v26  ;;  %v1188_v9 = vand.u32 4294901760, %v240_v44 }
 0x128   :  { %12121 = vmatpush3.bf16.msra.mxu1 %v14357_v20  ;;  %12099 = vmatprep.subr.bf16.mxu0 %v14657_v52  ;;  %v18129_v20 = vand.u32 4294901760, %v14520_v53  ;;  %v18130_v52 = vand.u32 4294901760, %v14531_v19  ;;  %v200_v53 = vld [vmem:[#allocation2 + $0x18] sm:$0xff]  ;;  %v14765_v19 = vpack.c.bf16 %v1227_v25, %v1224_v21  ;;  %v14777_v21 = vsub.f32 %v254_v38, %v1230_v41  ;;  %18137 = vst [vmem:[#allocation32_spill] sm:$0xff] %v14781_v36 }
 0x129   :  { %v14742_v34 = vpack.c.bf16 %v18128_v6, %v18127_v0  ;;  %12123 = vmatprep.subr.bf16.mxu1 %v14361_v22  ;;  %v14761_v47 = vpack.c.bf16 %v18134_v30, %v18133_v2  ;;  %1168 = vmatprep.mubr.f32.mxu1 %v18119_v29  ;;  %v17900_v22 = vand.u32 4294901760, %v14717_v43  ;;  %18135 = vst [vmem:[#allocation27_spill] sm:$0xff] %v14771_v8  ;;  %v1236_v29 = vand.u32 4294901760, %v256_v50 }
 0x12a   :  { %v14749_v61 = vpack.c.bf16 %v18130_v52, %v18129_v20  ;;  %v14779_v25 = vsub.f32 %v255_v13, %v1233_v3  ;;  %v14783_v1 = vand.u32 4294901760, %v200_v53  ;;  %v14791_v38 = vsub.f32 %v239_v63, %v1185_v55  ;;  %v242_v52 = vld [vmem:[#allocation5 + $0x130] sm:$0xff] }
 0x12b   :  { %12101 = vmatpush3.bf16.msra.mxu0 %v14663_v40  ;;  %v14786_v40 = vsub.f32 %v238_v46, %v1182_v51  ;;  %v1403_v26 = vsub.f32 %v14717_v43, %v17900_v22  ;;  %v1410_v13 = vsub.f32 %v14719_v12, %v17899_v59  ;;  %v1298_v46 = vsub.f32 %v14723_v33, %v17890_v31  ;;  %v260_v31 = vld [vmem:[#allocation5 + $0x1c0] sm:$0xff]  ;;  %v247_v22 = vld [vmem:[#allocation5 + $0x158] sm:$0xff] }
 0x12c   :  { %12125 = vmatpush3.bf16.msra.mxu1 %v14368_v27  ;;  %12103 = vmatprep.subr.bf16.mxu0 %v14669_v58  ;;  %18138 = vst [vmem:[#allocation29_spill] sm:$0xff] %v14783_v1  ;;  %v1191_v27 = vand.u32 4294901760, %v241_v35  ;;  %v259_v58 = vld [vmem:[#allocation5 + $0x1b8] sm:$0xff]  ;;  %v14803_v41 = vpack.c.bf16 %v1239_v18, %v1236_v29  ;;  %v14805_v3 = vsub.f32 %v256_v50, %v1236_v29  ;;  %v1242_v6 = vand.u32 4294901760, %v258_v17 }
 0x12d   :  { %12127 = vmatprep.subr.bf16.mxu1 %v14382_v39  ;;  %v1291_v39 = vsub.f32 %v14721_v7, %v17896_v11  ;;  %v14807_v63 = vsub.f32 %v257_v60, %v1239_v18  ;;  %v14810_v0 = vsub.f32 %v200_v53, %v14783_v1  ;;  %v1245_v51 = vand.u32 4294901760, %v259_v58 }
 0x12e   :  { %18139 = vst [vmem:[#allocation30_spill] sm:$0xff] %v14803_v41  ;;  %v17894_v55 = vand.u32 4294901760, %v14777_v21  ;;  %v17891_v20 = vand.u32 4294901760, %v14779_v25  ;;  %v1404_v50 = vand.u32 4294901760, %v1403_v26  ;;  %v14816_v56 = vpack.c.bf16 %v1191_v27, %v1188_v9 }
 0x12f   :  { %12105 = vmatpush3.bf16.msra.mxu0 %v14675_v24  ;;  %v243_v24 = vld [vmem:[#allocation5 + $0x138] sm:$0xff]  ;;  %v14818_v60 = vsub.f32 %v240_v44, %v1188_v9  ;;  %v14820_v10 = vsub.f32 %v241_v35, %v1191_v27  ;;  %v1411_v2 = vand.u32 4294901760, %v1410_v13  ;;  %v17893_v30 = vand.u32 4294901760, %v14786_v40  ;;  %v261_v27 = vld [vmem:[#allocation5 + $0x1c8] sm:$0xff] }
 0x130   :  { %12129 = vmatpush3.bf16.msra.mxu1 %v14390_v45  ;;  %12107 = vmatprep.subr.bf16.mxu0 %v12106_v14  ;;  %18140 = vst [vmem:[#allocation31_spill] sm:$0xff] %v14816_v56  ;;  %v1292_v45 = vand.u32 4294901760, %v1291_v39  ;;  %v1299_v14 = vand.u32 4294901760, %v1298_v46  ;;  %v1194_v53 = vand.u32 4294901760, %v242_v52  ;;  %v1197_v29 = vand.u32 4294901760, %v243_v24 }
 0x131   :  { %12131 = vmatprep.subr.bf16.mxu1 %v14412_v62  ;;  %v17892_v18 = vand.u32 4294901760, %v14791_v38  ;;  %v17903_v62 = vand.u32 4294901760, %v14810_v0  ;;  %v14827_v44 = vpack.c.bf16 %v1245_v51, %v1242_v6  ;;  %v1417_v35 = vsub.f32 %v14777_v21, %v17894_v55 }
 0x132   :  { %v14836_v26 = vsub.f32 %v258_v17, %v1242_v6  ;;  %v14838_v9 = vsub.f32 %v259_v58, %v1245_v51  ;;  %v14842_v13 = vpack.c.bf16 %v1411_v2, %v1404_v50  ;;  %v14844_v39 = vpack.c.bf16 %v1299_v14, %v1292_v45 }
 0x133   :  { %12109 = vmatpush3.bf16.msra.mxu0 %v12108_v42  ;;  %18141 = vst [vmem:[#allocation33_spill] sm:$0xff] %v14827_v44  ;;  %v1424_v42 = vsub.f32 %v14779_v25, %v17891_v20  ;;  %v1305_v46 = vsub.f32 %v14786_v40, %v17893_v30  ;;  %v1248_v20 = vand.u32 4294901760, %v260_v31  ;;  %v1312_v17 = vsub.f32 %v14791_v38, %v17892_v18 }
 0x134   :  { %12133 = vmatpush3.bf16.msra.mxu1 %v14428_v16  ;;  %12111 = vmatprep.subr.bf16.mxu0 %v14742_v34  ;;  %v17895_v16 = vand.u32 4294901760, %v14805_v3  ;;  %v17898_v34 = vand.u32 4294901760, %v14807_v63  ;;  %v17897_v58 = vand.u32 4294901760, %v14818_v60  ;;  %v1274_v6 = vsub.f32 %v14810_v0, %v17903_v62 }
 0x135   :  { %12135 = vmatprep.subr.bf16.mxu1 %v14443_v49  ;;  %v14850_v49 = vpack.c.bf16 %v1197_v29, %v1194_v53  ;;  %v1418_v51 = vand.u32 4294901760, %v1417_v35  ;;  %v1425_v50 = vand.u32 4294901760, %v1424_v42  ;;  %v1251_v2 = vand.u32 4294901760, %v261_v27  ;;  %v245_v42 = vld [vmem:[#allocation5 + $0x148] sm:$0xff] }
 0x136   :  { %v17902_v45 = vand.u32 4294901760, %v14820_v10  ;;  %v14863_v14 = vsub.f32 %v242_v52, %v1194_v53  ;;  %v14865_v18 = vsub.f32 %v243_v24, %v1197_v29  ;;  %v1431_v30 = vsub.f32 %v14805_v3, %v17895_v16  ;;  %v262_v29 = vld [vmem:[#allocation5 + $0x1d0] sm:$0xff]  ;;  %v263_v16 = vld [vmem:[#allocation5 + $0x1d8] sm:$0xff] }
 0x137   :  { %12113 = vmatpush3.bf16.msra.mxu0 %v14749_v61  ;;  %18142 = vst [vmem:[#allocation34_spill] sm:$0xff] %v14850_v49  ;;  %v244_v61 = vld [vmem:[#allocation5 + $0x140] sm:$0xff]  ;;  %v14873_v35 = vsub.f32 %v260_v31, %v1248_v20  ;;  %v17901_v55 = vand.u32 4294901760, %v14836_v26  ;;  %v1313_v52 = vand.u32 4294901760, %v1312_v17  ;;  %v1319_v53 = vsub.f32 %v14818_v60, %v17897_v58 }
 0x138   :  { %12137 = vmatpush3.bf16.msra.mxu1 %v14458_v4  ;;  %12115 = vmatprep.subr.bf16.mxu0 %v14755_v5  ;;  %v1438_v4 = vsub.f32 %v14807_v63, %v17898_v34  ;;  %v1306_v5 = vand.u32 4294901760, %v1305_v46  ;;  %v1200_v24 = vand.u32 4294901760, %v244_v61  ;;  %v1275_v11 = vand.u32 4294901760, %v1274_v6  ;;  %v246_v6 = vld [vmem:[#allocation5 + $0x150] sm:$0xff] }
 0x139   :  { %12139 = vmatprep.subr.bf16.mxu1 %v14473_v48  ;;  %v17904_v48 = vand.u32 4294901760, %v14838_v9  ;;  %v14883_v31 = vpack.c.bf16 %v1425_v50, %v1418_v51  ;;  %v14885_v46 = vpack.c.bf16 %v1251_v2, %v1248_v20  ;;  %v14891_v17 = vsub.f32 %v261_v27, %v1251_v2 }
 0x13a   :  { %v1432_v58 = vand.u32 4294901760, %v1431_v30  ;;  %v1439_v34 = vand.u32 4294901760, %v1438_v4  ;;  %v1203_v59 = vand.u32 4294901760, %v245_v42  ;;  %v1257_v51 = vand.u32 4294901760, %v263_v16 }
 0x13b   :  { %12117 = vmatpush3.bf16.msra.mxu0 %v14761_v47  ;;  %18143 = vst [vmem:[#allocation35_spill] sm:$0xff] %v14885_v46  ;;  %v1326_v47 = vsub.f32 %v14820_v10, %v17902_v45  ;;  %v1445_v20 = vsub.f32 %v14836_v26, %v17901_v55  ;;  %v1452_v50 = vsub.f32 %v14838_v9, %v17904_v48  ;;  %v1320_v27 = vand.u32 4294901760, %v1319_v53  ;;  %v264_v48 = vld [vmem:[#allocation5 + $0x1e0] sm:$0xff]  ;;  %v265_v53 = vld [vmem:[#allocation5 + $0x1e8] sm:$0xff] }
 0x13c   :  { %12141 = vmatpush3.bf16.msra.mxu1 %v18117_v57  ;;  %12151 = vmatprep.subr.bf16.mxu0 %v14765_v19  ;;  %v1254_v57 = vand.u32 4294901760, %v262_v29  ;;  %v14903_v30 = vsub.f32 %v244_v61, %v1200_v24  ;;  %v1206_v55 = vand.u32 4294901760, %v246_v6  ;;  %v1209_v45 = vand.u32 4294901760, %v247_v22 }
 0x13d   :  { %12143 = vmatprep.subr.bf16.mxu1 %v18118_v23  ;;  %v14901_v23 = vpack.c.bf16 %v1313_v52, %v1306_v5  ;;  %v1327_v4 = vand.u32 4294901760, %v1326_v47  ;;  %v17909_v62 = vand.u32 4294901760, %v14865_v18  ;;  %v14910_v5 = vpack.c.bf16 %v1439_v34, %v1432_v58 }
 0x13e   :  { %1066 = vmatmul.mubr.f32.vlgmr.msra.gmra.mrb[4].mxu0 %v14565_v37  ;;  %v14912_v61 = vpack.c.bf16 %v1203_v59, %v1200_v24  ;;  %v14914_v52 = vsub.f32 %v245_v42, %v1203_v59  ;;  %v1446_v2 = vand.u32 4294901760, %v1445_v20  ;;  %v1453_v47 = vand.u32 4294901760, %v1452_v50  ;;  %v14947_v50 = vld [vmem:[#allocation5 + $0x168] sm:$0xff] }
 0x13f   :  { %12153 = vmatpush3.bf16.msra.mxu0 %v14771_v8  ;;  %1276 = vmatprep.mubr.f32.mxu0 %v1275_v11  ;;  %v17911_v11 = vand.u32 4294901760, %v14873_v35  ;;  %v14920_v8 = vld [vmem:[#allocation5 + $0x160] sm:$0xff]  ;;  %v14925_v34 = vsub.f32 %v263_v16, %v1257_v51  ;;  %v18147_v59 = vand.u32 4294901760, %v14863_v14  ;;  %v1260_v42 = vand.u32 4294901760, %v264_v48 }
 0x140   :  { %12145 = vmatpush3.bf16.msra.mxu1 %v18120_v32  ;;  %12155 = vmatprep.subr.bf16.mxu0 %v14773_v54  ;;  %v14917_v32 = vpack.c.bf16 %v1257_v51, %v1254_v57  ;;  %v17910_v54 = vand.u32 4294901760, %v14891_v17  ;;  %v14932_v24 = vpack.c.bf16 %v1327_v4, %v1320_v27  ;;  %v14934_v20 = vpack.c.bf16 %v1209_v45, %v1206_v55 }
 0x141   :  { %12147 = vmatprep.subr.bf16.mxu1 %v18121_v15  ;;  %v14923_v15 = vsub.f32 %v262_v29, %v1254_v57  ;;  %18146 = vst [vmem:[#allocation38_spill] sm:$0xff] %v14925_v34  ;;  %v1333_v58 = vsub.f32 %v14863_v14, %v18147_v59  ;;  %v1340_v29 = vsub.f32 %v14865_v18, %v17909_v62  ;;  %v1263_v57 = vand.u32 4294901760, %v265_v53 }
 0x142   :  { %18144 = vst [vmem:[#allocation36_spill] sm:$0xff] %v14917_v32  ;;  %v14940_v16 = vsub.f32 %v246_v6, %v1206_v55  ;;  %v14942_v51 = vsub.f32 %v247_v22, %v1209_v45  ;;  %v17912_v27 = vand.u32 4294901760, %v14920_v8  ;;  %v12194_v4 = vpack.c.bf16 %v1453_v47, %v1446_v2  ;;  %v14957_v22 = vld [vmem:[#allocation5 + $0x1f8] sm:$0xff]  ;;  %v14980_v2 = vld [vmem:[#allocation5 + $0x170] sm:$0xff] }
 0x143   :  { %12157 = vmatpush3.bf16.msra.mxu0 %v14781_v36  ;;  %18145 = vst [vmem:[#allocation37_spill] sm:$0xff] %v14923_v15  ;;  %v1466_v59 = vsub.f32 %v14891_v17, %v17910_v54  ;;  %v1334_v45 = vand.u32 4294901760, %v1333_v58  ;;  %v14961_v6 = vsub.f32 %v264_v48, %v1260_v42  ;;  %v199_v54 = vld [vmem:[#allocation2 + $0x10] sm:$0xff]  ;;  %v14967_v55 = vpack.c.bf16 %v1263_v57, %v1260_v42 }
 0x144   :  { %12149 = vmatpush3.bf16.msra.mxu1 %v18122_v28  ;;  %12159 = vmatprep.subr.bf16.mxu0 %v14803_v41  ;;  %v1459_v28 = vsub.f32 %v14873_v35, %v17911_v11  ;;  %v1341_v11 = vand.u32 4294901760, %v1340_v29  ;;  %v14969_v62 = vsub.f32 %v265_v53, %v1263_v57  ;;  %v14976_v58 = vsub.f32 %v14920_v8, %v17912_v27  ;;  %v14982_v42 = vld [vmem:[#allocation5 + $0x178] sm:$0xff] }
 0x145   :  { %12183 = vmatprep.subr.bf16.mxu1 %v14842_v13  ;;  %v14955_v13 = vld [vmem:[#allocation5 + $0x1f0] sm:$0xff]  ;;  %v1467_v53 = vand.u32 4294901760, %v1466_v59  ;;  %v18148_v29 = vand.u32 4294901760, %v14903_v30  ;;  %v18149_v57 = vand.u32 4294901760, %v14914_v52  ;;  %v14991_v27 = vand.u32 4294901760, %v199_v54 }
 0x146   :  { %v1460_v48 = vand.u32 4294901760, %v1459_v28  ;;  %v1266_v47 = vand.u32 4294901760, %v14955_v13  ;;  %v18151_v41 = vand.u32 4294901760, %v14925_v34 }
 0x147   :  { %1170 = vmatmul.mubr.f32.vlgmr.msra.gmra.mrb[4].mxu1 %v14565_v37  ;;  %12161 = vmatpush3.bf16.msra.mxu0 %v14816_v56  ;;  %v1215_v37 = vand.u32 4294901760, %v14947_v50  ;;  %v1354_v28 = vsub.f32 %v14914_v52, %v18149_v57  ;;  %v12196_v57 = vpack.c.bf16 %v1341_v11, %v1334_v45 }
 0x148   :  { %12185 = vmatpush3.bf16.msra.mxu1 %v14844_v39  ;;  %12163 = vmatprep.subr.bf16.mxu0 %v14827_v44  ;;  %v1269_v39 = vand.u32 4294901760, %v14957_v22  ;;  %v18150_v44 = vand.u32 4294901760, %v14923_v15  ;;  %v1480_v59 = vsub.f32 %v14925_v34, %v18151_v41  ;;  %v15011_v41 = vsub.f32 %v14955_v13, %v1266_v47 }
 0x149   :  { %12187 = vmatprep.subr.bf16.mxu1 %v14883_v31  ;;  %1512 = vmatprep.mubr.f32.mxu1 %v14783_v1  ;;  %v1347_v31 = vsub.f32 %v14903_v30, %v18148_v29  ;;  %v15005_v36 = vsub.f32 %v14947_v50, %v1215_v37  ;;  %v17933_v29 = vand.u32 4294901760, %v14969_v62  ;;  %v12198_v11 = vpack.c.bf16 %v1467_v53, %v1460_v48 }
 0x14a   :  { %v1473_v56 = vsub.f32 %v14923_v15, %v18150_v44  ;;  %v1221_v44 = vand.u32 4294901760, %v14982_v42  ;;  %v15014_v1 = vsub.f32 %v14957_v22, %v1269_v39  ;;  %v1355_v50 = vand.u32 4294901760, %v1354_v28 }
 0x14b   :  { %12165 = vmatpush3.bf16.msra.mxu0 %v14850_v49  ;;  %v1218_v49 = vand.u32 4294901760, %v14980_v2  ;;  %v1348_v45 = vand.u32 4294901760, %v1347_v31  ;;  %v18152_v13 = vand.u32 4294901760, %v14940_v16  ;;  %v18153_v22 = vand.u32 4294901760, %v14942_v51 }
 0x14c   :  { %12189 = vmatpush3.bf16.msra.mxu1 %v14901_v23  ;;  %12167 = vmatprep.subr.bf16.mxu0 %v14885_v46  ;;  %v15019_v46 = vsub.f32 %v199_v54, %v14991_v27  ;;  %v1474_v34 = vand.u32 4294901760, %v1473_v56  ;;  %v15034_v54 = vsub.f32 %v14982_v42, %v1221_v44  ;;  %v18154_v31 = vand.u32 4294901760, %v14961_v6 }
 0x14d   :  { %12191 = vmatprep.subr.bf16.mxu1 %v14910_v5  ;;  %v1481_v5 = vand.u32 4294901760, %v1480_v59  ;;  %v1361_v15 = vsub.f32 %v14940_v16, %v18152_v13  ;;  %v1368_v23 = vsub.f32 %v14942_v51, %v18153_v22  ;;  %v15031_v48 = vsub.f32 %v14980_v2, %v1218_v49 }
 0x14e   :  { %v1487_v28 = vsub.f32 %v14961_v6, %v18154_v31  ;;  %v1500_v59 = vand.u32 4294901760, %v15011_v41  ;;  %v18155_v42 = vand.u32 4294901760, %v14920_v8  ;;  %v15050_v22 = vpack.c.bf16 %v1269_v39, %v1266_v47 }
 0x14f   :  { %12169 = vmatpush3.bf16.msra.mxu0 %v14912_v61  ;;  %v12200_v53 = vpack.c.bf16 %v1355_v50, %v1348_v45  ;;  %v12202_v31 = vpack.c.bf16 %v1481_v5, %v1474_v34  ;;  %v1362_v56 = vand.u32 4294901760, %v1361_v15  ;;  %v18157_v8 = vand.u32 4294901760, %v15005_v36 }
 0x150   :  { %12193 = vmatpush3.bf16.msra.mxu1 %v14932_v24  ;;  %12171 = vmatprep.subr.bf16.mxu0 %v14917_v32  ;;  %v1494_v24 = vsub.f32 %v14969_v62, %v17933_v29  ;;  %v15048_v13 = vpack.c.bf16 %v1215_v37, %v18155_v42  ;;  %v1369_v32 = vand.u32 4294901760, %v1368_v23  ;;  %v18156_v29 = vand.u32 4294901760, %v14976_v58 }
 0x151   :  { %12195 = vmatprep.subr.bf16.mxu1 %v12194_v4  ;;  %v1279_v4 = vand.u32 4294901760, %v15019_v46  ;;  %v1382_v47 = vsub.f32 %v15005_v36, %v18157_v8  ;;  %v17934_v37 = vand.u32 4294901760, %v15031_v48  ;;  %v17935_v39 = vand.u32 4294901760, %v15034_v54 }
 0x152   :  { %v1375_v2 = vsub.f32 %v14976_v58, %v18156_v29  ;;  %v1488_v45 = vand.u32 4294901760, %v1487_v28  ;;  %v1495_v34 = vand.u32 4294901760, %v1494_v24  ;;  %v1501_v15 = vsub.f32 %v15011_v41, %v1500_v59 }
 0x153   :  { %12173 = vmatpush3.bf16.msra.mxu0 %v14934_v20  ;;  %v1280_v29 = vsub.f32 %v15019_v46, %v1279_v4  ;;  %v15073_v50 = vpack.c.bf16 %v1221_v44, %v1218_v49  ;;  %v12204_v5 = vpack.c.bf16 %v1369_v32, %v1362_v56  ;;  %v1383_v24 = vand.u32 4294901760, %v1382_v47 }
 0x154   :  { %12197 = vmatpush3.bf16.msra.mxu1 %v12196_v57  ;;  %12175 = vmatprep.subr.bf16.mxu0 %v14967_v55  ;;  %v18158_v57 = vand.u32 4294901760, %v15014_v1  ;;  %v1376_v28 = vand.u32 4294901760, %v1375_v2  ;;  %v1389_v42 = vsub.f32 %v15031_v48, %v17934_v37  ;;  %v1396_v8 = vsub.f32 %v15034_v54, %v17935_v39 }
 0x155   :  { %12199 = vmatprep.subr.bf16.mxu1 %v12198_v11  ;;  %v12214_v11 = vpack.c.bf16 %v14719_v12, %v14717_v43  ;;  %v12206_v49 = vpack.c.bf16 %v1495_v34, %v1488_v45  ;;  %v1502_v44 = vand.u32 4294901760, %v1501_v15  ;;  %v1281_v56 = vand.u32 4294901760, %v1280_v29  ;;  %v18159_v29 = vld [vmem:[#allocation27_spill] sm:$0xff] }
 0x156   :  { %v1508_v23 = vsub.f32 %v15014_v1, %v18158_v57  ;;  %v12208_v2 = vpack.c.bf16 %v1383_v24, %v1376_v28  ;;  %v12218_v47 = vpack.c.bf16 %v14779_v25, %v14777_v21  ;;  %v1390_v57 = vand.u32 4294901760, %v1389_v42  ;;  %v18162_v24 = vld [vmem:[#allocation32_spill] sm:$0xff]  ;;  %v18163_v42 = vld [vmem:[#allocation37_spill] sm:$0xff] }
 0x157   :  { %12177 = vmatpush3.bf16.msra.mxu0 %v15048_v13  ;;  %v1397_v37 = vand.u32 4294901760, %v1396_v8  ;;  %v12222_v34 = vpack.c.bf16 %v14807_v63, %v14805_v3  ;;  %v12224_v15 = vpack.c.bf16 %v14820_v10, %v14818_v60  ;;  %v12232_v28 = vpack.c.bf16 %v14914_v52, %v14903_v30  ;;  %v18164_v8 = vld [vmem:[#allocation38_spill] sm:$0xff] }
 0x158   :  { %12201 = vmatpush3.bf16.msra.mxu1 %v12200_v53  ;;  %12179 = vmatprep.subr.bf16.mxu0 %v15050_v22  ;;  %v1509_v32 = vand.u32 4294901760, %v1508_v23  ;;  %v12216_v53 = vpack.c.bf16 %v14723_v33, %v14721_v7  ;;  %v12226_v23 = vpack.c.bf16 %v14838_v9, %v14836_v26 }
 0x159   :  { %12203 = vmatprep.subr.bf16.mxu1 %v12202_v31  ;;  %v12220_v31 = vpack.c.bf16 %v14791_v38, %v14786_v40  ;;  %v12212_v45 = vpack.c.bf16 %v1397_v37, %v1390_v57  ;;  %v12228_v37 = vpack.c.bf16 %v14865_v18, %v14863_v14  ;;  %v12242_v57 = vpack.c.bf16 %v15014_v1, %v15011_v41 }
 0x15a   :  { %v12210_v39 = vpack.c.bf16 %v1509_v32, %v1502_v44  ;;  %v18165_v44 = vld [vmem:[#allocation30_spill] sm:$0xff]  ;;  %v12236_v32 = vpack.c.bf16 %v14942_v51, %v14940_v16 }
 0x15b   :  { %12181 = vmatpush3.bf16.msra.mxu0 %v15073_v50 }
 0x15c   :  { %12205 = vmatpush3.bf16.msra.mxu1 %v12204_v5  ;;  %12215 = vmatprep.subr.bf16.mxu0 %v12214_v11  ;;  %v18160_v5 = vld [vmem:[#allocation28_spill] sm:$0xff]  ;;  %v18161_v11 = vand.u32 4294901760, %v14810_v0 }
 0x15d   :  { %12207 = vmatprep.subr.bf16.mxu1 %v12206_v49  ;;  %v12234_v49 = vpack.c.bf16 %v18164_v8, %v18163_v42 }
 0x15e   :  { %1282 = vmatmul.mubr.f32.vlgmr.msra.gmra.mrb[6].mxu0 %v1281_v56  ;;  %v18166_v56 = vld [vmem:[#allocation31_spill] sm:$0xff] }
 0x15f   :  { %12217 = vmatpush3.bf16.msra.mxu0 %v12216_v53  ;;  %1649 = vmatprep.mubr.f32.mxu0 %v14810_v0  ;;  %v12238_v0 = vpack.c.bf16 %v14969_v62, %v14961_v6  ;;  %v18167_v53 = vld [vmem:[#allocation33_spill] sm:$0xff] }
 0x160   :  { %12209 = vmatpush3.bf16.msra.mxu1 %v12208_v2  ;;  %12219 = vmatprep.subr.bf16.mxu0 %v12218_v47  ;;  %v12240_v2 = vpack.c.bf16 %v15005_v36, %v14976_v58  ;;  %v18168_v47 = vld [vmem:[#allocation34_spill] sm:$0xff] }
 0x161   :  { %12211 = vmatprep.subr.bf16.mxu1 %v12210_v39  ;;  %v12230_v39 = vpack.c.bf16 %v14891_v17, %v14873_v35 }
 0x163   :  { %12221 = vmatpush3.bf16.msra.mxu0 %v12220_v31  ;;  %v18169_v31 = vld [vmem:[#allocation35_spill] sm:$0xff] }
 0x164   :  { %12213 = vmatpush3.bf16.msra.mxu1 %v12212_v45  ;;  %12223 = vmatprep.subr.bf16.mxu0 %v12222_v34  ;;  %v12244_v45 = vpack.c.bf16 %v15034_v54, %v15031_v48  ;;  %v18170_v34 = vand.u32 4294901760, %v14717_v43  ;;  %v284_v43 = vld [vmem:[#allocation5 + $0x280] sm:$0xff] }
 0x165   :  { %12247 = vmatprep.subr.bf16.mxu1 %v14765_v19 }
 0x167   :  { %1514 = vmatmul.mubr.f32.vlgmr.msra.gmra.mrb[6].mxu1 %v14991_v27  ;;  %12225 = vmatpush3.bf16.msra.mxu0 %v12224_v15  ;;  %v18171_v15 = vand.u32 4294901760, %v14719_v12  ;;  %v18177_v12 = vand.u32 4294901760, %v14786_v40  ;;  %v18182_v40 = vand.u32 4294901760, %v14818_v60  ;;  %v18186_v60 = vand.u32 4294901760, %v14863_v14 }
 0x168   :  { %12249 = vmatpush3.bf16.msra.mxu1 %v18159_v29  ;;  %12227 = vmatprep.subr.bf16.mxu0 %v12226_v23  ;;  %v18193_v14 = vand.u32 4294901760, %v18164_v8 }
 0x169   :  { %12251 = vmatprep.subr.bf16.mxu1 %v18160_v5  ;;  %1756 = vmatprep.mubr.f32.mxu1 %v18161_v11  ;;  %v12278_v23 = vpack.c.bf16 %v18171_v15, %v18170_v34  ;;  %v18174_v11 = vand.u32 4294901760, %v14723_v33  ;;  %v2086_v34 = vand.u32 4294901760, %v284_v43  ;;  %v268_v15 = vld [vmem:[#allocation5 + $0x200] sm:$0xff] }
 0x16b   :  { %12229 = vmatpush3.bf16.msra.mxu0 %v12228_v37  ;;  %v18172_v37 = vld [vmem:[#allocation36_spill] sm:$0xff] }
 0x16c   :  { %12253 = vmatpush3.bf16.msra.mxu1 %v18162_v24  ;;  %12231 = vmatprep.subr.bf16.mxu0 %v12230_v39  ;;  %v18173_v39 = vand.u32 4294901760, %v14721_v7  ;;  %v18178_v7 = vand.u32 4294901760, %v14791_v38  ;;  %v18183_v38 = vand.u32 4294901760, %v14820_v10  ;;  %v18187_v10 = vand.u32 4294901760, %v14865_v18 }
 0x16d   :  { %12255 = vmatprep.subr.bf16.mxu1 %v18165_v44 }
 0x16e   :  { %v12284_v33 = vpack.c.bf16 %v18178_v7, %v18177_v12  ;;  %v12292_v7 = vpack.c.bf16 %v18187_v10, %v18186_v60  ;;  %v289_v10 = vld [vmem:[#allocation5 + $0x2a8] sm:$0xff] }
 0x16f   :  { %12233 = vmatpush3.bf16.msra.mxu0 %v12232_v28  ;;  %v12280_v28 = vpack.c.bf16 %v18174_v11, %v18173_v39  ;;  %v12288_v39 = vpack.c.bf16 %v18183_v38, %v18182_v40  ;;  %v271_v40 = vld [vmem:[#allocation5 + $0x218] sm:$0xff]  ;;  %v18191_v38 = vand.u32 4294901760, %v14914_v52  ;;  %v18196_v52 = vand.u32 4294901760, %v14961_v6 }
 0x170   :  { %12257 = vmatpush3.bf16.msra.mxu1 %v18166_v56  ;;  %12235 = vmatprep.subr.bf16.mxu0 %v12234_v49  ;;  %v18175_v49 = vand.u32 4294901760, %v14777_v21  ;;  %v18180_v21 = vand.u32 4294901760, %v14805_v3  ;;  %v18184_v3 = vand.u32 4294901760, %v14836_v26  ;;  %v270_v26 = vld [vmem:[#allocation5 + $0x210] sm:$0xff]  ;;  %v18198_v6 = vand.u32 4294901760, %v14976_v58 }
 0x171   :  { %12259 = vmatprep.subr.bf16.mxu1 %v18167_v53  ;;  %v18202_v58 = vand.u32 4294901760, %v15034_v54 }
 0x173   :  { %12237 = vmatpush3.bf16.msra.mxu0 %v12236_v32  ;;  %v18176_v32 = vand.u32 4294901760, %v14779_v25  ;;  %v18181_v25 = vand.u32 4294901760, %v14807_v63  ;;  %v18185_v63 = vand.u32 4294901760, %v14838_v9  ;;  %v18190_v9 = vand.u32 4294901760, %v14903_v30 }
 0x174   :  { %12261 = vmatpush3.bf16.msra.mxu1 %v18168_v47  ;;  %12239 = vmatprep.subr.bf16.mxu0 %v12238_v0  ;;  %v18195_v30 = vand.u32 4294901760, %v14942_v51  ;;  %v202_v51 = vld [vmem:[#allocation2 + $0x28] sm:$0xff] }
 0x175   :  { %12263 = vmatprep.subr.bf16.mxu1 %v18169_v31  ;;  %v12282_v0 = vpack.c.bf16 %v18176_v32, %v18175_v49  ;;  %v287_v49 = vld [vmem:[#allocation5 + $0x298] sm:$0xff]  ;;  %v12290_v32 = vpack.c.bf16 %v18185_v63, %v18184_v3  ;;  %v12296_v3 = vpack.c.bf16 %v18191_v38, %v18190_v9 }
 0x176   :  { %v2095_v60 = vand.u32 4294901760, %v287_v49 }
 0x177   :  { %12241 = vmatpush3.bf16.msra.mxu0 %v12240_v2  ;;  %v18179_v2 = vld [vmem:[#allocation29_spill] sm:$0xff] }
 0x178   :  { %12265 = vmatpush3.bf16.msra.mxu1 %v14912_v61  ;;  %12243 = vmatprep.subr.bf16.mxu0 %v12242_v57  ;;  %v12286_v57 = vpack.c.bf16 %v18181_v25, %v18180_v21  ;;  %v18189_v21 = vand.u32 4294901760, %v14891_v17  ;;  %v18194_v17 = vand.u32 4294901760, %v14940_v16  ;;  %v2044_v16 = vand.u32 4294901760, %v270_v26 }
 0x179   :  { %12267 = vmatprep.subr.bf16.mxu1 %v18172_v37  ;;  %v15228_v38 = vsub.f32 %v287_v49, %v2095_v60  ;;  %v291_v49 = vld [vmem:[#allocation5 + $0x2b8] sm:$0xff] }
 0x17b   :  { %12245 = vmatpush3.bf16.msra.mxu0 %v12244_v45  ;;  %v285_v45 = vld [vmem:[#allocation5 + $0x288] sm:$0xff] }
 0x17c   :  { %12269 = vmatpush3.bf16.msra.mxu1 %v14934_v20  ;;  %12279 = vmatprep.subr.bf16.mxu0 %v12278_v23  ;;  %v269_v23 = vld [vmem:[#allocation5 + $0x208] sm:$0xff]  ;;  %v2089_v11 = vand.u32 4294901760, %v285_v45 }
 0x17d   :  { %12271 = vmatprep.subr.bf16.mxu1 %v14967_v55  ;;  %v2041_v12 = vand.u32 4294901760, %v269_v23 }
 0x17e   :  { %1652 = vmatmul.mubr.f32.vlgmr.msra.gmra.mrb[8].mxu0 %v15019_v46 }
 0x17f   :  { %12281 = vmatpush3.bf16.msra.mxu0 %v12280_v28  ;;  %1926 = vmatprep.mubr.f32.mxu0 %v18179_v2  ;;  %v286_v28 = vld [vmem:[#allocation5 + $0x290] sm:$0xff] }
 0x180   :  { %12273 = vmatpush3.bf16.msra.mxu1 %v15048_v13  ;;  %12283 = vmatprep.subr.bf16.mxu0 %v12282_v0  ;;  %v2038_v0 = vand.u32 4294901760, %v268_v15  ;;  %v2092_v63 = vand.u32 4294901760, %v286_v28 }
 0x181   :  { %12275 = vmatprep.subr.bf16.mxu1 %v15050_v22 }
 0x182   :  { %v15201_v46 = vsub.f32 %v268_v15, %v2038_v0 }
 0x183   :  { %12285 = vmatpush3.bf16.msra.mxu0 %v12284_v33  ;;  %v18188_v33 = vand.u32 4294901760, %v14873_v35  ;;  %v288_v35 = vld [vmem:[#allocation5 + $0x2a0] sm:$0xff] }
 0x184   :  { %12277 = vmatpush3.bf16.msra.mxu1 %v15073_v50  ;;  %12287 = vmatprep.subr.bf16.mxu0 %v12286_v57  ;;  %v15174_v57 = vsub.f32 %v284_v43, %v2086_v34  ;;  %v15190_v43 = vpack.c.bf16 %v18195_v30, %v18194_v17  ;;  %v17936_v17 = vand.u32 4294901760, %v15228_v38 }
 0x185   :  { %12311 = vmatprep.subr.bf16.mxu1 %v14765_v19  ;;  %v12294_v25 = vpack.c.bf16 %v18189_v21, %v18188_v33  ;;  %v18192_v19 = vand.u32 4294901760, %v18163_v42  ;;  %v18197_v42 = vand.u32 4294901760, %v14969_v62  ;;  %v15198_v33 = vsub.f32 %v285_v45, %v2089_v11 }
 0x186   :  { %v18199_v62 = vand.u32 4294901760, %v15005_v36  ;;  %v2098_v45 = vand.u32 4294901760, %v288_v35  ;;  %v17946_v15 = vand.u32 4294901760, %v15174_v57  ;;  %v15226_v36 = vsub.f32 %v286_v28, %v2092_v63 }
 0x187   :  { %v12298_v18 = vpack.c.bf16 %v18193_v14, %v18192_v19  ;;  %1760 = vmatmul.mubr.f32.vlgmr.msra.gmra.mrb[8].mxu1 %v1279_v4  ;;  %12289 = vmatpush3.bf16.msra.mxu0 %v12288_v39  ;;  %v15196_v8 = vpack.c.bf16 %v18197_v42, %v18196_v52  ;;  %v15203_v4 = vsub.f32 %v269_v23, %v2041_v12  ;;  %v2047_v39 = vand.u32 4294901760, %v271_v40 }
 0x188   :  { %12313 = vmatpush3.bf16.msra.mxu1 %v18159_v29  ;;  %12291 = vmatprep.subr.bf16.mxu0 %v12290_v32  ;;  %v15210_v21 = vpack.c.bf16 %v18199_v62, %v18198_v6  ;;  %v2101_v29 = vand.u32 4294901760, %v289_v10  ;;  %v18200_v23 = vand.u32 4294901760, %v15014_v1  ;;  %v15232_v19 = vpack.c.bf16 %v2041_v12, %v2038_v0  ;;  %v272_v1 = vld [vmem:[#allocation5 + $0x220] sm:$0xff] }
 0x189   :  { %12315 = vmatprep.subr.bf16.mxu1 %v18160_v5  ;;  %2030 = vmatprep.mubr.f32.mxu1 %v18179_v2  ;;  %v18201_v5 = vand.u32 4294901760, %v15031_v48  ;;  %v15230_v2 = vpack.c.bf16 %v2089_v11, %v2086_v34  ;;  %v17944_v41 = vand.u32 4294901760, %v15198_v33  ;;  %v15235_v14 = vand.u32 4294901760, %v202_v51  ;;  %v290_v11 = vld [vmem:[#allocation5 + $0x2b0] sm:$0xff] }
 0x18a   :  { %v15218_v32 = vpack.c.bf16 %v18200_v23, %v1500_v59  ;;  %18203 = vst [vmem:[#allocation27_spill] sm:$0xff] %v15232_v19  ;;  %v273_v59 = vld [vmem:[#allocation5 + $0x228] sm:$0xff]  ;;  %v15238_v48 = vpack.c.bf16 %v2095_v60, %v2092_v63  ;;  %v15240_v54 = vpack.c.bf16 %v2047_v39, %v2044_v16  ;;  %v17941_v28 = vand.u32 4294901760, %v15201_v46 }
 0x18b   :  { %v15224_v9 = vpack.c.bf16 %v18202_v58, %v18201_v5  ;;  %12293 = vmatpush3.bf16.msra.mxu0 %v12292_v7  ;;  %18204 = vst [vmem:[#allocation28_spill] sm:$0xff] %v15235_v14  ;;  %v17940_v34 = vand.u32 4294901760, %v15203_v4  ;;  %v15245_v0 = vsub.f32 %v270_v26, %v2044_v16  ;;  %v15247_v12 = vsub.f32 %v271_v40, %v2047_v39 }
 0x18c   :  { %12317 = vmatpush3.bf16.msra.mxu1 %v18162_v24  ;;  %12295 = vmatprep.subr.bf16.mxu0 %v12294_v25  ;;  %18205 = vst [vmem:[#allocation32_spill] sm:$0xff] %v15238_v48  ;;  %18206 = vst [vmem:[#allocation37_spill] sm:$0xff] %v15240_v54  ;;  %v15249_v7 = vpack.c.bf16 %v2101_v29, %v2098_v45  ;;  %v2265_v24 = vsub.f32 %v15174_v57, %v17946_v15  ;;  %v2050_v25 = vand.u32 4294901760, %v272_v1 }
 0x18d   :  { %12319 = vmatprep.subr.bf16.mxu1 %v18165_v44  ;;  %v2053_v63 = vand.u32 4294901760, %v273_v59  ;;  %v17937_v60 = vand.u32 4294901760, %v15226_v36  ;;  %v2272_v44 = vsub.f32 %v15198_v33, %v17944_v41  ;;  %v2104_v26 = vand.u32 4294901760, %v290_v11 }
 0x18e   :  { %18207 = vst [vmem:[#allocation38_spill] sm:$0xff] %v15249_v7  ;;  %v2107_v40 = vand.u32 4294901760, %v291_v49  ;;  %v15260_v30 = vsub.f32 %v202_v51, %v15235_v14  ;;  %v15263_v52 = vsub.f32 %v288_v35, %v2098_v45  ;;  %v2153_v42 = vsub.f32 %v15201_v46, %v17941_v28  ;;  %v274_v51 = vld [vmem:[#allocation5 + $0x230] sm:$0xff]  ;;  %v277_v28 = vld [vmem:[#allocation5 + $0x248] sm:$0xff] }
 0x18f   :  { %12297 = vmatpush3.bf16.msra.mxu0 %v12296_v3  ;;  %v2160_v3 = vsub.f32 %v15203_v4, %v17940_v34  ;;  %v15272_v16 = vsub.f32 %v289_v10, %v2101_v29  ;;  %v2266_v39 = vand.u32 4294901760, %v2265_v24  ;;  %v17939_v6 = vand.u32 4294901760, %v15245_v0  ;;  %v275_v10 = vld [vmem:[#allocation5 + $0x238] sm:$0xff] }
 0x190   :  { %12321 = vmatpush3.bf16.msra.mxu1 %v18166_v56  ;;  %12299 = vmatprep.subr.bf16.mxu0 %v12298_v18  ;;  %v17938_v56 = vand.u32 4294901760, %v15247_v12  ;;  %v15276_v18 = vpack.c.bf16 %v2053_v63, %v2050_v25  ;;  %v15278_v35 = vsub.f32 %v272_v1, %v2050_v25  ;;  %v2279_v62 = vsub.f32 %v15226_v36, %v17937_v60  ;;  %v293_v60 = vld [vmem:[#allocation5 + $0x2c8] sm:$0xff] }
 0x191   :  { %12323 = vmatprep.subr.bf16.mxu1 %v18167_v53  ;;  %v2286_v53 = vsub.f32 %v15228_v38, %v17936_v17  ;;  %v2273_v45 = vand.u32 4294901760, %v2272_v44  ;;  %v15287_v29 = vsub.f32 %v273_v59, %v2053_v63  ;;  %v15289_v23 = vpack.c.bf16 %v2107_v40, %v2104_v26  ;;  %v292_v17 = vld [vmem:[#allocation5 + $0x2c0] sm:$0xff] }
 0x192   :  { %18208 = vst [vmem:[#allocation30_spill] sm:$0xff] %v15276_v18  ;;  %v17947_v5 = vand.u32 4294901760, %v15260_v30  ;;  %v2154_v58 = vand.u32 4294901760, %v2153_v42  ;;  %v2161_v1 = vand.u32 4294901760, %v2160_v3  ;;  %v15294_v24 = vsub.f32 %v290_v11, %v2104_v26  ;;  %v276_v42 = vld [vmem:[#allocation5 + $0x240] sm:$0xff] }
 0x193   :  { %12301 = vmatpush3.bf16.msra.mxu0 %v15190_v43  ;;  %18209 = vst [vmem:[#allocation31_spill] sm:$0xff] %v15289_v23  ;;  %v2056_v25 = vand.u32 4294901760, %v274_v51  ;;  %v15297_v43 = vsub.f32 %v291_v49, %v2107_v40  ;;  %v2059_v59 = vand.u32 4294901760, %v275_v10  ;;  %v2167_v63 = vsub.f32 %v15245_v0, %v17939_v6 }
 0x194   :  { %12325 = vmatpush3.bf16.msra.mxu1 %v18168_v47  ;;  %12303 = vmatprep.subr.bf16.mxu0 %v15196_v8  ;;  %v2174_v47 = vsub.f32 %v15247_v12, %v17938_v56  ;;  %v2280_v8 = vand.u32 4294901760, %v2279_v62  ;;  %v2287_v44 = vand.u32 4294901760, %v2286_v53  ;;  %v17943_v11 = vand.u32 4294901760, %v15263_v52 }
 0x195   :  { %12327 = vmatprep.subr.bf16.mxu1 %v18169_v31  ;;  %v17942_v26 = vand.u32 4294901760, %v15272_v16  ;;  %v15308_v31 = vpack.c.bf16 %v2273_v45, %v2266_v39  ;;  %v2110_v49 = vand.u32 4294901760, %v292_v17  ;;  %v2113_v40 = vand.u32 4294901760, %v293_v60 }
 0x196   :  { %v2136_v3 = vsub.f32 %v15260_v30, %v17947_v5  ;;  %v15315_v62 = vpack.c.bf16 %v2161_v1, %v2154_v58  ;;  %v15317_v53 = vsub.f32 %v274_v51, %v2056_v25  ;;  %v17945_v56 = vand.u32 4294901760, %v15278_v35  ;;  %v295_v1 = vld [vmem:[#allocation5 + $0x2d8] sm:$0xff] }
 0x197   :  { %12305 = vmatpush3.bf16.msra.mxu0 %v15210_v21  ;;  %v17948_v21 = vand.u32 4294901760, %v15287_v29  ;;  %v15322_v39 = vpack.c.bf16 %v2059_v59, %v2056_v25  ;;  %v15324_v45 = vsub.f32 %v275_v10, %v2059_v59  ;;  %v2168_v6 = vand.u32 4294901760, %v2167_v63  ;;  %v294_v10 = vld [vmem:[#allocation5 + $0x2d0] sm:$0xff]  ;;  %v279_v5 = vld [vmem:[#allocation5 + $0x258] sm:$0xff] }
 0x198   :  { %12329 = vmatpush3.bf16.msra.mxu1 %v14912_v61  ;;  %12307 = vmatprep.subr.bf16.mxu0 %v15218_v32  ;;  %v2175_v34 = vand.u32 4294901760, %v2174_v47  ;;  %v15326_v61 = vpack.c.bf16 %v2287_v44, %v2280_v8  ;;  %v2293_v32 = vsub.f32 %v15263_v52, %v17943_v11  ;;  %v2300_v51 = vsub.f32 %v15272_v16, %v17942_v26 }
 0x199   :  { %12331 = vmatprep.subr.bf16.mxu1 %v18172_v37  ;;  %18210 = vst [vmem:[#allocation33_spill] sm:$0xff] %v15322_v39  ;;  %v2062_v58 = vand.u32 4294901760, %v276_v42  ;;  %v15335_v37 = vpack.c.bf16 %v2113_v40, %v2110_v49  ;;  %v17950_v25 = vand.u32 4294901760, %v15294_v24  ;;  %v17949_v59 = vand.u32 4294901760, %v15297_v43 }
 0x19a   :  { %v2137_v63 = vand.u32 4294901760, %v2136_v3  ;;  %v15341_v47 = vsub.f32 %v292_v17, %v2110_v49  ;;  %v2065_v8 = vand.u32 4294901760, %v277_v28  ;;  %v2188_v44 = vsub.f32 %v15287_v29, %v17948_v21 }
 0x19b   :  { %12309 = vmatpush3.bf16.msra.mxu0 %v15224_v9  ;;  %18211 = vst [vmem:[#allocation34_spill] sm:$0xff] %v15335_v37  ;;  %v2181_v9 = vsub.f32 %v15278_v35, %v17945_v56  ;;  %v15350_v26 = vpack.c.bf16 %v2175_v34, %v2168_v6  ;;  %v15352_v3 = vsub.f32 %v293_v60, %v2113_v40  ;;  %v17953_v11 = vand.u32 4294901760, %v15317_v53 }
 0x19c   :  { %12333 = vmatpush3.bf16.msra.mxu1 %v14934_v20  ;;  %12343 = vmatprep.subr.bf16.mxu0 %v15230_v2  ;;  %v278_v20 = vld [vmem:[#allocation5 + $0x250] sm:$0xff]  ;;  %v17956_v17 = vand.u32 4294901760, %v15324_v45  ;;  %v2294_v49 = vand.u32 4294901760, %v2293_v32  ;;  %v2301_v41 = vand.u32 4294901760, %v2300_v51  ;;  %v2116_v56 = vand.u32 4294901760, %v294_v10 }
 0x19d   :  { %12335 = vmatprep.subr.bf16.mxu1 %v14967_v55  ;;  %v2119_v15 = vand.u32 4294901760, %v295_v1  ;;  %v15358_v21 = vsub.f32 %v276_v42, %v2062_v58  ;;  %v2307_v55 = vsub.f32 %v15294_v24, %v17950_v25  ;;  %v2314_v34 = vsub.f32 %v15297_v43, %v17949_v59  ;;  %v296_v59 = vld [vmem:[#allocation5 + $0x2e0] sm:$0xff] }
 0x19e   :  { %1928 = vmatmul.mubr.f32.vlgmr.msra.gmra.mrb[10].mxu0 %v14991_v27  ;;  %v15368_v60 = vpack.c.bf16 %v2065_v8, %v2062_v58  ;;  %v2182_v6 = vand.u32 4294901760, %v2181_v9  ;;  %v2189_v40 = vand.u32 4294901760, %v2188_v44  ;;  %v2068_v32 = vand.u32 4294901760, %v278_v20  ;;  %v15396_v25 = vld [vmem:[#allocation5 + $0x260] sm:$0xff] }
 0x19f   :  { %12345 = vmatpush3.bf16.msra.mxu0 %v15232_v19  ;;  %2138 = vmatprep.mubr.f32.mxu0 %v2137_v63  ;;  %v2071_v42 = vand.u32 4294901760, %v279_v5  ;;  %v2195_v51 = vsub.f32 %v15317_v53, %v17953_v11  ;;  %v2202_v63 = vsub.f32 %v15324_v45, %v17956_v17  ;;  %v15378_v58 = vpack.c.bf16 %v2301_v41, %v2294_v49 }
 0x1a0   :  { %12337 = vmatpush3.bf16.msra.mxu1 %v15048_v13  ;;  %12347 = vmatprep.subr.bf16.mxu0 %v15238_v48  ;;  %v297_v13 = vld [vmem:[#allocation5 + $0x2e8] sm:$0xff]  ;;  %v15380_v9 = vsub.f32 %v277_v28, %v2065_v8  ;;  %v15382_v44 = vpack.c.bf16 %v2119_v15, %v2116_v56  ;;  %v15386_v48 = vsub.f32 %v294_v10, %v2116_v56  ;;  %v2308_v19 = vand.u32 4294901760, %v2307_v55 }
 0x1a1   :  { %12339 = vmatprep.subr.bf16.mxu1 %v15050_v22  ;;  %v17957_v22 = vand.u32 4294901760, %v15352_v3  ;;  %v15388_v11 = vsub.f32 %v295_v1, %v2119_v15  ;;  %v2315_v17 = vand.u32 4294901760, %v2314_v34  ;;  %v15392_v41 = vpack.c.bf16 %v2189_v40, %v2182_v6  ;;  %v15404_v55 = vld [vmem:[#allocation5 + $0x268] sm:$0xff]  ;;  %v15413_v40 = vld [vmem:[#allocation5 + $0x2f0] sm:$0xff] }
 0x1a2   :  { %18212 = vst [vmem:[#allocation35_spill] sm:$0xff] %v15386_v48  ;;  %v15394_v28 = vsub.f32 %v278_v20, %v2068_v32  ;;  %v2122_v8 = vand.u32 4294901760, %v296_v59  ;;  %v2125_v49 = vand.u32 4294901760, %v297_v13  ;;  %v15399_v56 = vpack.c.bf16 %v2071_v42, %v2068_v32  ;;  %v15415_v32 = vld [vmem:[#allocation5 + $0x2f8] sm:$0xff] }
 0x1a3   :  { %12349 = vmatpush3.bf16.msra.mxu0 %v15240_v54  ;;  %18213 = vst [vmem:[#allocation36_spill] sm:$0xff] %v15388_v11  ;;  %v2196_v15 = vand.u32 4294901760, %v2195_v51  ;;  %v2203_v10 = vand.u32 4294901760, %v2202_v63  ;;  %v18214_v1 = vand.u32 4294901760, %v15341_v47  ;;  %v15406_v34 = vsub.f32 %v279_v5, %v2071_v42 }
 0x1a4   :  { %12341 = vmatpush3.bf16.msra.mxu1 %v15073_v50  ;;  %12351 = vmatprep.subr.bf16.mxu0 %v15249_v7  ;;  %v2328_v20 = vsub.f32 %v15352_v3, %v17957_v22  ;;  %v12386_v51 = vpack.c.bf16 %v2315_v17, %v2308_v19  ;;  %v2074_v5 = vand.u32 4294901760, %v15396_v25  ;;  %v15424_v22 = vpack.c.bf16 %v2125_v49, %v2122_v8 }
 0x1a5   :  { %12375 = vmatprep.subr.bf16.mxu1 %v15308_v31  ;;  %v2321_v50 = vsub.f32 %v15341_v47, %v18214_v1  ;;  %v201_v1 = vld [vmem:[#allocation2 + $0x20] sm:$0xff]  ;;  %v15426_v31 = vsub.f32 %v296_v59, %v2122_v8  ;;  %v15428_v6 = vsub.f32 %v297_v13, %v2125_v49  ;;  %v12388_v19 = vpack.c.bf16 %v2203_v10, %v2196_v15 }
 0x1a6   :  { %v2128_v42 = vand.u32 4294901760, %v15413_v40  ;;  %v2131_v63 = vand.u32 4294901760, %v15415_v32  ;;  %v2329_v59 = vand.u32 4294901760, %v2328_v20  ;;  %v18215_v13 = vand.u32 4294901760, %v15358_v21 }
 0x1a7   :  { %2032 = vmatmul.mubr.f32.vlgmr.msra.gmra.mrb[10].mxu1 %v14991_v27  ;;  %12353 = vmatpush3.bf16.msra.mxu0 %v15276_v18  ;;  %v2077_v27 = vand.u32 4294901760, %v15404_v55  ;;  %v2322_v17 = vand.u32 4294901760, %v2321_v50  ;;  %v15434_v18 = vld [vmem:[#allocation5 + $0x270] sm:$0xff]  ;;  %v18216_v49 = vand.u32 4294901760, %v15380_v9  ;;  %v15445_v15 = vand.u32 4294901760, %v201_v1 }
 0x1a8   :  { %12377 = vmatpush3.bf16.msra.mxu1 %v15315_v62  ;;  %12355 = vmatprep.subr.bf16.mxu0 %v15289_v23  ;;  %v15436_v62 = vld [vmem:[#allocation5 + $0x278] sm:$0xff]  ;;  %v2209_v8 = vsub.f32 %v15358_v21, %v18215_v13  ;;  %v18217_v10 = vand.u32 4294901760, %v15386_v48  ;;  %v18218_v23 = vand.u32 4294901760, %v15388_v11  ;;  %v15471_v13 = vsub.f32 %v15415_v32, %v2131_v63 }
 0x1a9   :  { %12379 = vmatprep.subr.bf16.mxu1 %v15326_v61  ;;  %2374 = vmatprep.mubr.f32.mxu1 %v15235_v14  ;;  %v2216_v61 = vsub.f32 %v15380_v9, %v18216_v49  ;;  %v15459_v49 = vsub.f32 %v15396_v25, %v2074_v5  ;;  %v2083_v7 = vand.u32 4294901760, %v15436_v62  ;;  %v17976_v25 = vand.u32 4294901760, %v15428_v6 }
 0x1aa   :  { %v2335_v50 = vsub.f32 %v15386_v48, %v18217_v10  ;;  %v2342_v20 = vsub.f32 %v15388_v11, %v18218_v23  ;;  %v2080_v10 = vand.u32 4294901760, %v15434_v18  ;;  %v15468_v23 = vsub.f32 %v15413_v40, %v2128_v42 }
 0x1ab   :  { %12357 = vmatpush3.bf16.msra.mxu0 %v15322_v39  ;;  %v15462_v39 = vsub.f32 %v15404_v55, %v2077_v27  ;;  %v12390_v14 = vpack.c.bf16 %v2329_v59, %v2322_v17  ;;  %v2217_v55 = vand.u32 4294901760, %v2216_v61  ;;  %v15476_v11 = vsub.f32 %v201_v1, %v15445_v15 }
 0x1ac   :  { %12381 = vmatpush3.bf16.msra.mxu1 %v15350_v26  ;;  %12359 = vmatprep.subr.bf16.mxu0 %v15335_v37  ;;  %v2210_v37 = vand.u32 4294901760, %v2209_v8  ;;  %v2336_v48 = vand.u32 4294901760, %v2335_v50  ;;  %v18219_v40 = vand.u32 4294901760, %v15394_v28  ;;  %v18220_v32 = vand.u32 4294901760, %v15406_v34 }
 0x1ad   :  { %12383 = vmatprep.subr.bf16.mxu1 %v15378_v58  ;;  %v2343_v58 = vand.u32 4294901760, %v2342_v20  ;;  %v15488_v17 = vsub.f32 %v15434_v18, %v2080_v10  ;;  %v15491_v1 = vsub.f32 %v15436_v62, %v2083_v7  ;;  %v18221_v61 = vand.u32 4294901760, %v15426_v31 }
 0x1ae   :  { %v2223_v54 = vsub.f32 %v15394_v28, %v18219_v40  ;;  %v2230_v26 = vsub.f32 %v15406_v34, %v18220_v32  ;;  %v17978_v18 = vand.u32 4294901760, %v15471_v13  ;;  %v15503_v40 = vpack.c.bf16 %v2077_v27, %v2074_v5 }
 0x1af   :  { %12361 = vmatpush3.bf16.msra.mxu0 %v15368_v60  ;;  %v2349_v50 = vsub.f32 %v15426_v31, %v18221_v61  ;;  %v15505_v62 = vpack.c.bf16 %v2131_v63, %v2128_v42  ;;  %v17980_v32 = vand.u32 4294901760, %v15476_v11  ;;  %v12394_v8 = vpack.c.bf16 %v2343_v58, %v2336_v48 }
 0x1b0   :  { %12385 = vmatpush3.bf16.msra.mxu1 %v15392_v41  ;;  %12363 = vmatprep.subr.bf16.mxu0 %v15382_v44  ;;  %v2356_v41 = vsub.f32 %v15428_v6, %v17976_v25  ;;  %v2224_v59 = vand.u32 4294901760, %v2223_v54  ;;  %v2231_v61 = vand.u32 4294901760, %v2230_v26  ;;  %v18222_v25 = vand.u32 4294901760, %v15459_v49 }
 0x1b1   :  { %12387 = vmatprep.subr.bf16.mxu1 %v12386_v51  ;;  %v12392_v51 = vpack.c.bf16 %v2217_v55, %v2210_v37  ;;  %v18223_v5 = vand.u32 4294901760, %v15462_v39  ;;  %v17977_v63 = vand.u32 4294901760, %v15488_v17  ;;  %v17979_v27 = vand.u32 4294901760, %v15491_v1 }
 0x1b2   :  { %v2237_v20 = vsub.f32 %v15459_v49, %v18222_v25  ;;  %v2350_v37 = vand.u32 4294901760, %v2349_v50  ;;  %v2357_v48 = vand.u32 4294901760, %v2356_v41  ;;  %v18224_v54 = vand.u32 4294901760, %v15468_v23 }
 0x1b3   :  { %12365 = vmatpush3.bf16.msra.mxu0 %v15399_v56  ;;  %v2244_v42 = vsub.f32 %v15462_v39, %v18223_v5  ;;  %v2370_v26 = vsub.f32 %v15471_v13, %v17978_v18  ;;  %v2142_v25 = vsub.f32 %v15476_v11, %v17980_v32  ;;  %v15528_v55 = vpack.c.bf16 %v2083_v7, %v2080_v10 }
 0x1b4   :  { %12389 = vmatpush3.bf16.msra.mxu1 %v12388_v19  ;;  %12367 = vmatprep.subr.bf16.mxu0 %v15424_v22  ;;  %v2363_v19 = vsub.f32 %v15468_v23, %v18224_v54  ;;  %v12396_v58 = vpack.c.bf16 %v2231_v61, %v2224_v59  ;;  %v2238_v50 = vand.u32 4294901760, %v2237_v20  ;;  %v2251_v5 = vsub.f32 %v15488_v17, %v17977_v63 }
 0x1b5   :  { %12391 = vmatprep.subr.bf16.mxu1 %v12390_v14  ;;  %v12406_v14 = vpack.c.bf16 %v15198_v33, %v15174_v57  ;;  %v2245_v41 = vand.u32 4294901760, %v2244_v42  ;;  %v2258_v54 = vsub.f32 %v15491_v1, %v17979_v27  ;;  %v12398_v7 = vpack.c.bf16 %v2357_v48, %v2350_v37 }
 0x1b6   :  { %v2364_v10 = vand.u32 4294901760, %v2363_v19  ;;  %v2371_v59 = vand.u32 4294901760, %v2370_v26  ;;  %v2143_v61 = vand.u32 4294901760, %v2142_v25  ;;  %v12410_v42 = vpack.c.bf16 %v15228_v38, %v15226_v36  ;;  %v18226_v25 = vld [vmem:[#allocation32_spill] sm:$0xff] }
 0x1b7   :  { %12369 = vmatpush3.bf16.msra.mxu0 %v15503_v40  ;;  %v12400_v20 = vpack.c.bf16 %v2245_v41, %v2238_v50  ;;  %v2252_v63 = vand.u32 4294901760, %v2251_v5  ;;  %v2259_v18 = vand.u32 4294901760, %v2258_v54  ;;  %v12414_v48 = vpack.c.bf16 %v15272_v16, %v15263_v52  ;;  %v18228_v50 = vld [vmem:[#allocation37_spill] sm:$0xff]  ;;  %v18229_v41 = vld [vmem:[#allocation35_spill] sm:$0xff]  ;;  %v18230_v5 = vld [vmem:[#allocation36_spill] sm:$0xff] }
 0x1b8   :  { %12393 = vmatpush3.bf16.msra.mxu1 %v12392_v51  ;;  %12371 = vmatprep.subr.bf16.mxu0 %v15505_v62  ;;  %v12408_v51 = vpack.c.bf16 %v15203_v4, %v15201_v46  ;;  %v12402_v27 = vpack.c.bf16 %v2371_v59, %v2364_v10  ;;  %v12416_v19 = vpack.c.bf16 %v15287_v29, %v15278_v35  ;;  %v18232_v59 = vld [vmem:[#allocation30_spill] sm:$0xff] }
 0x1b9   :  { %12395 = vmatprep.subr.bf16.mxu1 %v12394_v8  ;;  %v12412_v8 = vpack.c.bf16 %v15247_v12, %v15245_v0  ;;  %v12404_v37 = vpack.c.bf16 %v2259_v18, %v2252_v63  ;;  %v12418_v26 = vpack.c.bf16 %v15297_v43, %v15294_v24  ;;  %v12420_v18 = vpack.c.bf16 %v15324_v45, %v15317_v53  ;;  %v18225_v63 = vld [vmem:[#allocation27_spill] sm:$0xff] }
 0x1ba   :  { %v12426_v54 = vpack.c.bf16 %v18230_v5, %v18229_v41  ;;  %v12428_v10 = vpack.c.bf16 %v15406_v34, %v15394_v28 }
 0x1bb   :  { %12373 = vmatpush3.bf16.msra.mxu0 %v15528_v55 }
 0x1bc   :  { %12397 = vmatpush3.bf16.msra.mxu1 %v12396_v58  ;;  %12407 = vmatprep.subr.bf16.mxu0 %v12406_v14  ;;  %v18227_v58 = vand.u32 4294901760, %v15260_v30  ;;  %v12424_v14 = vpack.c.bf16 %v15380_v9, %v15358_v21 }
 0x1bd   :  { %12399 = vmatprep.subr.bf16.mxu1 %v12398_v7  ;;  %v18231_v7 = vld [vmem:[#allocation38_spill] sm:$0xff] }
 0x1be   :  { %2144 = vmatmul.mubr.f32.vlgmr.msra.gmra.mrb[12].mxu0 %v2143_v61  ;;  %v18233_v61 = vld [vmem:[#allocation31_spill] sm:$0xff] }
 0x1bf   :  { %12409 = vmatpush3.bf16.msra.mxu0 %v12408_v51  ;;  %2511 = vmatprep.mubr.f32.mxu0 %v15260_v30  ;;  %v12430_v30 = vpack.c.bf16 %v15428_v6, %v15426_v31 }
 0x1c0   :  { %12401 = vmatpush3.bf16.msra.mxu1 %v12400_v20  ;;  %12411 = vmatprep.subr.bf16.mxu0 %v12410_v42  ;;  %v12432_v42 = vpack.c.bf16 %v15462_v39, %v15459_v49 }
 0x1c1   :  { %12403 = vmatprep.subr.bf16.mxu1 %v12402_v27  ;;  %v12422_v27 = vpack.c.bf16 %v15352_v3, %v15341_v47 }
 0x1c3   :  { %12413 = vmatpush3.bf16.msra.mxu0 %v12412_v8 }
 0x1c4   :  { %12405 = vmatpush3.bf16.msra.mxu1 %v12404_v37  ;;  %12415 = vmatprep.subr.bf16.mxu0 %v12414_v48  ;;  %v18234_v37 = vld [vmem:[#allocation33_spill] sm:$0xff]  ;;  %v12434_v48 = vpack.c.bf16 %v15471_v13, %v15468_v23 }
 0x1c5   :  { %12439 = vmatprep.subr.bf16.mxu1 %v15230_v2 }
 0x1c7   :  { %2376 = vmatmul.mubr.f32.vlgmr.msra.gmra.mrb[12].mxu1 %v15445_v15  ;;  %12417 = vmatpush3.bf16.msra.mxu0 %v12416_v19  ;;  %v18235_v19 = vld [vmem:[#allocation34_spill] sm:$0xff] }
 0x1c8   :  { %12441 = vmatpush3.bf16.msra.mxu1 %v18225_v63  ;;  %12419 = vmatprep.subr.bf16.mxu0 %v12418_v26  ;;  %v8763_v26 = vld [vmem:[%s18236_s27] ss:$0 sm:$0xff] }
 0x1c9   :  { %12443 = vmatprep.subr.bf16.mxu1 %v18226_v25  ;;  %2618 = vmatprep.mubr.f32.mxu1 %v18227_v58  ;;  %v18238_v58 = vand.u32 4294901760, %v15198_v33  ;;  %v18242_v33 = vand.u32 4294901760, %v15228_v38  ;;  %v18247_v38 = vand.u32 4294901760, %v15272_v16  ;;  %v18253_v16 = vand.u32 4294901760, %v15317_v53 }
 0x1cb   :  { %12421 = vmatpush3.bf16.msra.mxu0 %v12420_v18  ;;  %v12436_v18 = vpack.c.bf16 %v15491_v1, %v15488_v17 }
 0x1cc   :  { %12445 = vmatpush3.bf16.msra.mxu1 %v18228_v50  ;;  %12423 = vmatprep.subr.bf16.mxu0 %v12422_v27  ;;  %v18237_v27 = vand.u32 4294901760, %v15174_v57  ;;  %v18241_v57 = vand.u32 4294901760, %v15226_v36  ;;  %v18246_v36 = vand.u32 4294901760, %v15263_v52  ;;  %v18252_v52 = vand.u32 4294901760, %v15476_v11 }
 0x1cd   :  { %12447 = vmatprep.subr.bf16.mxu1 %v18231_v7 }
 0x1cf   :  { %12425 = vmatpush3.bf16.msra.mxu0 %v12424_v14  ;;  %v12470_v14 = vpack.c.bf16 %v18238_v58, %v18237_v27  ;;  %v12478_v27 = vpack.c.bf16 %v18247_v38, %v18246_v36 }
 0x1d0   :  { %12449 = vmatpush3.bf16.msra.mxu1 %v18232_v59  ;;  %12427 = vmatprep.subr.bf16.mxu0 %v12426_v54 }
 0x1d1   :  { %12451 = vmatprep.subr.bf16.mxu1 %v18233_v61  ;;  %v8804_v51 = vpop.f32.mrb[0].mxu0 }
 0x1d2   :  { %v8805_v20 = vpop.f32.mrb[1].mxu0 }
 0x1d3   :  { %12429 = vmatpush3.bf16.msra.mxu0 %v12428_v10  ;;  %v8806_v8 = vadd.f32 %v8805_v20, %v8804_v51  ;;  %v18239_v51 = vand.u32 4294901760, %v15201_v46  ;;  %v18240_v20 = vand.u32 4294901760, %v15203_v4  ;;  %v18243_v46 = vand.u32 4294901760, %v15245_v0 }
 0x1d4   :  { %12453 = vmatpush3.bf16.msra.mxu1 %v18234_v37  ;;  %12431 = vmatprep.subr.bf16.mxu0 %v12430_v30  ;;  %v18244_v4 = vand.u32 4294901760, %v15247_v12  ;;  %v18249_v0 = vand.u32 4294901760, %v15287_v29  ;;  %v18250_v12 = vand.u32 4294901760, %v15294_v24  ;;  %v18256_v24 = vand.u32 4294901760, %v15352_v3 }
 0x1d5   :  { %12455 = vmatprep.subr.bf16.mxu1 %v18235_v19  ;;  %v422_v54 = vadd.f32 %v8806_v8, %v8763_v26  ;;  %v18261_v3 = vand.u32 4294901760, %v15394_v28 }
 0x1d6   :  { %v12476_v26 = vpack.c.bf16 %v18244_v4, %v18243_v46 }
 0x1d7   :  { %12433 = vmatpush3.bf16.msra.mxu0 %v12432_v42  ;;  %v12472_v42 = vpack.c.bf16 %v18240_v20, %v18239_v51  ;;  %v300_v51 = vld [vmem:[#allocation5 + $0x300] sm:$0xff]  ;;  %v301_v20 = vld [vmem:[#allocation5 + $0x308] sm:$0xff] }
 0x1d8   :  { %12457 = vmatpush3.bf16.msra.mxu1 %v15368_v60  ;;  %12435 = vmatprep.subr.bf16.mxu0 %v12434_v48  ;;  %v12474_v48 = vpack.c.bf16 %v18242_v33, %v18241_v57  ;;  %v2903_v46 = vand.u32 4294901760, %v301_v20 }
 0x1d9   :  { %12459 = vmatprep.subr.bf16.mxu1 %v15382_v44 }
 0x1da   :  { %v8839_v10 = vpop.f32.mrb[0].mxu1 }
 0x1db   :  { %v8840_v30 = vpop.f32.mrb[1].mxu1  ;;  %12437 = vmatpush3.bf16.msra.mxu0 %v12436_v18  ;;  %v18245_v18 = vld [vmem:[#allocation28_spill] sm:$0xff] }
 0x1dc   :  { %v8841_v32 = vadd.f32 %v8840_v30, %v8839_v10  ;;  %12461 = vmatpush3.bf16.msra.mxu1 %v15399_v56  ;;  %12471 = vmatprep.subr.bf16.mxu0 %v12470_v14  ;;  %v18251_v14 = vand.u32 4294901760, %v15297_v43  ;;  %v18255_v10 = vand.u32 4294901760, %v15341_v47  ;;  %v18260_v47 = vand.u32 4294901760, %v18230_v5 }
 0x1dd   :  { %12463 = vmatprep.subr.bf16.mxu1 %v15424_v22 }
 0x1de   :  { %v654_v8 = vadd.f32 %v8841_v32, %v422_v54  ;;  %2514 = vmatmul.mubr.f32.vlgmr.msra.gmra.mrb[14].mxu0 %v15476_v11  ;;  %v18248_v32 = vand.u32 4294901760, %v15278_v35  ;;  %v12482_v54 = vpack.c.bf16 %v18251_v14, %v18250_v12  ;;  %v18254_v35 = vand.u32 4294901760, %v15324_v45 }
 0x1df   :  { %12473 = vmatpush3.bf16.msra.mxu0 %v12472_v42  ;;  %2788 = vmatprep.mubr.f32.mxu0 %v18245_v18  ;;  %v12486_v43 = vpack.c.bf16 %v18256_v24, %v18255_v10  ;;  %v18258_v11 = vand.u32 4294901760, %v15380_v9  ;;  %v18259_v45 = vand.u32 4294901760, %v18229_v41  ;;  %v18264_v9 = vand.u32 4294901760, %v15428_v6  ;;  %v203_v41 = vld [vmem:[#allocation2 + $0x30] sm:$0xff] }
 0x1e0   :  { %12465 = vmatpush3.bf16.msra.mxu1 %v15503_v40  ;;  %12475 = vmatprep.subr.bf16.mxu0 %v12474_v48  ;;  %v12480_v58 = vpack.c.bf16 %v18249_v0, %v18248_v32  ;;  %v12484_v29 = vpack.c.bf16 %v18254_v35, %v18253_v16  ;;  %v311_v57 = vsel %vm309_vm0, %v203_v41, 0  ;;  %v18267_v6 = vand.u32 4294901760, %v15468_v23 }
 0x1e1   :  { %12467 = vmatprep.subr.bf16.mxu1 %v15505_v62  ;;  %v2900_v48 = vand.u32 4294901760, %v300_v51  ;;  %v2966_v4 = vand.u32 4294901760, %v311_v57 }
 0x1e3   :  { %12477 = vmatpush3.bf16.msra.mxu0 %v12476_v26  ;;  %v2967_v23 = vsub.f32 %v311_v57, %v2966_v4 }
 0x1e4   :  { %12469 = vmatpush3.bf16.msra.mxu1 %v15528_v55  ;;  %12479 = vmatprep.subr.bf16.mxu0 %v12478_v27 }
 0x1e5   :  { %12503 = vmatprep.subr.bf16.mxu1 %v15230_v2  ;;  %v18257_v2 = vand.u32 4294901760, %v15358_v21  ;;  %v18263_v21 = vand.u32 4294901760, %v15426_v31  ;;  %v18268_v31 = vand.u32 4294901760, %v15471_v13 }
 0x1e7   :  { %2622 = vmatmul.mubr.f32.vlgmr.msra.gmra.mrb[14].mxu1 %v18252_v52  ;;  %12481 = vmatpush3.bf16.msra.mxu0 %v12480_v58  ;;  %v12488_v53 = vpack.c.bf16 %v18258_v11, %v18257_v2  ;;  %v12498_v33 = vpack.c.bf16 %v18268_v31, %v18267_v6  ;;  %v3369_v31 = vld [vmem:[#allocation7 + $0x10] sm:$0xff] }
 0x1e8   :  { %12505 = vmatpush3.bf16.msra.mxu1 %v18225_v63  ;;  %12483 = vmatprep.subr.bf16.mxu0 %v12482_v54  ;;  %v12490_v63 = vpack.c.bf16 %v18260_v47, %v18259_v45 }
 0x1e9   :  { %12507 = vmatprep.subr.bf16.mxu1 %v18226_v25  ;;  %2892 = vmatprep.mubr.f32.mxu1 %v18245_v18  ;;  %v18262_v25 = vand.u32 4294901760, %v15406_v34  ;;  %v18265_v34 = vand.u32 4294901760, %v15459_v49  ;;  %v18269_v49 = vand.u32 4294901760, %v15488_v17  ;;  %v2978_v18 = vsub.f32 %v300_v51, %v2900_v48  ;;  %v3367_v51 = vld [vmem:[#allocation7] sm:$0xff] }
 0x1ea   :  { %v14102_v17 = vmov 0.0|0.0  }
 0x1eb   :  { %12485 = vmatpush3.bf16.msra.mxu0 %v12484_v29  ;;  %v12492_v30 = vpack.c.bf16 %v18262_v25, %v18261_v3  ;;  %v2979_v36 = vand.u32 4294901760, %v2978_v18 }
 0x1ec   :  { %12509 = vmatpush3.bf16.msra.mxu1 %v18228_v50  ;;  %12487 = vmatprep.subr.bf16.mxu0 %v12486_v43  ;;  %v12494_v50 = vpack.c.bf16 %v18264_v9, %v18263_v21 }
 0x1ed   :  { %12511 = vmatprep.subr.bf16.mxu1 %v18231_v7 }
 0x1ef   :  { %12489 = vmatpush3.bf16.msra.mxu0 %v12488_v53 }
 0x1f0   :  { %12513 = vmatpush3.bf16.msra.mxu1 %v18232_v59  ;;  %12491 = vmatprep.subr.bf16.mxu0 %v12490_v63  ;;  %v18266_v59 = vand.u32 4294901760, %v15462_v39  ;;  %v18270_v39 = vand.u32 4294901760, %v15491_v1 }
 0x1f1   :  { %v8874_v5 = vpop.f32.mrb[2].mxu0  ;;  %12515 = vmatprep.subr.bf16.mxu1 %v18233_v61 }
 0x1f2   :  { %v8875_v7 = vpop.f32.mrb[3].mxu0  ;;  %v12496_v42 = vpack.c.bf16 %v18266_v59, %v18265_v34  ;;  %v12500_v26 = vpack.c.bf16 %v18270_v39, %v18269_v49  ;;  %v3391_v34 = vand.u32 4294901760, %v3367_v51  ;;  %v3372_v49 = vld [vmem:[#allocation7 + $0x28] sm:$0xff] }
 0x1f3   :  { %v8876_v28 = vadd.f32 %v8875_v7, %v8874_v5  ;;  %12493 = vmatpush3.bf16.msra.mxu0 %v12492_v30 }
 0x1f4   :  { %12517 = vmatpush3.bf16.msra.mxu1 %v18234_v37  ;;  %12495 = vmatprep.subr.bf16.mxu0 %v12494_v50  ;;  %v2985_v37 = vsub.f32 %v301_v20, %v2903_v46  ;;  %v3368_v20 = vld [vmem:[#allocation7 + $0x8] sm:$0xff] }
 0x1f5   :  { %v792_v61 = vadd.f32 %v8876_v28, %v654_v8  ;;  %12519 = vmatprep.subr.bf16.mxu1 %v18235_v19  ;;  %v12535_v19 = vpack.c.bf16 %v2903_v46, %v2900_v48  ;;  %v3394_v59 = vand.u32 4294901760, %v3368_v20 }
 0x1f6   :  { %v2986_v38 = vand.u32 4294901760, %v2985_v37 }
 0x1f7   :  { %12497 = vmatpush3.bf16.msra.mxu0 %v12496_v42  ;;  %v15704_v57 = vpack.c.bf16 %v3394_v59, %v3391_v34 }
 0x1f8   :  { %12521 = vmatpush3.bf16.msra.mxu1 %v15368_v60  ;;  %12499 = vmatprep.subr.bf16.mxu0 %v12498_v33  ;;  %v2968_v60 = vand.u32 4294901760, %v2967_v23  ;;  %v12547_v32 = vpack.c.bf16 %v2986_v38, %v2979_v36  ;;  %v2987_v0 = vsub.f32 %v2985_v37, %v2986_v38  ;;  %v3370_v33 = vld [vmem:[#allocation7 + $0x18] sm:$0xff] }
 0x1f9   :  { %12523 = vmatprep.subr.bf16.mxu1 %v15382_v44  ;;  %v14104_v44 = vmov 0.0   ;;  %v3400_v48 = vand.u32 4294901760, %v3370_v33 }
 0x1fa   :  { %v8909_v13 = vpop.f32.mrb[2].mxu1  ;;  %v2988_v12 = vand.u32 4294901760, %v2987_v0 }
 0x1fb   :  { %v8910_v8 = vpop.f32.mrb[3].mxu1  ;;  %12501 = vmatpush3.bf16.msra.mxu0 %v12500_v26 }
 0x1fc   :  { %v8911_v27 = vadd.f32 %v8910_v8, %v8909_v13  ;;  %12525 = vmatpush3.bf16.msra.mxu1 %v15399_v56  ;;  %12543 = vmatprep.subr.bf16.mxu0 %v14102_v17  ;;  %v2980_v56 = vsub.f32 %v2978_v18, %v2979_v36  ;;  %v3373_v8 = vld [vmem:[#allocation7 + $0x30] sm:$0xff] }
 0x1fd   :  { %12527 = vmatprep.subr.bf16.mxu1 %v15424_v22  ;;  %v2969_v22 = vsub.f32 %v2967_v23, %v2968_v60  ;;  %v3409_v38 = vand.u32 4294901760, %v3373_v8 }
 0x1fe   :  { %v900_v1 = vadd.f32 %v8911_v27, %v792_v61  ;;  %2790 = vmatmul.mubr.f32.vlgmr.msra.gmra.mrb[16].mxu0 %v15445_v15  ;;  %v2981_v58 = vand.u32 4294901760, %v2980_v56  ;;  %v3397_v61 = vand.u32 4294901760, %v3369_v31 }
 0x1ff   :  { %12545 = vmatpush3.bf16.msra.mxu0 %v12535_v19  ;;  %10261 = vmatprep.mubr.msk.f32.mxu0 %vm14103_vm1, %v14104_v44 }
 0x200   :  { %12529 = vmatpush3.bf16.msra.mxu1 %v15503_v40  ;;  %12546 = vmatprep.subr.bf16.mxu0 %v14102_v17  ;;  %v2970_v40 = vand.u32 4294901760, %v2969_v22  ;;  %v15708_v46 = vpack.c.bf16 %v3400_v48, %v3397_v61 }
 0x201   :  { %12531 = vmatprep.subr.bf16.mxu1 %v15505_v62  ;;  %v12538_v62 = vpack.c.bf16 %v2988_v12, %v2981_v58  ;;  %v3377_v58 = vld [vmem:[#allocation7 + $0x50] sm:$0xff]  ;;  %v3378_v12 = vld [vmem:[#allocation7 + $0x58] sm:$0xff] }
 0x202   :  { %10262 = vmatmul.mubr.f32.vlgmr.msra.gmra.mrb[18].mxu0 %v2968_v60  ;;  %v3375_v60 = vld [vmem:[#allocation7 + $0x40] sm:$0xff] }
 0x203   :  { %12548 = vmatpush3.bf16.msra.mxu0 %v12547_v32  ;;  %10268 = vmatprep.mubr.msk.f32.mxu0 %vm14103_vm1, %v14104_v44  ;;  %v3376_v32 = vld [vmem:[#allocation7 + $0x48] sm:$0xff]  ;;  %v3415_v56 = vand.u32 4294901760, %v3375_v60 }
 0x204   :  { %12533 = vmatpush3.bf16.msra.mxu1 %v15528_v55  ;;  %12549 = vmatprep.subr.bf16.mxu0 %v14102_v17  ;;  %v3418_v0 = vand.u32 4294901760, %v3376_v32 }
 0x205   :  { %12534 = vmatprep.subr.bf16.mxu1 %v14102_v17 }
 0x206   :  { %v15720_v22 = vpack.c.bf16 %v3418_v0, %v3415_v56 }
 0x207   :  { %2894 = vmatmul.mubr.f32.vlgmr.msra.gmra.mrb[16].mxu1 %v15445_v15  ;;  %v12541_v15 = vpack.c.bf16 %v2985_v37, %v2978_v18  ;;  %v3406_v18 = vand.u32 4294901760, %v3372_v49 }
 0x208   :  { %12536 = vmatpush3.bf16.msra.mxu1 %v12535_v19  ;;  %10240 = vmatprep.mubr.msk.f32.mxu1 %vm14103_vm1, %v14104_v44 }
 0x209   :  { %12537 = vmatprep.subr.bf16.mxu1 %v14102_v17 }
 0x20a   :  { %10269 = vmatmul.mubr.f32.vlgmr.msra.gmra.mrb[18].mxu0 %v2966_v4 }
 0x20b   :  { %10241 = vmatmul.mubr.f32.vlgmr.msra.gmra.mrb[18].mxu1 %v2970_v40  ;;  %12551 = vmatpush3.bf16.msra.mxu0 %v12535_v19  ;;  %v3374_v19 = vld [vmem:[#allocation7 + $0x38] sm:$0xff]  ;;  %v3421_v40 = vand.u32 4294901760, %v3377_v58 }
 0x20c   :  { %12539 = vmatpush3.bf16.msra.mxu1 %v12538_v62  ;;  %10247 = vmatprep.mubr.msk.f32.mxu1 %vm14103_vm1, %v14104_v44  ;;  %v3412_v27 = vand.u32 4294901760, %v3374_v19  ;;  %v3424_v62 = vand.u32 4294901760, %v3378_v12 }
 0x20d   :  { %10275 = vmatprep.mubr.msk.f32.mxu0 %vm14103_vm1, %v14104_v44  ;;  %12540 = vmatprep.subr.bf16.mxu1 %v14102_v17 }
 0x20e   :  { %12696 = vmatprep.subr.bf16.mxu0 %v14102_v17 }
 0x211   :  { %v8944_v55 = vpop.f32.mrb[4].mxu0 }
 0x212   :  { %v8945_v14 = vpop.f32.mrb[5].mxu0  ;;  %10276 = vmatmul.mubr.f32.vlgmr.msra.gmra.mrb[18].mxu0 %v2966_v4 }
 0x213   :  { %v8946_v54 = vadd.f32 %v8945_v14, %v8944_v55  ;;  %10248 = vmatmul.mubr.f32.vlgmr.msra.gmra.mrb[18].mxu1 %v2966_v4  ;;  %10520 = vmatprep.mubr.msk.f32.mxu0 %vm14103_vm1, %v14104_v44  ;;  %v3371_v4 = vld [vmem:[#allocation7 + $0x20] sm:$0xff]  ;;  %v3380_v14 = vld [vmem:[#allocation7 + $0x68] sm:$0xff] }
 0x214   :  { %12542 = vmatpush3.bf16.msra.mxu1 %v12541_v15  ;;  %10254 = vmatprep.mubr.msk.f32.mxu1 %vm14103_vm1, %v14104_v44  ;;  %v3403_v26 = vand.u32 4294901760, %v3371_v4  ;;  %v15724_v15 = vpack.c.bf16 %v3424_v62, %v3421_v40  ;;  %v3379_v55 = vld [vmem:[#allocation7 + $0x60] sm:$0xff] }
 0x215   :  { %v1068_v52 = vadd.f32 %v8946_v54, %v900_v1  ;;  %12552 = vmatprep.subr.bf16.mxu1 %v14102_v17  ;;  %v15716_v1 = vpack.c.bf16 %v3412_v27, %v3409_v38  ;;  %v3427_v54 = vand.u32 4294901760, %v3379_v55 }
 0x21a   :  { %v8979_v16 = vpop.f32.mrb[4].mxu1 }
 0x21b   :  { %v8980_v35 = vpop.f32.mrb[5].mxu1  ;;  %10255 = vmatmul.mubr.f32.vlgmr.msra.gmra.mrb[18].mxu1 %v2967_v23  ;;  %v15712_v23 = vpack.c.bf16 %v3406_v18, %v3403_v26 }
 0x21c   :  { %v8981_v29 = vadd.f32 %v8980_v35, %v8979_v16  ;;  %10310 = vmatprep.mubr.msk.f32.mxu1 %vm14103_vm1, %v14104_v44  ;;  %12554 = vmatpush3.bf16.msra.mxu1 %v15704_v57  ;;  %v15728_v16 = vsub.f32 %v3367_v51, %v3391_v34  ;;  %v15730_v35 = vsub.f32 %v3368_v20, %v3394_v59 }
 0x21d   :  { %12555 = vmatprep.subr.bf16.mxu1 %v14102_v17 }
 0x21e   :  { %v1172_v10 = vadd.f32 %v8981_v29, %v1068_v52  ;;  %v3430_v52 = vand.u32 4294901760, %v3380_v14  ;;  %v15732_v29 = vsub.f32 %v3369_v31, %v3397_v61 }
 0x220   :  { %12557 = vmatpush3.bf16.msra.mxu1 %v15708_v46 }
 0x221   :  { %12558 = vmatprep.subr.bf16.mxu1 %v14102_v17 }
 0x224   :  { %12560 = vmatpush3.bf16.msra.mxu1 %v15712_v23 }
 0x225   :  { %12561 = vmatprep.subr.bf16.mxu1 %v14102_v17 }
 0x228   :  { %12563 = vmatpush3.bf16.msra.mxu1 %v15716_v1 }
 0x229   :  { %12564 = vmatprep.subr.bf16.mxu1 %v14102_v17 }
 0x22c   :  { %12566 = vmatpush3.bf16.msra.mxu1 %v15720_v22 }
 0x22d   :  { %12567 = vmatprep.subr.bf16.mxu1 %v14102_v17 }
 0x230   :  { %12569 = vmatpush3.bf16.msra.mxu1 %v15724_v15 }
 0x231   :  { %v9014_v24 = vpop.f32.mrb[6].mxu0  ;;  %12570 = vmatprep.subr.bf16.mxu1 %v14102_v17 }
 0x232   :  { %v9015_v43 = vpop.f32.mrb[7].mxu0 }
 0x233   :  { %v9016_v2 = vadd.f32 %v9015_v43, %v9014_v24  ;;  %v3381_v24 = vld [vmem:[#allocation7 + $0x70] sm:$0xff]  ;;  %v15736_v43 = vsub.f32 %v3371_v4, %v3403_v26 }
 0x235   :  { %v1284_v11 = vadd.f32 %v9016_v2, %v1172_v10  ;;  %v15734_v10 = vsub.f32 %v3370_v33, %v3400_v48  ;;  %v15738_v2 = vsub.f32 %v3372_v49, %v3406_v18  ;;  %v17994_v33 = vand.u32 4294901760, %v15732_v29 }
 0x237   :  { %v17993_v61 = vand.u32 4294901760, %v15734_v10 }
 0x239   :  { %v3506_v26 = vsub.f32 %v15734_v10, %v17993_v61 }
 0x23a   :  { %v9049_v53 = vpop.f32.mrb[6].mxu1 }
 0x23b   :  { %v9050_v45 = vpop.f32.mrb[7].mxu1 }
 0x23c   :  { %v9051_v47 = vadd.f32 %v9050_v45, %v9049_v53  ;;  %v15742_v53 = vsub.f32 %v3374_v19, %v3412_v27  ;;  %v3382_v45 = vld [vmem:[#allocation7 + $0x78] sm:$0xff]  ;;  %v17991_v19 = vand.u32 4294901760, %v15738_v2 }
 0x23e   :  { %v1516_v63 = vadd.f32 %v9051_v47, %v1284_v11  ;;  %v15740_v11 = vsub.f32 %v3373_v8, %v3409_v38  ;;  %v15744_v47 = vsub.f32 %v3375_v60, %v3415_v56  ;;  %v17992_v8 = vand.u32 4294901760, %v15736_v43 }
 0x23f   :  { %v3520_v27 = vsub.f32 %v15738_v2, %v17991_v19 }
 0x240   :  { %v3513_v38 = vsub.f32 %v15736_v43, %v17992_v8 }
 0x242   :  { %v3514_v56 = vand.u32 4294901760, %v3513_v38 }
 0x251   :  { %v9084_v3 = vpop.f32.mrb[8].mxu0 }
 0x252   :  { %v9085_v25 = vpop.f32.mrb[9].mxu0 }
 0x253   :  { %v9086_v30 = vadd.f32 %v9085_v25, %v9084_v3  ;;  %v15748_v3 = vsub.f32 %v3377_v58, %v3421_v40  ;;  %v15750_v25 = vsub.f32 %v3378_v12, %v3424_v62  ;;  %v17990_v58 = vand.u32 4294901760, %v15740_v11 }
 0x254   :  { %v17989_v12 = vand.u32 4294901760, %v15742_v53 }
 0x255   :  { %v1654_v21 = vadd.f32 %v9086_v30, %v1516_v63  ;;  %v15746_v63 = vsub.f32 %v3376_v32, %v3418_v0  ;;  %v15752_v30 = vpack.c.bf16 %v3430_v52, %v3427_v54  ;;  %v3521_v0 = vand.u32 4294901760, %v3520_v27 }
 0x257   :  { %12572 = vmatpush3.bf16.msra.mxu1 %v15752_v30  ;;  %v15798_v62 = vpack.c.bf16 %v3521_v0, %v3514_v56 }
 0x258   :  { %12573 = vmatprep.subr.bf16.mxu1 %v14102_v17 }
 0x25a   :  { %v9119_v9 = vpop.f32.mrb[8].mxu1 }
 0x25b   :  { %v9120_v50 = vpop.f32.mrb[9].mxu1 }
 0x25c   :  { %v9121_v41 = vadd.f32 %v9120_v50, %v9119_v9  ;;  %v15756_v9 = vsub.f32 %v3380_v14, %v3430_v52  ;;  %v3433_v50 = vand.u32 4294901760, %v3381_v24  ;;  %v3534_v14 = vsub.f32 %v15742_v53, %v17989_v12 }
 0x25e   :  { %v1762_v5 = vadd.f32 %v9121_v41, %v1654_v21  ;;  %v15754_v21 = vsub.f32 %v3379_v55, %v3427_v54  ;;  %v3436_v41 = vand.u32 4294901760, %v3382_v45  ;;  %v15761_v20 = vsub.f32 %v3381_v24, %v3433_v50 }
 0x25f   :  { %v3527_v55 = vsub.f32 %v15740_v11, %v17990_v58  ;;  %v3535_v24 = vand.u32 4294901760, %v3534_v14  ;;  %v17983_v38 = vand.u32 4294901760, %v15756_v9 }
 0x260   :  { %v15764_v34 = vpack.c.bf16 %v3436_v41, %v3433_v50  ;;  %v15766_v59 = vsub.f32 %v3382_v45, %v3436_v41  ;;  %v17988_v45 = vand.u32 4294901760, %v15744_v47  ;;  %v17987_v50 = vand.u32 4294901760, %v15746_v63 }
 0x261   :  { %v3528_v52 = vand.u32 4294901760, %v3527_v55 }
 0x262   :  { %12575 = vmatpush3.bf16.msra.mxu1 %v15764_v34  ;;  %v17982_v55 = vand.u32 4294901760, %v15766_v59 }
 0x263   :  { %12576 = vmatprep.subr.bf16.mxu1 %v14102_v17  ;;  %v15808_v41 = vpack.c.bf16 %v3535_v24, %v3528_v52 }
 0x264   :  { %v3590_v24 = vsub.f32 %v15766_v59, %v17982_v55 }
 0x271   :  { %v9154_v7 = vpop.f32.mrb[10].mxu0 }
 0x272   :  { %v9155_v28 = vpop.f32.mrb[11].mxu0 }
 0x273   :  { %v9156_v42 = vadd.f32 %v9155_v28, %v9154_v7  ;;  %v17995_v7 = vand.u32 4294901760, %v15730_v35 }
 0x275   :  { %v1930_v6 = vadd.f32 %v9156_v42, %v1762_v5  ;;  %v17996_v5 = vand.u32 4294901760, %v15728_v16 }
 0x277   :  { %v3485_v42 = vsub.f32 %v15728_v16, %v17996_v5 }
 0x279   :  { %v3486_v48 = vand.u32 4294901760, %v3485_v42 }
 0x27a   :  { %v9189_v39 = vpop.f32.mrb[10].mxu1 }
 0x27b   :  { %v9190_v37 = vpop.f32.mrb[11].mxu1 }
 0x27c   :  { %v9191_v13 = vadd.f32 %v9190_v37, %v9189_v39  ;;  %v3499_v39 = vsub.f32 %v15732_v29, %v17994_v33 }
 0x27e   :  { %v2034_v36 = vadd.f32 %v9191_v13, %v1930_v6  ;;  %v3492_v6 = vsub.f32 %v15730_v35, %v17995_v7  ;;  %v3500_v37 = vand.u32 4294901760, %v3499_v39  ;;  %v3507_v13 = vand.u32 4294901760, %v3506_v26 }
 0x280   :  { %v3493_v4 = vand.u32 4294901760, %v3492_v6 }
 0x282   :  { %v15784_v18 = vpack.c.bf16 %v3493_v4, %v3486_v48  ;;  %v17985_v48 = vand.u32 4294901760, %v15750_v25 }
 0x284   :  { %v3562_v39 = vsub.f32 %v15750_v25, %v17985_v48 }
 0x291   :  { %v9224_v51 = vpop.f32.mrb[12].mxu0 }
 0x292   :  { %v9225_v28 = vpop.f32.mrb[13].mxu0 }
 0x293   :  { %v9226_v31 = vadd.f32 %v9225_v28, %v9224_v51  ;;  %v3541_v51 = vsub.f32 %v15744_v47, %v17988_v45  ;;  %v3548_v28 = vsub.f32 %v15746_v63, %v17987_v50 }
 0x295   :  { %v2146_v49 = vadd.f32 %v9226_v31, %v2034_v36  ;;  %v15788_v36 = vpack.c.bf16 %v3507_v13, %v3500_v37  ;;  %v3542_v42 = vand.u32 4294901760, %v3541_v51  ;;  %v3549_v6 = vand.u32 4294901760, %v3548_v28 }
 0x296   :  { %v17986_v31 = vand.u32 4294901760, %v15748_v3  ;;  %v3563_v37 = vand.u32 4294901760, %v3562_v39  ;;  %v17984_v13 = vand.u32 4294901760, %v15754_v21  ;;  %v3591_v28 = vand.u32 4294901760, %v3590_v24 }
 0x297   :  { %v15818_v4 = vpack.c.bf16 %v3549_v6, %v3542_v42  ;;  %v12613_v24 = vpack.c.bf16 %v15746_v63, %v15744_v47 }
 0x29a   :  { %v9259_v60 = vpop.f32.mrb[12].mxu1 }
 0x29b   :  { %v9260_v32 = vpop.f32.mrb[13].mxu1 }
 0x29c   :  { %v9261_v40 = vadd.f32 %v9260_v32, %v9259_v60  ;;  %v3569_v60 = vsub.f32 %v15754_v21, %v17984_v13  ;;  %v3576_v32 = vsub.f32 %v15756_v9, %v17983_v38 }
 0x29e   :  { %v2378_v54 = vadd.f32 %v9261_v40, %v2146_v49  ;;  %v3555_v49 = vsub.f32 %v15748_v3, %v17986_v31  ;;  %v3570_v56 = vand.u32 4294901760, %v3569_v60  ;;  %v3577_v0 = vand.u32 4294901760, %v3576_v32 }
 0x29f   :  { %v17981_v40 = vand.u32 4294901760, %v15761_v20  ;;  %v12604_v60 = vpack.c.bf16 %v15734_v10, %v15732_v29 }
 0x2a0   :  { %v3556_v26 = vand.u32 4294901760, %v3555_v49  ;;  %v15838_v14 = vpack.c.bf16 %v3577_v0, %v3570_v56 }
 0x2a1   :  { %v3583_v52 = vsub.f32 %v15761_v20, %v17981_v40  ;;  %v12607_v40 = vpack.c.bf16 %v15738_v2, %v15736_v43 }
 0x2a2   :  { %v15828_v27 = vpack.c.bf16 %v3563_v37, %v3556_v26  ;;  %v12601_v37 = vpack.c.bf16 %v15730_v35, %v15728_v16 }
 0x2a3   :  { %v3584_v51 = vand.u32 4294901760, %v3583_v52  ;;  %v12610_v52 = vpack.c.bf16 %v15742_v53, %v15740_v11 }
 0x2a5   :  { %v12598_v6 = vpack.c.bf16 %v3591_v28, %v3584_v51  ;;  %v12619_v51 = vpack.c.bf16 %v15756_v9, %v15754_v21  ;;  %v12622_v28 = vpack.c.bf16 %v15766_v59, %v15761_v20 }
 0x2b1   :  { %v9294_v42 = vpop.f32.mrb[14].mxu0 }
 0x2b2   :  { %v9295_v49 = vpop.f32.mrb[15].mxu0 }
 0x2b3   :  { %v9296_v39 = vadd.f32 %v9295_v49, %v9294_v42 }
 0x2b5   :  { %v2516_v26 = vadd.f32 %v9296_v39, %v2378_v54  ;;  %v12616_v54 = vpack.c.bf16 %v15750_v25, %v15748_v3 }
 0x2ba   :  { %v9329_v32 = vpop.f32.mrb[14].mxu1 }
 0x2bb   :  { %v9330_v56 = vpop.f32.mrb[15].mxu1 }
 0x2bc   :  { %v9331_v0 = vadd.f32 %v9330_v56, %v9329_v32 }
 0x2be   :  { %v2624_v55 = vadd.f32 %v9331_v0, %v2516_v26 }
 0x2d1   :  { %v9364_v42 = vpop.f32.mrb[16].mxu0 }
 0x2d2   :  { %v9365_v49 = vpop.f32.mrb[17].mxu0 }
 0x2d3   :  { %v9366_v39 = vadd.f32 %v9365_v49, %v9364_v42 }
 0x2d5   :  { %v2792_v32 = vadd.f32 %v9366_v39, %v2624_v55 }
 0x2da   :  { %v9399_v26 = vpop.f32.mrb[16].mxu1 }
 0x2db   :  { %v9400_v56 = vpop.f32.mrb[17].mxu1 }
 0x2dc   :  { %v9401_v0 = vadd.f32 %v9400_v56, %v9399_v26 }
 0x2de   :  { %v2896_v38 = vadd.f32 %v9401_v0, %v2792_v32  ;;  %v4052_v0 = vld [vmem:[#allocation8 + $0x60] sm:$0xff] }
 0x2e5   :  { %v3354_v13 = vpop.f32.mrb[18].mxu0 }
 0x2e6   :  { %v10277_v48 = vpop.f32.mrb[19].mxu0 }
 0x2ee   :  { %v3129_v31 = vpop.f32.mrb[18].mxu1 }
 0x2ef   :  { %v13704_v50 = vadd.f32 %v3129_v31, %v2896_v38  ;;  %v10256_v45 = vpop.f32.mrb[19].mxu1 }
 0x2f1   :  { %v13705_v12 = vadd.f32 %v13704_v50, %v3354_v13  ;;  %v4047_v13 = vld [vmem:[#allocation8 + $0x38] sm:$0xff] }
 0x2f3   :  { %v3359_v58 = vmul.f32 %v13705_v12, %v13705_v12  ;;  %v3358_v5 = vmul.f32 0.5, %v13705_v12 }
 0x2f5   :  { %v3360_v19 = vmul.f32 %v13705_v12, %v3359_v58  ;;  %v18279_v58 = vand.u32 4294901760, %v15744_v47  ;;  %v18285_v47 = vand.u32 4294901760, %v15761_v20  ;;  %v4045_v20 = vld [vmem:[#allocation8 + $0x28] sm:$0xff] }
 0x2f7   :  { %v3361_v8 = vmul.f32 0.044715, %v3360_v19 }
 0x2f9   :  { %v3362_v61 = vadd.f32 %v13705_v12, %v3361_v8  ;;  %v18280_v12 = vand.u32 4294901760, %v15746_v63  ;;  %v18286_v63 = vand.u32 4294901760, %v15766_v59  ;;  %v4079_v59 = vand.u32 4294901760, %v4045_v20 }
 0x2fb   :  { %v3363_v33 = vmul.f32 0.7978846, %v3362_v61  ;;  %v18273_v61 = vand.u32 4294901760, %v15732_v29  ;;  %v18278_v29 = vand.u32 4294901760, %v15742_v53  ;;  %v18284_v53 = vand.u32 4294901760, %v15756_v9  ;;  %v4044_v9 = vld [vmem:[#allocation8 + $0x20] sm:$0xff] }
 0x2fd   :  { %13818 = vtanh.f32 %v3363_v33 }
 0x307   :  { %v13819_v7 = vpop.eup %13818 }
 0x308   :  { %v3365_v42 = vadd.f32 1.0, %v13819_v7  ;;  %v18272_v7 = vand.u32 4294901760, %v15730_v35  ;;  %v18276_v35 = vand.u32 4294901760, %v15738_v2  ;;  %v18282_v2 = vand.u32 4294901760, %v15750_v25 }
 0x30a   :  { %v3366_v55 = vmul.f32 %v3365_v42, %v3358_v5  ;;  %v18271_v5 = vand.u32 4294901760, %v15728_v16  ;;  %v18275_v16 = vand.u32 4294901760, %v15736_v43  ;;  %v18281_v43 = vand.u32 4294901760, %v15748_v3  ;;  %v4043_v3 = vld [vmem:[#allocation8 + $0x18] sm:$0xff]  ;;  %v4053_v42 = vld [vmem:[#allocation8 + $0x68] sm:$0xff] }
 0x30c   :  { %v15862_v49 = vand.u32 4294901760, %v3366_v55  ;;  %v12649_v33 = vpack.c.bf16 %v18272_v7, %v18271_v5  ;;  %v12655_v19 = vpack.c.bf16 %v18276_v35, %v18275_v16  ;;  %v12664_v45 = vpack.c.bf16 %v18282_v2, %v18281_v43  ;;  %v4054_v5 = vld [vmem:[#allocation8 + $0x70] sm:$0xff] }
 0x30e   :  { %v3472_v39 = vsub.f32 %v3366_v55, %v15862_v49  ;;  %v4100_v55 = vand.u32 4294901760, %v4052_v0 }
 0x310   :  { %v3473_v32 = vand.u32 4294901760, %v3472_v39 }
 0x312   :  { %v3474_v48 = vsub.f32 %v3472_v39, %v3473_v32 }
 0x314   :  { %v3475_v26 = vand.u32 4294901760, %v3474_v48 }
 0x316   :  { %10311 = vmatmul.mubr.f32.vlgmr.msra.gmra.mrb[20].mxu1 %v3475_v26 }
 0x317   :  { %12578 = vmatpush3.bf16.msra.mxu1 %v15784_v18  ;;  %10345 = vmatprep.mubr.msk.f32.mxu1 %vm14103_vm1, %v14104_v44  ;;  %v18274_v18 = vand.u32 4294901760, %v15734_v10 }
 0x318   :  { %12579 = vmatprep.subr.bf16.mxu1 %v14102_v17 }
 0x319   :  { %v12652_v8 = vpack.c.bf16 %v18274_v18, %v18273_v61 }
 0x31b   :  { %12581 = vmatpush3.bf16.msra.mxu1 %v15788_v36  ;;  %v18277_v36 = vand.u32 4294901760, %v15740_v11  ;;  %v18283_v11 = vand.u32 4294901760, %v15754_v21 }
 0x31c   :  { %12582 = vmatprep.subr.bf16.mxu1 %v14102_v17 }
 0x31d   :  { %v12658_v10 = vpack.c.bf16 %v18278_v29, %v18277_v36  ;;  %v12667_v50 = vpack.c.bf16 %v18284_v53, %v18283_v11 }
 0x31f   :  { %12584 = vmatpush3.bf16.msra.mxu1 %v15798_v62  ;;  %v12661_v62 = vpack.c.bf16 %v18280_v12, %v18279_v58  ;;  %v4106_v12 = vand.u32 4294901760, %v4054_v5 }
 0x320   :  { %12585 = vmatprep.subr.bf16.mxu1 %v14102_v17 }
 0x323   :  { %12587 = vmatpush3.bf16.msra.mxu1 %v15808_v41  ;;  %v12670_v41 = vpack.c.bf16 %v18286_v63, %v18285_v47 }
 0x324   :  { %12588 = vmatprep.subr.bf16.mxu1 %v14102_v17 }
 0x327   :  { %12590 = vmatpush3.bf16.msra.mxu1 %v15818_v4  ;;  %v4046_v4 = vld [vmem:[#allocation8 + $0x30] sm:$0xff] }
 0x328   :  { %12591 = vmatprep.subr.bf16.mxu1 %v14102_v17  ;;  %v4082_v38 = vand.u32 4294901760, %v4046_v4 }
 0x32a   :  { %v16014_v61 = vsub.f32 %v4046_v4, %v4082_v38 }
 0x32b   :  { %12593 = vmatpush3.bf16.msra.mxu1 %v15828_v27  ;;  %v4085_v27 = vand.u32 4294901760, %v4047_v13 }
 0x32c   :  { %12594 = vmatprep.subr.bf16.mxu1 %v14102_v17 }
 0x32d   :  { %v16016_v18 = vsub.f32 %v4047_v13, %v4085_v27 }
 0x32f   :  { %12596 = vmatpush3.bf16.msra.mxu1 %v15838_v14  ;;  %v4048_v14 = vld [vmem:[#allocation8 + $0x40] sm:$0xff] }
 0x330   :  { %12597 = vmatprep.subr.bf16.mxu1 %v14102_v17 }
 0x333   :  { %12599 = vmatpush3.bf16.msra.mxu1 %v12598_v6  ;;  %v4049_v6 = vld [vmem:[#allocation8 + $0x48] sm:$0xff] }
 0x334   :  { %12600 = vmatprep.subr.bf16.mxu1 %v14102_v17 }
 0x336   :  { %10346 = vmatmul.mubr.f32.vlgmr.msra.gmra.mrb[20].mxu1 %v15862_v49 }
 0x337   :  { %12602 = vmatpush3.bf16.msra.mxu1 %v12601_v37  ;;  %10380 = vmatprep.mubr.msk.f32.mxu1 %vm14103_vm1, %v14104_v44  ;;  %v4088_v37 = vand.u32 4294901760, %v4048_v14 }
 0x338   :  { %12603 = vmatprep.subr.bf16.mxu1 %v14102_v17 }
 0x339   :  { %v16018_v16 = vsub.f32 %v4048_v14, %v4088_v37 }
 0x33b   :  { %12605 = vmatpush3.bf16.msra.mxu1 %v12604_v60  ;;  %v4091_v60 = vand.u32 4294901760, %v4049_v6 }
 0x33c   :  { %12606 = vmatprep.subr.bf16.mxu1 %v14102_v17 }
 0x33d   :  { %v16020_v35 = vsub.f32 %v4049_v6, %v4091_v60 }
 0x33f   :  { %12608 = vmatpush3.bf16.msra.mxu1 %v12607_v40  ;;  %v15990_v40 = vpack.c.bf16 %v4085_v27, %v4082_v38  ;;  %v18006_v38 = vand.u32 4294901760, %v16014_v61  ;;  %v18005_v27 = vand.u32 4294901760, %v16016_v18 }
 0x340   :  { %12609 = vmatprep.subr.bf16.mxu1 %v14102_v17 }
 0x341   :  { %v4200_v6 = vsub.f32 %v16014_v61, %v18006_v38 }
 0x343   :  { %12611 = vmatpush3.bf16.msra.mxu1 %v12610_v52  ;;  %v15994_v52 = vpack.c.bf16 %v4091_v60, %v4088_v37  ;;  %v4207_v37 = vsub.f32 %v16016_v18, %v18005_v27  ;;  %v4201_v60 = vand.u32 4294901760, %v4200_v6 }
 0x344   :  { %12612 = vmatprep.subr.bf16.mxu1 %v14102_v17 }
 0x347   :  { %12614 = vmatpush3.bf16.msra.mxu1 %v12613_v24  ;;  %v4050_v24 = vld [vmem:[#allocation8 + $0x50] sm:$0xff] }
 0x348   :  { %12615 = vmatprep.subr.bf16.mxu1 %v14102_v17 }
 0x34b   :  { %12617 = vmatpush3.bf16.msra.mxu1 %v12616_v54  ;;  %v4051_v54 = vld [vmem:[#allocation8 + $0x58] sm:$0xff] }
 0x34c   :  { %12618 = vmatprep.subr.bf16.mxu1 %v14102_v17 }
 0x34f   :  { %12620 = vmatpush3.bf16.msra.mxu1 %v12619_v51  ;;  %v4094_v51 = vand.u32 4294901760, %v4050_v24 }
 0x350   :  { %12621 = vmatprep.subr.bf16.mxu1 %v14102_v17 }
 0x353   :  { %12623 = vmatpush3.bf16.msra.mxu1 %v12622_v28  ;;  %v4097_v28 = vand.u32 4294901760, %v4051_v54 }
 0x354   :  { %12624 = vmatprep.subr.bf16.mxu1 %v14102_v17 }
 0x355   :  { %v15998_v56 = vpack.c.bf16 %v4097_v28, %v4094_v51  ;;  %v16024_v36 = vsub.f32 %v4051_v54, %v4097_v28  ;;  %v18004_v54 = vand.u32 4294901760, %v16018_v16 }
 0x356   :  { %10381 = vmatmul.mubr.f32.vlgmr.msra.gmra.mrb[20].mxu1 %v3472_v39 }
 0x357   :  { %12626 = vmatpush3.bf16.msra.mxu1 %v15704_v57  ;;  %10415 = vmatprep.mubr.msk.f32.mxu1 %vm14103_vm1, %v14104_v44 }
 0x358   :  { %12627 = vmatprep.subr.bf16.mxu1 %v14102_v17 }
 0x35b   :  { %12629 = vmatpush3.bf16.msra.mxu1 %v15708_v46 }
 0x35c   :  { %12630 = vmatprep.subr.bf16.mxu1 %v14102_v17 }
 0x35f   :  { %12632 = vmatpush3.bf16.msra.mxu1 %v15712_v23 }
 0x360   :  { %12633 = vmatprep.subr.bf16.mxu1 %v14102_v17 }
 0x363   :  { %12635 = vmatpush3.bf16.msra.mxu1 %v15716_v1 }
 0x364   :  { %12636 = vmatprep.subr.bf16.mxu1 %v14102_v17 }
 0x367   :  { %12638 = vmatpush3.bf16.msra.mxu1 %v15720_v22 }
 0x368   :  { %12639 = vmatprep.subr.bf16.mxu1 %v14102_v17 }
 0x36b   :  { %12641 = vmatpush3.bf16.msra.mxu1 %v15724_v15 }
 0x36c   :  { %12642 = vmatprep.subr.bf16.mxu1 %v14102_v17 }
 0x36f   :  { %12644 = vmatpush3.bf16.msra.mxu1 %v15752_v30 }
 0x370   :  { %12645 = vmatprep.subr.bf16.mxu1 %v14102_v17 }
 0x373   :  { %12647 = vmatpush3.bf16.msra.mxu1 %v15764_v34 }
 0x374   :  { %12648 = vmatprep.subr.bf16.mxu1 %v14102_v17 }
 0x376   :  { %10416 = vmatmul.mubr.f32.vlgmr.msra.gmra.mrb[20].mxu1 %v3473_v32 }
 0x377   :  { %12650 = vmatpush3.bf16.msra.mxu1 %v12649_v33  ;;  %10450 = vmatprep.mubr.msk.f32.mxu1 %vm14103_vm1, %v14104_v44  ;;  %v16012_v33 = vsub.f32 %v4045_v20, %v4079_v59 }
 0x378   :  { %12651 = vmatprep.subr.bf16.mxu1 %v14102_v17 }
 0x37b   :  { %12653 = vmatpush3.bf16.msra.mxu1 %v12652_v8  ;;  %v4055_v8 = vld [vmem:[#allocation8 + $0x78] sm:$0xff] }
 0x37c   :  { %12654 = vmatprep.subr.bf16.mxu1 %v14102_v17 }
 0x37f   :  { %12656 = vmatpush3.bf16.msra.mxu1 %v12655_v19  ;;  %v16022_v19 = vsub.f32 %v4050_v24, %v4094_v51  ;;  %v4208_v24 = vand.u32 4294901760, %v4207_v37  ;;  %v18003_v51 = vand.u32 4294901760, %v16020_v35 }
 0x380   :  { %12657 = vmatprep.subr.bf16.mxu1 %v14102_v17 }
 0x381   :  { %v12730_v28 = vpack.c.bf16 %v4208_v24, %v4201_v60 }
 0x383   :  { %12659 = vmatpush3.bf16.msra.mxu1 %v12658_v10  ;;  %v16028_v10 = vsub.f32 %v4052_v0, %v4100_v55  ;;  %v4214_v0 = vsub.f32 %v16018_v16, %v18004_v54 }
 0x384   :  { %12660 = vmatprep.subr.bf16.mxu1 %v14102_v17 }
 0x387   :  { %12662 = vmatpush3.bf16.msra.mxu1 %v12661_v62  ;;  %v4109_v62 = vand.u32 4294901760, %v4055_v8 }
 0x388   :  { %12663 = vmatprep.subr.bf16.mxu1 %v14102_v17 }
 0x389   :  { %v16038_v11 = vpack.c.bf16 %v4109_v62, %v4106_v12  ;;  %v16040_v53 = vsub.f32 %v4055_v8, %v4109_v62  ;;  %v18001_v8 = vand.u32 4294901760, %v16024_v36 }
 0x38b   :  { %12665 = vmatpush3.bf16.msra.mxu1 %v12664_v45  ;;  %v16035_v45 = vsub.f32 %v4054_v5, %v4106_v12  ;;  %v18002_v5 = vand.u32 4294901760, %v16022_v19 }
 0x38c   :  { %12666 = vmatprep.subr.bf16.mxu1 %v14102_v17 }
 0x38d   :  { %v4228_v62 = vsub.f32 %v16022_v19, %v18002_v5 }
 0x38f   :  { %12668 = vmatpush3.bf16.msra.mxu1 %v12667_v50 }
 0x390   :  { %12669 = vmatprep.subr.bf16.mxu1 %v14102_v17 }
 0x393   :  { %12671 = vmatpush3.bf16.msra.mxu1 %v12670_v41 }
 0x394   :  { %12672 = vmatprep.subr.bf16.mxu1 %v14102_v17 }
 0x396   :  { %10451 = vmatmul.mubr.f32.vlgmr.msra.gmra.mrb[20].mxu1 %v15862_v49 }
 0x397   :  { %12674 = vmatpush3.bf16.msra.mxu1 %v15704_v57  ;;  %10485 = vmatprep.mubr.msk.f32.mxu1 %vm14103_vm1, %v14104_v44  ;;  %v4040_v57 = vld [vmem:[#allocation8] sm:$0xff] }
 0x398   :  { %12675 = vmatprep.subr.bf16.mxu1 %v14102_v17 }
 0x39b   :  { %12677 = vmatpush3.bf16.msra.mxu1 %v15708_v46  ;;  %v4041_v46 = vld [vmem:[#allocation8 + $0x8] sm:$0xff] }
 0x39c   :  { %12678 = vmatprep.subr.bf16.mxu1 %v14102_v17 }
 0x39f   :  { %12680 = vmatpush3.bf16.msra.mxu1 %v15712_v23  ;;  %v4064_v23 = vand.u32 4294901760, %v4040_v57 }
 0x3a0   :  { %12681 = vmatprep.subr.bf16.mxu1 %v14102_v17 }
 0x3a1   :  { %v16002_v39 = vsub.f32 %v4040_v57, %v4064_v23 }
 0x3a3   :  { %12683 = vmatpush3.bf16.msra.mxu1 %v15716_v1  ;;  %v4067_v1 = vand.u32 4294901760, %v4041_v46  ;;  %v4157_v43 = vand.u32 4294901760, %v16002_v39 }
 0x3a4   :  { %12684 = vmatprep.subr.bf16.mxu1 %v14102_v17 }
 0x3a5   :  { %v16004_v32 = vsub.f32 %v4041_v46, %v4067_v1  ;;  %v4158_v50 = vsub.f32 %v16002_v39, %v4157_v43 }
 0x3a7   :  { %12686 = vmatpush3.bf16.msra.mxu1 %v15720_v22  ;;  %v15978_v22 = vpack.c.bf16 %v4067_v1, %v4064_v23  ;;  %v4164_v2 = vand.u32 4294901760, %v16004_v32  ;;  %v4159_v57 = vand.u32 4294901760, %v4158_v50  ;;  %v4235_v50 = vsub.f32 %v16024_v36, %v18001_v8 }
 0x3a8   :  { %12687 = vmatprep.subr.bf16.mxu1 %v14102_v17 }
 0x3a9   :  { %12698 = vmatpush3.bf16.msra.mxu0 %v15978_v22  ;;  %v4165_v47 = vsub.f32 %v16004_v32, %v4164_v2 }
 0x3aa   :  { %12699 = vmatprep.subr.bf16.mxu0 %v14102_v17 }
 0x3ab   :  { %12689 = vmatpush3.bf16.msra.mxu1 %v15724_v15  ;;  %v4042_v15 = vld [vmem:[#allocation8 + $0x10] sm:$0xff]  ;;  %v4166_v46 = vand.u32 4294901760, %v4165_v47  ;;  %v4229_v47 = vand.u32 4294901760, %v4228_v62 }
 0x3ac   :  { %12690 = vmatprep.subr.bf16.mxu1 %v14102_v17  ;;  %v4070_v25 = vand.u32 4294901760, %v4042_v15 }
 0x3ae   :  { %v16006_v48 = vsub.f32 %v4042_v15, %v4070_v25  ;;  %v16058_v15 = vpack.c.bf16 %v4166_v46, %v4159_v57  ;;  %v4236_v57 = vand.u32 4294901760, %v4235_v50  ;;  %v18000_v46 = vand.u32 4294901760, %v16028_v10 }
 0x3af   :  { %12692 = vmatpush3.bf16.msra.mxu1 %v15752_v30  ;;  %v4073_v30 = vand.u32 4294901760, %v4043_v3  ;;  %v12754_v50 = vpack.c.bf16 %v16016_v18, %v16014_v61 }
 0x3b0   :  { %12693 = vmatprep.subr.bf16.mxu1 %v14102_v17  ;;  %v4171_v63 = vand.u32 4294901760, %v16006_v48 }
 0x3b1   :  { %v15982_v21 = vpack.c.bf16 %v4073_v30, %v4070_v25  ;;  %v16008_v26 = vsub.f32 %v4043_v3, %v4073_v30 }
 0x3b2   :  { %v4172_v23 = vsub.f32 %v16006_v48, %v4171_v63 }
 0x3b3   :  { %12695 = vmatpush3.bf16.msra.mxu1 %v15764_v34  ;;  %12701 = vmatpush3.bf16.msra.mxu0 %v15982_v21  ;;  %v4076_v34 = vand.u32 4294901760, %v4044_v9  ;;  %v4178_v41 = vand.u32 4294901760, %v16008_v26 }
 0x3b4   :  { %12840 = vmatprep.subr.bf16.mxu1 %v14102_v17  ;;  %12702 = vmatprep.subr.bf16.mxu0 %v14102_v17  ;;  %v4173_v3 = vand.u32 4294901760, %v4172_v23 }
 0x3b5   :  { %v15986_v31 = vpack.c.bf16 %v4079_v59, %v4076_v34  ;;  %v16010_v7 = vsub.f32 %v4044_v9, %v4076_v34  ;;  %v4179_v1 = vsub.f32 %v16008_v26, %v4178_v41  ;;  %v18007_v9 = vand.u32 4294901760, %v16012_v33 }
 0x3b6   :  { %10486 = vmatmul.mubr.f32.vlgmr.msra.gmra.mrb[20].mxu1 %v15862_v49  ;;  %v4103_v49 = vand.u32 4294901760, %v4053_v42 }
 0x3b7   :  { %10730 = vmatprep.mubr.msk.f32.mxu1 %vm14103_vm1, %v14104_v44  ;;  %12704 = vmatpush3.bf16.msra.mxu0 %v15986_v31  ;;  %v4180_v25 = vand.u32 4294901760, %v4179_v1  ;;  %v18008_v30 = vand.u32 4294901760, %v16010_v7  ;;  %v4193_v59 = vsub.f32 %v16012_v33, %v18007_v9  ;;  %v12736_v1 = vpack.c.bf16 %v4236_v57, %v4229_v47 }
 0x3b8   :  { %12705 = vmatprep.subr.bf16.mxu0 %v14102_v17  ;;  %v16026_v29 = vpack.c.bf16 %v4103_v49, %v4100_v55  ;;  %v16030_v58 = vsub.f32 %v4053_v42, %v4103_v49  ;;  %v4221_v42 = vsub.f32 %v16020_v35, %v18003_v51  ;;  %v4215_v55 = vand.u32 4294901760, %v4214_v0 }
 0x3b9   :  { %v16062_v20 = vpack.c.bf16 %v4180_v25, %v4173_v3  ;;  %v4186_v34 = vsub.f32 %v16010_v7, %v18008_v30  ;;  %v4194_v13 = vand.u32 4294901760, %v4193_v59  ;;  %v4242_v3 = vsub.f32 %v16028_v10, %v18000_v46 }
 0x3ba   :  { %v4222_v49 = vand.u32 4294901760, %v4221_v42  ;;  %v17999_v23 = vand.u32 4294901760, %v16030_v58  ;;  %v12751_v62 = vpack.c.bf16 %v16012_v33, %v16010_v7  ;;  %v12757_v47 = vpack.c.bf16 %v16020_v35, %v16018_v16 }
 0x3bb   :  { %12707 = vmatpush3.bf16.msra.mxu0 %v15990_v40  ;;  %v4187_v4 = vand.u32 4294901760, %v4186_v34  ;;  %v4243_v34 = vand.u32 4294901760, %v4242_v3  ;;  %v12760_v57 = vpack.c.bf16 %v16024_v36, %v16022_v19  ;;  %v12763_v3 = vpack.c.bf16 %v16030_v58, %v16028_v10 }
 0x3bc   :  { %12708 = vmatprep.subr.bf16.mxu0 %v14102_v17  ;;  %v12733_v12 = vpack.c.bf16 %v4222_v49, %v4215_v55  ;;  %v4249_v25 = vsub.f32 %v16030_v58, %v17999_v23  ;;  %v12745_v55 = vpack.c.bf16 %v16004_v32, %v16002_v39  ;;  %v12748_v49 = vpack.c.bf16 %v16008_v26, %v16006_v48 }
 0x3bd   :  { %v16072_v14 = vpack.c.bf16 %v4194_v13, %v4187_v4  ;;  %v17998_v4 = vand.u32 4294901760, %v16035_v45  ;;  %v17997_v13 = vand.u32 4294901760, %v16040_v53  ;;  %v18287_v39 = vand.u32 4294901760, %v16010_v7 }
 0x3be   :  { %v4250_v59 = vand.u32 4294901760, %v4249_v25  ;;  %v12766_v25 = vpack.c.bf16 %v16040_v53, %v16035_v45  ;;  %v18288_v32 = vand.u32 4294901760, %v16012_v33  ;;  %v18290_v48 = vand.u32 4294901760, %v16016_v18 }
 0x3bf   :  { %12710 = vmatpush3.bf16.msra.mxu0 %v15994_v52  ;;  %v4256_v37 = vsub.f32 %v16035_v45, %v17998_v4  ;;  %v4263_v60 = vsub.f32 %v16040_v53, %v17997_v13  ;;  %v18293_v7 = vand.u32 4294901760, %v16022_v19  ;;  %v18294_v33 = vand.u32 4294901760, %v16024_v36  ;;  %v4716_v19 = vld [vmem:[#allocation10 + $0x18] sm:$0xff] }
 0x3c0   :  { %12711 = vmatprep.subr.bf16.mxu0 %v14102_v17  ;;  %v12739_v6 = vpack.c.bf16 %v4250_v59, %v4243_v34  ;;  %v8764_v34 = vld [vmem:[%s17825_s4] ss:$0 sm:$0xff]  ;;  %v18296_v18 = vand.u32 4294901760, %v16030_v58  ;;  %v4717_v58 = vld [vmem:[#allocation10 + $0x20] sm:$0xff] }
 0x3c1   :  { %v4257_v24 = vand.u32 4294901760, %v4256_v37  ;;  %v4264_v0 = vand.u32 4294901760, %v4263_v60 }
 0x3c3   :  { %12713 = vmatpush3.bf16.msra.mxu0 %v15998_v56  ;;  %v12742_v42 = vpack.c.bf16 %v4264_v0, %v4257_v24 }
 0x3c4   :  { %12714 = vmatprep.subr.bf16.mxu0 %v14102_v17 }
 0x3c7   :  { %12716 = vmatpush3.bf16.msra.mxu0 %v16026_v29 }
 0x3c8   :  { %12717 = vmatprep.subr.bf16.mxu0 %v14102_v17 }
 0x3cb   :  { %12719 = vmatpush3.bf16.msra.mxu0 %v16038_v11 }
 0x3cc   :  { %12720 = vmatprep.subr.bf16.mxu0 %v14102_v17 }
 0x489   :  { %v4027_v59 = vpop.f32.mrb[20].mxu1 }
 0x48a   :  { %v13706_v37 = vadd.f32 %v8764_v34, %v4027_v59  ;;  %v10487_v60 = vpop.f32.mrb[21].mxu1 }
 0x48c   :  { %v4032_v24 = vmul.f32 %v13706_v37, %v13706_v37  ;;  %v4031_v8 = vmul.f32 0.5, %v13706_v37 }
 0x48e   :  { %v4033_v0 = vmul.f32 %v13706_v37, %v4032_v24 }
 0x490   :  { %v4034_v13 = vmul.f32 0.044715, %v4033_v0 }
 0x492   :  { %v4035_v4 = vadd.f32 %v13706_v37, %v4034_v13  ;;  %v4723_v13 = vld [vmem:[#allocation10 + $0x50] sm:$0xff] }
 0x493   :  { %v4727_v37 = vld [vmem:[#allocation10 + $0x70] sm:$0xff] }
 0x494   :  { %v4036_v23 = vmul.f32 0.7978846, %v4035_v4 }
 0x496   :  { %13820 = vtanh.f32 %v4036_v23 }
 0x4a0   :  { %v13821_v46 = vpop.eup %13820 }
 0x4a1   :  { %v4038_v5 = vadd.f32 1.0, %v13821_v46  ;;  %v4722_v46 = vld [vmem:[#allocation10 + $0x48] sm:$0xff] }
 0x4a3   :  { %v4039_v51 = vmul.f32 %v4038_v5, %v4031_v8 }
 0x4a5   :  { %v16131_v54 = vand.u32 4294901760, %v4039_v51 }
 0x4a7   :  { %v4145_v27 = vsub.f32 %v4039_v51, %v16131_v54  ;;  %v4720_v51 = vld [vmem:[#allocation10 + $0x38] sm:$0xff] }
 0x4a8   :  { %v4758_v5 = vand.u32 4294901760, %v4720_v51 }
 0x4a9   :  { %v4146_v38 = vand.u32 4294901760, %v4145_v27 }
 0x4ab   :  { %v4147_v9 = vsub.f32 %v4145_v27, %v4146_v38 }
 0x4ad   :  { %v4148_v30 = vand.u32 4294901760, %v4147_v9 }
 0x4af   :  { %10521 = vmatmul.mubr.f32.vlgmr.msra.gmra.mrb[20].mxu0 %v4148_v30  ;;  %v12796_v30 = vpack.c.bf16 %v4178_v41, %v4171_v63  ;;  %v18291_v63 = vand.u32 4294901760, %v16018_v16  ;;  %v18292_v41 = vand.u32 4294901760, %v16020_v35  ;;  %v18297_v16 = vand.u32 4294901760, %v16035_v45  ;;  %v4718_v45 = vld [vmem:[#allocation10 + $0x28] sm:$0xff] }
 0x4b0   :  { %12722 = vmatpush3.bf16.msra.mxu0 %v16058_v15  ;;  %10555 = vmatprep.mubr.msk.f32.mxu0 %vm14103_vm1, %v14104_v44  ;;  %v12793_v15 = vpack.c.bf16 %v4164_v2, %v4157_v43  ;;  %v12799_v43 = vpack.c.bf16 %v18288_v32, %v18287_v39  ;;  %v18289_v2 = vand.u32 4294901760, %v16014_v61  ;;  %v18295_v61 = vand.u32 4294901760, %v16028_v10 }
 0x4b1   :  { %12723 = vmatprep.subr.bf16.mxu0 %v14102_v17  ;;  %v12805_v9 = vpack.c.bf16 %v18292_v41, %v18291_v63  ;;  %v18298_v35 = vand.u32 4294901760, %v16040_v53  ;;  %v4752_v53 = vand.u32 4294901760, %v4718_v45  ;;  %v4779_v41 = vand.u32 4294901760, %v4727_v37 }
 0x4b2   :  { %v12802_v26 = vpack.c.bf16 %v18290_v48, %v18289_v2 }
 0x4b3   :  { %v16274_v24 = vsub.f32 %v4718_v45, %v4752_v53 }
 0x4b4   :  { %12725 = vmatpush3.bf16.msra.mxu0 %v16062_v20  ;;  %v12808_v20 = vpack.c.bf16 %v18294_v33, %v18293_v7 }
 0x4b5   :  { %12726 = vmatprep.subr.bf16.mxu0 %v14102_v17 }
 0x4b8   :  { %12728 = vmatpush3.bf16.msra.mxu0 %v16072_v14 }
 0x4b9   :  { %12729 = vmatprep.subr.bf16.mxu0 %v14102_v17 }
 0x4bc   :  { %12731 = vmatpush3.bf16.msra.mxu0 %v12730_v28 }
 0x4bd   :  { %12732 = vmatprep.subr.bf16.mxu0 %v14102_v17 }
 0x4c0   :  { %12734 = vmatpush3.bf16.msra.mxu0 %v12733_v12  ;;  %v4721_v12 = vld [vmem:[#allocation10 + $0x40] sm:$0xff] }
 0x4c1   :  { %12735 = vmatprep.subr.bf16.mxu0 %v14102_v17  ;;  %v4761_v23 = vand.u32 4294901760, %v4721_v12 }
 0x4c3   :  { %v16280_v39 = vsub.f32 %v4721_v12, %v4761_v23 }
 0x4c4   :  { %12737 = vmatpush3.bf16.msra.mxu0 %v12736_v1  ;;  %v4764_v1 = vand.u32 4294901760, %v4722_v46 }
 0x4c5   :  { %12738 = vmatprep.subr.bf16.mxu0 %v14102_v17 }
 0x4c6   :  { %v16256_v4 = vpack.c.bf16 %v4764_v1, %v4761_v23  ;;  %v16282_v32 = vsub.f32 %v4722_v46, %v4764_v1 }
 0x4c8   :  { %12740 = vmatpush3.bf16.msra.mxu0 %v12739_v6  ;;  %v4724_v6 = vld [vmem:[#allocation10 + $0x58] sm:$0xff] }
 0x4c9   :  { %12741 = vmatprep.subr.bf16.mxu0 %v14102_v17 }
 0x4cc   :  { %12743 = vmatpush3.bf16.msra.mxu0 %v12742_v42  ;;  %v4767_v42 = vand.u32 4294901760, %v4723_v13 }
 0x4cd   :  { %12744 = vmatprep.subr.bf16.mxu0 %v14102_v17 }
 0x4cf   :  { %10556 = vmatmul.mubr.f32.vlgmr.msra.gmra.mrb[20].mxu0 %v16131_v54 }
 0x4d0   :  { %12746 = vmatpush3.bf16.msra.mxu0 %v12745_v55  ;;  %10590 = vmatprep.mubr.msk.f32.mxu0 %vm14103_vm1, %v14104_v44  ;;  %v4770_v55 = vand.u32 4294901760, %v4724_v6 }
 0x4d1   :  { %12747 = vmatprep.subr.bf16.mxu0 %v14102_v17 }
 0x4d2   :  { %v16286_v2 = vsub.f32 %v4724_v6, %v4770_v55  ;;  %v18016_v6 = vand.u32 4294901760, %v16280_v39 }
 0x4d4   :  { %12749 = vmatpush3.bf16.msra.mxu0 %v12748_v49  ;;  %v16260_v49 = vpack.c.bf16 %v4770_v55, %v4767_v42 }
 0x4d5   :  { %12750 = vmatprep.subr.bf16.mxu0 %v14102_v17 }
 0x4d8   :  { %12752 = vmatpush3.bf16.msra.mxu0 %v12751_v62  ;;  %v4725_v62 = vld [vmem:[#allocation10 + $0x60] sm:$0xff] }
 0x4d9   :  { %12753 = vmatprep.subr.bf16.mxu0 %v14102_v17 }
 0x4dc   :  { %12755 = vmatpush3.bf16.msra.mxu0 %v12754_v50  ;;  %v4726_v50 = vld [vmem:[#allocation10 + $0x68] sm:$0xff] }
 0x4dd   :  { %12756 = vmatprep.subr.bf16.mxu0 %v14102_v17 }
 0x4e0   :  { %12758 = vmatpush3.bf16.msra.mxu0 %v12757_v47  ;;  %v4773_v47 = vand.u32 4294901760, %v4725_v62 }
 0x4e1   :  { %12759 = vmatprep.subr.bf16.mxu0 %v14102_v17 }
 0x4e4   :  { %12761 = vmatpush3.bf16.msra.mxu0 %v12760_v57  ;;  %v4776_v57 = vand.u32 4294901760, %v4726_v50 }
 0x4e5   :  { %12762 = vmatprep.subr.bf16.mxu0 %v14102_v17 }
 0x4e6   :  { %v16288_v48 = vpack.c.bf16 %v4776_v57, %v4773_v47  ;;  %v16292_v63 = vsub.f32 %v4726_v50, %v4776_v57 }
 0x4e8   :  { %12764 = vmatpush3.bf16.msra.mxu0 %v12763_v3 }
 0x4e9   :  { %12765 = vmatprep.subr.bf16.mxu0 %v14102_v17 }
 0x4ec   :  { %12767 = vmatpush3.bf16.msra.mxu0 %v12766_v25 }
 0x4ed   :  { %12768 = vmatprep.subr.bf16.mxu0 %v14102_v17 }
 0x4ef   :  { %10591 = vmatmul.mubr.f32.vlgmr.msra.gmra.mrb[20].mxu0 %v4145_v27  ;;  %v12814_v27 = vpack.c.bf16 %v18298_v35, %v18297_v16 }
 0x4f0   :  { %12770 = vmatpush3.bf16.msra.mxu0 %v15978_v22  ;;  %10625 = vmatprep.mubr.msk.f32.mxu0 %vm14103_vm1, %v14104_v44 }
 0x4f1   :  { %12771 = vmatprep.subr.bf16.mxu0 %v14102_v17 }
 0x4f4   :  { %12773 = vmatpush3.bf16.msra.mxu0 %v15982_v21 }
 0x4f5   :  { %12774 = vmatprep.subr.bf16.mxu0 %v14102_v17 }
 0x4f8   :  { %12776 = vmatpush3.bf16.msra.mxu0 %v15986_v31 }
 0x4f9   :  { %12777 = vmatprep.subr.bf16.mxu0 %v14102_v17 }
 0x4fc   :  { %12779 = vmatpush3.bf16.msra.mxu0 %v15990_v40 }
 0x4fd   :  { %12780 = vmatprep.subr.bf16.mxu0 %v14102_v17 }
 0x500   :  { %12782 = vmatpush3.bf16.msra.mxu0 %v15994_v52 }
 0x501   :  { %12783 = vmatprep.subr.bf16.mxu0 %v14102_v17 }
 0x504   :  { %12785 = vmatpush3.bf16.msra.mxu0 %v15998_v56 }
 0x505   :  { %12786 = vmatprep.subr.bf16.mxu0 %v14102_v17 }
 0x508   :  { %12788 = vmatpush3.bf16.msra.mxu0 %v16026_v29 }
 0x509   :  { %12789 = vmatprep.subr.bf16.mxu0 %v14102_v17 }
 0x50c   :  { %12791 = vmatpush3.bf16.msra.mxu0 %v16038_v11 }
 0x50d   :  { %12792 = vmatprep.subr.bf16.mxu0 %v14102_v17 }
 0x50f   :  { %10626 = vmatmul.mubr.f32.vlgmr.msra.gmra.mrb[20].mxu0 %v4146_v38  ;;  %v12811_v38 = vpack.c.bf16 %v18296_v18, %v18295_v61 }
 0x510   :  { %12794 = vmatpush3.bf16.msra.mxu0 %v12793_v15  ;;  %10660 = vmatprep.mubr.msk.f32.mxu0 %vm14103_vm1, %v14104_v44  ;;  %v16278_v15 = vsub.f32 %v4720_v51, %v4758_v5 }
 0x511   :  { %12795 = vmatprep.subr.bf16.mxu0 %v14102_v17 }
 0x514   :  { %12797 = vmatpush3.bf16.msra.mxu0 %v12796_v30  ;;  %v4728_v30 = vld [vmem:[#allocation10 + $0x78] sm:$0xff] }
 0x515   :  { %12798 = vmatprep.subr.bf16.mxu0 %v14102_v17 }
 0x518   :  { %12800 = vmatpush3.bf16.msra.mxu0 %v12799_v43  ;;  %v16284_v43 = vsub.f32 %v4723_v13, %v4767_v42  ;;  %v18015_v42 = vand.u32 4294901760, %v16282_v32 }
 0x519   :  { %12801 = vmatprep.subr.bf16.mxu0 %v14102_v17 }
 0x51a   :  { %v4894_v50 = vsub.f32 %v16282_v32, %v18015_v42 }
 0x51c   :  { %12803 = vmatpush3.bf16.msra.mxu0 %v12802_v26  ;;  %v16290_v26 = vsub.f32 %v4725_v62, %v4773_v47  ;;  %v4887_v62 = vsub.f32 %v16280_v39, %v18016_v6  ;;  %v4895_v57 = vand.u32 4294901760, %v4894_v50 }
 0x51d   :  { %12804 = vmatprep.subr.bf16.mxu0 %v14102_v17 }
 0x51e   :  { %v4888_v47 = vand.u32 4294901760, %v4887_v62 }
 0x520   :  { %12806 = vmatpush3.bf16.msra.mxu0 %v12805_v9  ;;  %v4782_v9 = vand.u32 4294901760, %v4728_v30 }
 0x521   :  { %12807 = vmatprep.subr.bf16.mxu0 %v14102_v17 }
 0x522   :  { %v16300_v61 = vpack.c.bf16 %v4782_v9, %v4779_v41  ;;  %v16302_v18 = vsub.f32 %v4728_v30, %v4782_v9  ;;  %v18013_v30 = vand.u32 4294901760, %v16286_v2 }
 0x524   :  { %12809 = vmatpush3.bf16.msra.mxu0 %v12808_v20  ;;  %v16297_v20 = vsub.f32 %v4727_v37, %v4779_v41  ;;  %v18014_v37 = vand.u32 4294901760, %v16284_v43  ;;  %v12877_v41 = vpack.c.bf16 %v4895_v57, %v4888_v47 }
 0x525   :  { %12810 = vmatprep.subr.bf16.mxu0 %v14102_v17 }
 0x526   :  { %v4901_v9 = vsub.f32 %v16284_v43, %v18014_v37 }
 0x528   :  { %12812 = vmatpush3.bf16.msra.mxu0 %v12811_v38 }
 0x529   :  { %12813 = vmatprep.subr.bf16.mxu0 %v14102_v17 }
 0x52c   :  { %12815 = vmatpush3.bf16.msra.mxu0 %v12814_v27 }
 0x52d   :  { %12816 = vmatprep.subr.bf16.mxu0 %v14102_v17 }
 0x52f   :  { %10661 = vmatmul.mubr.f32.vlgmr.msra.gmra.mrb[20].mxu0 %v16131_v54 }
 0x530   :  { %12818 = vmatpush3.bf16.msra.mxu0 %v15978_v22  ;;  %10695 = vmatprep.mubr.msk.f32.mxu0 %vm14103_vm1, %v14104_v44  ;;  %v4713_v22 = vld [vmem:[#allocation10] sm:$0xff] }
 0x531   :  { %12819 = vmatprep.subr.bf16.mxu0 %v14102_v17 }
 0x534   :  { %12821 = vmatpush3.bf16.msra.mxu0 %v15982_v21  ;;  %v4714_v21 = vld [vmem:[#allocation10 + $0x8] sm:$0xff] }
 0x535   :  { %12822 = vmatprep.subr.bf16.mxu0 %v14102_v17 }
 0x538   :  { %12824 = vmatpush3.bf16.msra.mxu0 %v15986_v31  ;;  %v4737_v31 = vand.u32 4294901760, %v4713_v22 }
 0x539   :  { %12825 = vmatprep.subr.bf16.mxu0 %v14102_v17 }
 0x53a   :  { %v16264_v3 = vsub.f32 %v4713_v22, %v4737_v31 }
 0x53c   :  { %12827 = vmatpush3.bf16.msra.mxu0 %v15990_v40  ;;  %v4740_v40 = vand.u32 4294901760, %v4714_v21  ;;  %v4830_v7 = vand.u32 4294901760, %v16264_v3 }
 0x53d   :  { %12828 = vmatprep.subr.bf16.mxu0 %v14102_v17 }
 0x53e   :  { %v16266_v25 = vsub.f32 %v4714_v21, %v4740_v40  ;;  %v4831_v38 = vsub.f32 %v16264_v3, %v4830_v7 }
 0x540   :  { %12830 = vmatpush3.bf16.msra.mxu0 %v15994_v52  ;;  %v16240_v52 = vpack.c.bf16 %v4740_v40, %v4737_v31  ;;  %v4837_v33 = vand.u32 4294901760, %v16266_v25  ;;  %v4832_v22 = vand.u32 4294901760, %v4831_v38  ;;  %v4908_v38 = vsub.f32 %v16286_v2, %v18013_v30 }
 0x541   :  { %12831 = vmatprep.subr.bf16.mxu0 %v14102_v17  ;;  %v12889_v47 = vpack.c.bf16 %v16266_v25, %v16264_v3 }
 0x542   :  { %12842 = vmatpush3.bf16.msra.mxu1 %v16240_v52  ;;  %v4838_v16 = vsub.f32 %v16266_v25, %v4837_v33  ;;  %v18300_v25 = vand.u32 4294901760, %v16274_v24 }
 0x543   :  { %12843 = vmatprep.subr.bf16.mxu1 %v14102_v17 }
 0x544   :  { %12833 = vmatpush3.bf16.msra.mxu0 %v15998_v56  ;;  %v4715_v56 = vld [vmem:[#allocation10 + $0x10] sm:$0xff]  ;;  %v4839_v21 = vand.u32 4294901760, %v4838_v16  ;;  %v4902_v16 = vand.u32 4294901760, %v4901_v9 }
 0x545   :  { %12834 = vmatprep.subr.bf16.mxu0 %v14102_v17  ;;  %v4743_v36 = vand.u32 4294901760, %v4715_v56 }
 0x547   :  { %v16268_v34 = vsub.f32 %v4715_v56, %v4743_v36  ;;  %v16320_v56 = vpack.c.bf16 %v4839_v21, %v4832_v22  ;;  %v4909_v22 = vand.u32 4294901760, %v4908_v38  ;;  %v18012_v21 = vand.u32 4294901760, %v16290_v26 }
 0x548   :  { %12836 = vmatpush3.bf16.msra.mxu0 %v16026_v29  ;;  %v4746_v29 = vand.u32 4294901760, %v4716_v19 }
 0x549   :  { %12837 = vmatprep.subr.bf16.mxu0 %v14102_v17  ;;  %v4844_v35 = vand.u32 4294901760, %v16268_v34 }
 0x54a   :  { %v16244_v10 = vpack.c.bf16 %v4746_v29, %v4743_v36  ;;  %v16270_v59 = vsub.f32 %v4716_v19, %v4746_v29 }
 0x54b   :  { %v4845_v31 = vsub.f32 %v16268_v34, %v4844_v35 }
 0x54c   :  { %12839 = vmatpush3.bf16.msra.mxu0 %v16038_v11  ;;  %12845 = vmatpush3.bf16.msra.mxu1 %v16244_v10  ;;  %v4749_v11 = vand.u32 4294901760, %v4717_v58  ;;  %v4851_v27 = vand.u32 4294901760, %v16270_v59  ;;  %v12892_v57 = vpack.c.bf16 %v16270_v59, %v16268_v34  ;;  %v18302_v34 = vand.u32 4294901760, %v16278_v15 }
 0x54d   :  { %12984 = vmatprep.subr.bf16.mxu0 %v14102_v17  ;;  %12846 = vmatprep.subr.bf16.mxu1 %v14102_v17  ;;  %v4846_v19 = vand.u32 4294901760, %v4845_v31  ;;  %v18011_v31 = vand.u32 4294901760, %v16292_v63 }
 0x54e   :  { %v16248_v14 = vpack.c.bf16 %v4752_v53, %v4749_v11  ;;  %v16272_v60 = vsub.f32 %v4717_v58, %v4749_v11  ;;  %v4852_v40 = vsub.f32 %v16270_v59, %v4851_v27  ;;  %v18019_v58 = vand.u32 4294901760, %v16274_v24 }
 0x54f   :  { %10696 = vmatmul.mubr.f32.vlgmr.msra.gmra.mrb[20].mxu0 %v16131_v54  ;;  %v4719_v54 = vld [vmem:[#allocation10 + $0x30] sm:$0xff] }
 0x550   :  { %10940 = vmatprep.mubr.msk.f32.mxu0 %vm14103_vm1, %v14104_v44  ;;  %12848 = vmatpush3.bf16.msra.mxu1 %v16248_v14  ;;  %v4755_v28 = vand.u32 4294901760, %v4719_v54  ;;  %v4853_v36 = vand.u32 4294901760, %v4852_v40  ;;  %v18020_v29 = vand.u32 4294901760, %v16272_v60  ;;  %v4866_v53 = vsub.f32 %v16274_v24, %v18019_v58 }
 0x551   :  { %12849 = vmatprep.subr.bf16.mxu1 %v14102_v17  ;;  %v12880_v40 = vpack.c.bf16 %v4909_v22, %v4902_v16  ;;  %v12895_v9 = vpack.c.bf16 %v16274_v24, %v16272_v60  ;;  %v12901_v16 = vpack.c.bf16 %v16282_v32, %v16280_v39  ;;  %v12904_v22 = vpack.c.bf16 %v16286_v2, %v16284_v43 }
 0x552   :  { %v16252_v8 = vpack.c.bf16 %v4758_v5, %v4755_v28  ;;  %v16276_v0 = vsub.f32 %v4719_v54, %v4755_v28  ;;  %v16324_v45 = vpack.c.bf16 %v4853_v36, %v4846_v19  ;;  %v4859_v11 = vsub.f32 %v16272_v60, %v18020_v29 }
 0x553   :  { %v4867_v51 = vand.u32 4294901760, %v4866_v53  ;;  %v18017_v5 = vand.u32 4294901760, %v16278_v15  ;;  %v4915_v19 = vsub.f32 %v16290_v26, %v18012_v21  ;;  %v4922_v36 = vsub.f32 %v16292_v63, %v18011_v31 }
 0x554   :  { %12851 = vmatpush3.bf16.msra.mxu1 %v16252_v8  ;;  %v4860_v54 = vand.u32 4294901760, %v4859_v11  ;;  %v18018_v28 = vand.u32 4294901760, %v16276_v0  ;;  %v12898_v38 = vpack.c.bf16 %v16278_v15, %v16276_v0  ;;  %v18299_v3 = vand.u32 4294901760, %v16272_v60 }
 0x555   :  { %12852 = vmatprep.subr.bf16.mxu1 %v14102_v17  ;;  %v4880_v23 = vsub.f32 %v16278_v15, %v18017_v5  ;;  %v4916_v11 = vand.u32 4294901760, %v4915_v19  ;;  %v4923_v53 = vand.u32 4294901760, %v4922_v36  ;;  %v12907_v19 = vpack.c.bf16 %v16292_v63, %v16290_v26 }
 0x556   :  { %v16334_v12 = vpack.c.bf16 %v4867_v51, %v4860_v54  ;;  %v4873_v46 = vsub.f32 %v16276_v0, %v18018_v28  ;;  %v18010_v54 = vand.u32 4294901760, %v16297_v20  ;;  %v18009_v51 = vand.u32 4294901760, %v16302_v18 }
 0x557   :  { %v4881_v13 = vand.u32 4294901760, %v4880_v23  ;;  %v12910_v36 = vpack.c.bf16 %v16302_v18, %v16297_v20  ;;  %v18305_v60 = vand.u32 4294901760, %v16284_v43  ;;  %v18306_v24 = vand.u32 4294901760, %v16286_v2  ;;  %v5389_v43 = vld [vmem:[#allocation11 + $0x18] sm:$0xff] }
 0x558   :  { %12854 = vmatpush3.bf16.msra.mxu1 %v16256_v4  ;;  %v4874_v1 = vand.u32 4294901760, %v4873_v46  ;;  %v12883_v46 = vpack.c.bf16 %v4923_v53, %v4916_v11  ;;  %v4929_v23 = vsub.f32 %v16297_v20, %v18010_v54  ;;  %v8765_v11 = vld [vmem:[%s17827_s6] ss:$0 sm:$0xff]  ;;  %v18308_v15 = vand.u32 4294901760, %v16292_v63  ;;  %v5390_v63 = vld [vmem:[#allocation11 + $0x20] sm:$0xff] }
 0x559   :  { %12855 = vmatprep.subr.bf16.mxu1 %v14102_v17 }
 0x55a   :  { %v12874_v55 = vpack.c.bf16 %v4881_v13, %v4874_v1  ;;  %v4936_v1 = vsub.f32 %v16302_v18, %v18009_v51  ;;  %v4930_v13 = vand.u32 4294901760, %v4929_v23 }
 0x55c   :  { %12857 = vmatpush3.bf16.msra.mxu1 %v16260_v49  ;;  %v4937_v62 = vand.u32 4294901760, %v4936_v1 }
 0x55d   :  { %12858 = vmatprep.subr.bf16.mxu1 %v14102_v17 }
 0x55e   :  { %v12886_v50 = vpack.c.bf16 %v4937_v62, %v4930_v13 }
 0x560   :  { %12860 = vmatpush3.bf16.msra.mxu1 %v16288_v48 }
 0x561   :  { %12861 = vmatprep.subr.bf16.mxu1 %v14102_v17 }
 0x564   :  { %12863 = vmatpush3.bf16.msra.mxu1 %v16300_v61 }
 0x565   :  { %12864 = vmatprep.subr.bf16.mxu1 %v14102_v17 }
 0x622   :  { %v4700_v53 = vpop.f32.mrb[20].mxu0 }
 0x623   :  { %v13707_v23 = vadd.f32 %v8765_v11, %v4700_v53  ;;  %v10697_v1 = vpop.f32.mrb[21].mxu0 }
 0x625   :  { %v4705_v13 = vmul.f32 %v13707_v23, %v13707_v23  ;;  %v4704_v30 = vmul.f32 0.5, %v13707_v23 }
 0x627   :  { %v4706_v62 = vmul.f32 %v13707_v23, %v4705_v13 }
 0x629   :  { %v4707_v51 = vmul.f32 0.044715, %v4706_v62 }
 0x62b   :  { %v4708_v54 = vadd.f32 %v13707_v23, %v4707_v51  ;;  %v5396_v51 = vld [vmem:[#allocation11 + $0x50] sm:$0xff] }
 0x62c   :  { %v5400_v23 = vld [vmem:[#allocation11 + $0x70] sm:$0xff] }
 0x62d   :  { %v4709_v31 = vmul.f32 0.7978846, %v4708_v54 }
 0x62f   :  { %13822 = vtanh.f32 %v4709_v31 }
 0x639   :  { %v13823_v21 = vpop.eup %13822 }
 0x63a   :  { %v4711_v37 = vadd.f32 1.0, %v13823_v21  ;;  %v5395_v21 = vld [vmem:[#allocation11 + $0x48] sm:$0xff] }
 0x63c   :  { %v4712_v42 = vmul.f32 %v4711_v37, %v4704_v30 }
 0x63e   :  { %v16393_v6 = vand.u32 4294901760, %v4712_v42 }
 0x640   :  { %v4818_v5 = vsub.f32 %v4712_v42, %v16393_v6  ;;  %v5393_v42 = vld [vmem:[#allocation11 + $0x38] sm:$0xff] }
 0x641   :  { %v5431_v37 = vand.u32 4294901760, %v5393_v42 }
 0x642   :  { %v4819_v28 = vand.u32 4294901760, %v4818_v5 }
 0x644   :  { %v4820_v58 = vsub.f32 %v4818_v5, %v4819_v28 }
 0x646   :  { %v4821_v29 = vand.u32 4294901760, %v4820_v58 }
 0x648   :  { %10731 = vmatmul.mubr.f32.vlgmr.msra.gmra.mrb[22].mxu1 %v4821_v29  ;;  %v12940_v29 = vpack.c.bf16 %v4851_v27, %v4844_v35  ;;  %v18303_v35 = vand.u32 4294901760, %v16280_v39  ;;  %v18304_v27 = vand.u32 4294901760, %v16282_v32  ;;  %v18309_v39 = vand.u32 4294901760, %v16297_v20  ;;  %v5391_v20 = vld [vmem:[#allocation11 + $0x28] sm:$0xff] }
 0x649   :  { %12866 = vmatpush3.bf16.msra.mxu1 %v16320_v56  ;;  %10765 = vmatprep.mubr.msk.f32.mxu1 %vm14103_vm1, %v14104_v44  ;;  %v12937_v56 = vpack.c.bf16 %v4837_v33, %v4830_v7  ;;  %v12943_v7 = vpack.c.bf16 %v18300_v25, %v18299_v3  ;;  %v18301_v33 = vand.u32 4294901760, %v16276_v0  ;;  %v18307_v0 = vand.u32 4294901760, %v16290_v26 }
 0x64a   :  { %12867 = vmatprep.subr.bf16.mxu1 %v14102_v17  ;;  %v12949_v58 = vpack.c.bf16 %v18304_v27, %v18303_v35  ;;  %v18310_v32 = vand.u32 4294901760, %v16302_v18  ;;  %v5425_v18 = vand.u32 4294901760, %v5391_v20  ;;  %v5452_v27 = vand.u32 4294901760, %v5400_v23 }
 0x64b   :  { %v12946_v59 = vpack.c.bf16 %v18302_v34, %v18301_v33 }
 0x64c   :  { %v16536_v13 = vsub.f32 %v5391_v20, %v5425_v18 }
 0x64d   :  { %12869 = vmatpush3.bf16.msra.mxu1 %v16324_v45  ;;  %v12952_v45 = vpack.c.bf16 %v18306_v24, %v18305_v60 }
 0x64e   :  { %12870 = vmatprep.subr.bf16.mxu1 %v14102_v17 }
 0x651   :  { %12872 = vmatpush3.bf16.msra.mxu1 %v16334_v12 }
 0x652   :  { %12873 = vmatprep.subr.bf16.mxu1 %v14102_v17 }
 0x655   :  { %12875 = vmatpush3.bf16.msra.mxu1 %v12874_v55 }
 0x656   :  { %12876 = vmatprep.subr.bf16.mxu1 %v14102_v17 }
 0x659   :  { %12878 = vmatpush3.bf16.msra.mxu1 %v12877_v41  ;;  %v5394_v41 = vld [vmem:[#allocation11 + $0x40] sm:$0xff] }
 0x65a   :  { %12879 = vmatprep.subr.bf16.mxu1 %v14102_v17  ;;  %v5434_v31 = vand.u32 4294901760, %v5394_v41 }
 0x65c   :  { %v16542_v3 = vsub.f32 %v5394_v41, %v5434_v31 }
 0x65d   :  { %12881 = vmatpush3.bf16.msra.mxu1 %v12880_v40  ;;  %v5437_v40 = vand.u32 4294901760, %v5395_v21 }
 0x65e   :  { %12882 = vmatprep.subr.bf16.mxu1 %v14102_v17 }
 0x65f   :  { %v16518_v54 = vpack.c.bf16 %v5437_v40, %v5434_v31  ;;  %v16544_v25 = vsub.f32 %v5395_v21, %v5437_v40 }
 0x661   :  { %12884 = vmatpush3.bf16.msra.mxu1 %v12883_v46  ;;  %v5397_v46 = vld [vmem:[#allocation11 + $0x58] sm:$0xff] }
 0x662   :  { %12885 = vmatprep.subr.bf16.mxu1 %v14102_v17 }
 0x665   :  { %12887 = vmatpush3.bf16.msra.mxu1 %v12886_v50  ;;  %v5440_v50 = vand.u32 4294901760, %v5396_v51 }
 0x666   :  { %12888 = vmatprep.subr.bf16.mxu1 %v14102_v17 }
 0x668   :  { %10766 = vmatmul.mubr.f32.vlgmr.msra.gmra.mrb[22].mxu1 %v16393_v6 }
 0x669   :  { %12890 = vmatpush3.bf16.msra.mxu1 %v12889_v47  ;;  %10800 = vmatprep.mubr.msk.f32.mxu1 %vm14103_vm1, %v14104_v44  ;;  %v5443_v47 = vand.u32 4294901760, %v5397_v46 }
 0x66a   :  { %12891 = vmatprep.subr.bf16.mxu1 %v14102_v17 }
 0x66b   :  { %v16548_v33 = vsub.f32 %v5397_v46, %v5443_v47  ;;  %v18028_v46 = vand.u32 4294901760, %v16542_v3 }
 0x66d   :  { %12893 = vmatpush3.bf16.msra.mxu1 %v12892_v57  ;;  %v16522_v57 = vpack.c.bf16 %v5443_v47, %v5440_v50 }
 0x66e   :  { %12894 = vmatprep.subr.bf16.mxu1 %v14102_v17 }
 0x671   :  { %12896 = vmatpush3.bf16.msra.mxu1 %v12895_v9  ;;  %v5398_v9 = vld [vmem:[#allocation11 + $0x60] sm:$0xff] }
 0x672   :  { %12897 = vmatprep.subr.bf16.mxu1 %v14102_v17 }
 0x675   :  { %12899 = vmatpush3.bf16.msra.mxu1 %v12898_v38  ;;  %v5399_v38 = vld [vmem:[#allocation11 + $0x68] sm:$0xff] }
 0x676   :  { %12900 = vmatprep.subr.bf16.mxu1 %v14102_v17 }
 0x679   :  { %12902 = vmatpush3.bf16.msra.mxu1 %v12901_v16  ;;  %v5446_v16 = vand.u32 4294901760, %v5398_v9 }
 0x67a   :  { %12903 = vmatprep.subr.bf16.mxu1 %v14102_v17 }
 0x67d   :  { %12905 = vmatpush3.bf16.msra.mxu1 %v12904_v22  ;;  %v5449_v22 = vand.u32 4294901760, %v5399_v38 }
 0x67e   :  { %12906 = vmatprep.subr.bf16.mxu1 %v14102_v17 }
 0x67f   :  { %v16550_v34 = vpack.c.bf16 %v5449_v22, %v5446_v16  ;;  %v16554_v35 = vsub.f32 %v5399_v38, %v5449_v22 }
 0x681   :  { %12908 = vmatpush3.bf16.msra.mxu1 %v12907_v19 }
 0x682   :  { %12909 = vmatprep.subr.bf16.mxu1 %v14102_v17 }
 0x685   :  { %12911 = vmatpush3.bf16.msra.mxu1 %v12910_v36 }
 0x686   :  { %12912 = vmatprep.subr.bf16.mxu1 %v14102_v17 }
 0x688   :  { %10801 = vmatmul.mubr.f32.vlgmr.msra.gmra.mrb[22].mxu1 %v4818_v5  ;;  %v12958_v5 = vpack.c.bf16 %v18310_v32, %v18309_v39 }
 0x689   :  { %12914 = vmatpush3.bf16.msra.mxu1 %v16240_v52  ;;  %10835 = vmatprep.mubr.msk.f32.mxu1 %vm14103_vm1, %v14104_v44 }
 0x68a   :  { %12915 = vmatprep.subr.bf16.mxu1 %v14102_v17 }
 0x68d   :  { %12917 = vmatpush3.bf16.msra.mxu1 %v16244_v10 }
 0x68e   :  { %12918 = vmatprep.subr.bf16.mxu1 %v14102_v17 }
 0x691   :  { %12920 = vmatpush3.bf16.msra.mxu1 %v16248_v14 }
 0x692   :  { %12921 = vmatprep.subr.bf16.mxu1 %v14102_v17 }
 0x695   :  { %12923 = vmatpush3.bf16.msra.mxu1 %v16252_v8 }
 0x696   :  { %12924 = vmatprep.subr.bf16.mxu1 %v14102_v17 }
 0x699   :  { %12926 = vmatpush3.bf16.msra.mxu1 %v16256_v4 }
 0x69a   :  { %12927 = vmatprep.subr.bf16.mxu1 %v14102_v17 }
 0x69d   :  { %12929 = vmatpush3.bf16.msra.mxu1 %v16260_v49 }
 0x69e   :  { %12930 = vmatprep.subr.bf16.mxu1 %v14102_v17 }
 0x6a1   :  { %12932 = vmatpush3.bf16.msra.mxu1 %v16288_v48 }
 0x6a2   :  { %12933 = vmatprep.subr.bf16.mxu1 %v14102_v17 }
 0x6a5   :  { %12935 = vmatpush3.bf16.msra.mxu1 %v16300_v61 }
 0x6a6   :  { %12936 = vmatprep.subr.bf16.mxu1 %v14102_v17 }
 0x6a8   :  { %10836 = vmatmul.mubr.f32.vlgmr.msra.gmra.mrb[22].mxu1 %v4819_v28  ;;  %v12955_v28 = vpack.c.bf16 %v18308_v15, %v18307_v0 }
 0x6a9   :  { %12938 = vmatpush3.bf16.msra.mxu1 %v12937_v56  ;;  %10870 = vmatprep.mubr.msk.f32.mxu1 %vm14103_vm1, %v14104_v44  ;;  %v16540_v56 = vsub.f32 %v5393_v42, %v5431_v37 }
 0x6aa   :  { %12939 = vmatprep.subr.bf16.mxu1 %v14102_v17 }
 0x6ad   :  { %12941 = vmatpush3.bf16.msra.mxu1 %v12940_v29  ;;  %v5401_v29 = vld [vmem:[#allocation11 + $0x78] sm:$0xff] }
 0x6ae   :  { %12942 = vmatprep.subr.bf16.mxu1 %v14102_v17 }
 0x6b1   :  { %12944 = vmatpush3.bf16.msra.mxu1 %v12943_v7  ;;  %v16546_v7 = vsub.f32 %v5396_v51, %v5440_v50  ;;  %v18027_v50 = vand.u32 4294901760, %v16544_v25 }
 0x6b2   :  { %12945 = vmatprep.subr.bf16.mxu1 %v14102_v17 }
 0x6b3   :  { %v5567_v38 = vsub.f32 %v16544_v25, %v18027_v50 }
 0x6b5   :  { %12947 = vmatpush3.bf16.msra.mxu1 %v12946_v59  ;;  %v16552_v59 = vsub.f32 %v5398_v9, %v5446_v16  ;;  %v5560_v9 = vsub.f32 %v16542_v3, %v18028_v46  ;;  %v5568_v22 = vand.u32 4294901760, %v5567_v38 }
 0x6b6   :  { %12948 = vmatprep.subr.bf16.mxu1 %v14102_v17 }
 0x6b7   :  { %v5561_v16 = vand.u32 4294901760, %v5560_v9 }
 0x6b9   :  { %12950 = vmatpush3.bf16.msra.mxu1 %v12949_v58  ;;  %v5455_v58 = vand.u32 4294901760, %v5401_v29 }
 0x6ba   :  { %12951 = vmatprep.subr.bf16.mxu1 %v14102_v17 }
 0x6bb   :  { %v16562_v0 = vpack.c.bf16 %v5455_v58, %v5452_v27  ;;  %v16564_v15 = vsub.f32 %v5401_v29, %v5455_v58  ;;  %v18025_v29 = vand.u32 4294901760, %v16548_v33 }
 0x6bd   :  { %12953 = vmatpush3.bf16.msra.mxu1 %v12952_v45  ;;  %v16559_v45 = vsub.f32 %v5400_v23, %v5452_v27  ;;  %v18026_v23 = vand.u32 4294901760, %v16546_v7  ;;  %v13021_v27 = vpack.c.bf16 %v5568_v22, %v5561_v16 }
 0x6be   :  { %12954 = vmatprep.subr.bf16.mxu1 %v14102_v17 }
 0x6bf   :  { %v5574_v58 = vsub.f32 %v16546_v7, %v18026_v23 }
 0x6c1   :  { %12956 = vmatpush3.bf16.msra.mxu1 %v12955_v28 }
 0x6c2   :  { %12957 = vmatprep.subr.bf16.mxu1 %v14102_v17 }
 0x6c5   :  { %12959 = vmatpush3.bf16.msra.mxu1 %v12958_v5 }
 0x6c6   :  { %12960 = vmatprep.subr.bf16.mxu1 %v14102_v17 }
 0x6c8   :  { %10871 = vmatmul.mubr.f32.vlgmr.msra.gmra.mrb[22].mxu1 %v16393_v6 }
 0x6c9   :  { %12962 = vmatpush3.bf16.msra.mxu1 %v16240_v52  ;;  %10905 = vmatprep.mubr.msk.f32.mxu1 %vm14103_vm1, %v14104_v44  ;;  %v5386_v52 = vld [vmem:[#allocation11] sm:$0xff] }
 0x6ca   :  { %12963 = vmatprep.subr.bf16.mxu1 %v14102_v17 }
 0x6cd   :  { %12965 = vmatpush3.bf16.msra.mxu1 %v16244_v10  ;;  %v5387_v10 = vld [vmem:[#allocation11 + $0x8] sm:$0xff] }
 0x6ce   :  { %12966 = vmatprep.subr.bf16.mxu1 %v14102_v17 }
 0x6d1   :  { %12968 = vmatpush3.bf16.msra.mxu1 %v16248_v14  ;;  %v5410_v14 = vand.u32 4294901760, %v5386_v52 }
 0x6d2   :  { %12969 = vmatprep.subr.bf16.mxu1 %v14102_v17 }
 0x6d3   :  { %v16526_v19 = vsub.f32 %v5386_v52, %v5410_v14 }
 0x6d5   :  { %12971 = vmatpush3.bf16.msra.mxu1 %v16252_v8  ;;  %v5413_v8 = vand.u32 4294901760, %v5387_v10  ;;  %v5503_v60 = vand.u32 4294901760, %v16526_v19 }
 0x6d6   :  { %12972 = vmatprep.subr.bf16.mxu1 %v14102_v17 }
 0x6d7   :  { %v16528_v36 = vsub.f32 %v5387_v10, %v5413_v8  ;;  %v5504_v28 = vsub.f32 %v16526_v19, %v5503_v60 }
 0x6d9   :  { %12974 = vmatpush3.bf16.msra.mxu1 %v16256_v4  ;;  %v16502_v4 = vpack.c.bf16 %v5413_v8, %v5410_v14  ;;  %v5510_v24 = vand.u32 4294901760, %v16528_v36  ;;  %v5505_v52 = vand.u32 4294901760, %v5504_v28  ;;  %v5581_v28 = vsub.f32 %v16548_v33, %v18025_v29 }
 0x6da   :  { %12975 = vmatprep.subr.bf16.mxu1 %v14102_v17  ;;  %v13033_v16 = vpack.c.bf16 %v16528_v36, %v16526_v19 }
 0x6db   :  { %12986 = vmatpush3.bf16.msra.mxu0 %v16502_v4  ;;  %v5511_v39 = vsub.f32 %v16528_v36, %v5510_v24  ;;  %v18312_v36 = vand.u32 4294901760, %v16536_v13 }
 0x6dc   :  { %12987 = vmatprep.subr.bf16.mxu0 %v14102_v17 }
 0x6dd   :  { %12977 = vmatpush3.bf16.msra.mxu1 %v16260_v49  ;;  %v5388_v49 = vld [vmem:[#allocation11 + $0x10] sm:$0xff]  ;;  %v5512_v10 = vand.u32 4294901760, %v5511_v39  ;;  %v5575_v39 = vand.u32 4294901760, %v5574_v58 }
 0x6de   :  { %12978 = vmatprep.subr.bf16.mxu1 %v14102_v17  ;;  %v5416_v2 = vand.u32 4294901760, %v5388_v49 }
 0x6e0   :  { %v16530_v11 = vsub.f32 %v5388_v49, %v5416_v2  ;;  %v16582_v49 = vpack.c.bf16 %v5512_v10, %v5505_v52  ;;  %v5582_v52 = vand.u32 4294901760, %v5581_v28  ;;  %v18024_v10 = vand.u32 4294901760, %v16552_v59 }
 0x6e1   :  { %12980 = vmatpush3.bf16.msra.mxu1 %v16288_v48  ;;  %v5419_v48 = vand.u32 4294901760, %v5389_v43 }
 0x6e2   :  { %12981 = vmatprep.subr.bf16.mxu1 %v14102_v17  ;;  %v5517_v32 = vand.u32 4294901760, %v16530_v11 }
 0x6e3   :  { %v16506_v26 = vpack.c.bf16 %v5419_v48, %v5416_v2  ;;  %v16532_v53 = vsub.f32 %v5389_v43, %v5419_v48 }
 0x6e4   :  { %v5518_v14 = vsub.f32 %v16530_v11, %v5517_v32 }
 0x6e5   :  { %12983 = vmatpush3.bf16.msra.mxu1 %v16300_v61  ;;  %12989 = vmatpush3.bf16.msra.mxu0 %v16506_v26  ;;  %v5422_v61 = vand.u32 4294901760, %v5390_v63  ;;  %v5524_v5 = vand.u32 4294901760, %v16532_v53  ;;  %v13036_v22 = vpack.c.bf16 %v16532_v53, %v16530_v11  ;;  %v18314_v11 = vand.u32 4294901760, %v16540_v56 }
 0x6e6   :  { %13128 = vmatprep.subr.bf16.mxu1 %v14102_v17  ;;  %12990 = vmatprep.subr.bf16.mxu0 %v14102_v17  ;;  %v5519_v43 = vand.u32 4294901760, %v5518_v14  ;;  %v18023_v14 = vand.u32 4294901760, %v16554_v35 }
 0x6e7   :  { %v16510_v12 = vpack.c.bf16 %v5425_v18, %v5422_v61  ;;  %v16534_v1 = vsub.f32 %v5390_v63, %v5422_v61  ;;  %v5525_v8 = vsub.f32 %v16532_v53, %v5524_v5  ;;  %v18031_v63 = vand.u32 4294901760, %v16536_v13 }
 0x6e8   :  { %10906 = vmatmul.mubr.f32.vlgmr.msra.gmra.mrb[22].mxu1 %v16393_v6  ;;  %v5392_v6 = vld [vmem:[#allocation11 + $0x30] sm:$0xff] }
 0x6e9   :  { %11150 = vmatprep.mubr.msk.f32.mxu1 %vm14103_vm1, %v14104_v44  ;;  %12992 = vmatpush3.bf16.msra.mxu0 %v16510_v12  ;;  %v5428_v55 = vand.u32 4294901760, %v5392_v6  ;;  %v5526_v2 = vand.u32 4294901760, %v5525_v8  ;;  %v18032_v48 = vand.u32 4294901760, %v16534_v1  ;;  %v5539_v18 = vsub.f32 %v16536_v13, %v18031_v63 }
 0x6ea   :  { %12993 = vmatprep.subr.bf16.mxu0 %v14102_v17  ;;  %v13024_v8 = vpack.c.bf16 %v5582_v52, %v5575_v39  ;;  %v13039_v58 = vpack.c.bf16 %v16536_v13, %v16534_v1  ;;  %v13045_v39 = vpack.c.bf16 %v16544_v25, %v16542_v3  ;;  %v13048_v52 = vpack.c.bf16 %v16548_v33, %v16546_v7 }
 0x6eb   :  { %v16514_v30 = vpack.c.bf16 %v5431_v37, %v5428_v55  ;;  %v16538_v62 = vsub.f32 %v5392_v6, %v5428_v55  ;;  %v16586_v20 = vpack.c.bf16 %v5526_v2, %v5519_v43  ;;  %v5532_v61 = vsub.f32 %v16534_v1, %v18032_v48 }
 0x6ec   :  { %v5540_v42 = vand.u32 4294901760, %v5539_v18  ;;  %v18029_v37 = vand.u32 4294901760, %v16540_v56  ;;  %v5588_v43 = vsub.f32 %v16552_v59, %v18024_v10  ;;  %v5595_v2 = vsub.f32 %v16554_v35, %v18023_v14 }
 0x6ed   :  { %12995 = vmatpush3.bf16.msra.mxu0 %v16514_v30  ;;  %v5533_v6 = vand.u32 4294901760, %v5532_v61  ;;  %v18030_v55 = vand.u32 4294901760, %v16538_v62  ;;  %v13042_v28 = vpack.c.bf16 %v16540_v56, %v16538_v62  ;;  %v18311_v19 = vand.u32 4294901760, %v16534_v1 }
 0x6ee   :  { %12996 = vmatprep.subr.bf16.mxu0 %v14102_v17  ;;  %v5553_v31 = vsub.f32 %v16540_v56, %v18029_v37  ;;  %v5589_v61 = vand.u32 4294901760, %v5588_v43  ;;  %v5596_v18 = vand.u32 4294901760, %v5595_v2  ;;  %v13051_v43 = vpack.c.bf16 %v16554_v35, %v16552_v59 }
 0x6ef   :  { %v16596_v41 = vpack.c.bf16 %v5540_v42, %v5533_v6  ;;  %v5546_v21 = vsub.f32 %v16538_v62, %v18030_v55  ;;  %v18022_v6 = vand.u32 4294901760, %v16559_v45  ;;  %v18021_v42 = vand.u32 4294901760, %v16564_v15 }
 0x6f0   :  { %v5554_v51 = vand.u32 4294901760, %v5553_v31  ;;  %v13054_v2 = vpack.c.bf16 %v16564_v15, %v16559_v45  ;;  %v18317_v1 = vand.u32 4294901760, %v16546_v7  ;;  %v18318_v13 = vand.u32 4294901760, %v16548_v33  ;;  %v6062_v7 = vld [vmem:[#allocation13 + $0x18] sm:$0xff] }
 0x6f1   :  { %12998 = vmatpush3.bf16.msra.mxu0 %v16518_v54  ;;  %v5547_v40 = vand.u32 4294901760, %v5546_v21  ;;  %v13027_v21 = vpack.c.bf16 %v5596_v18, %v5589_v61  ;;  %v5602_v31 = vsub.f32 %v16559_v45, %v18022_v6  ;;  %v8766_v61 = vld [vmem:[%s17829_s8] ss:$0 sm:$0xff]  ;;  %v18320_v56 = vand.u32 4294901760, %v16554_v35  ;;  %v6063_v35 = vld [vmem:[#allocation13 + $0x20] sm:$0xff] }
 0x6f2   :  { %12999 = vmatprep.subr.bf16.mxu0 %v14102_v17 }
 0x6f3   :  { %v13018_v47 = vpack.c.bf16 %v5554_v51, %v5547_v40  ;;  %v5609_v40 = vsub.f32 %v16564_v15, %v18021_v42  ;;  %v5603_v51 = vand.u32 4294901760, %v5602_v31 }
 0x6f5   :  { %13001 = vmatpush3.bf16.msra.mxu0 %v16522_v57  ;;  %v5610_v9 = vand.u32 4294901760, %v5609_v40 }
 0x6f6   :  { %13002 = vmatprep.subr.bf16.mxu0 %v14102_v17 }
 0x6f7   :  { %v13030_v38 = vpack.c.bf16 %v5610_v9, %v5603_v51 }
 0x6f9   :  { %13004 = vmatpush3.bf16.msra.mxu0 %v16550_v34 }
 0x6fa   :  { %13005 = vmatprep.subr.bf16.mxu0 %v14102_v17 }
 0x6fd   :  { %13007 = vmatpush3.bf16.msra.mxu0 %v16562_v0 }
 0x6fe   :  { %13008 = vmatprep.subr.bf16.mxu0 %v14102_v17 }
 0x7bb   :  { %v5373_v18 = vpop.f32.mrb[22].mxu1 }
 0x7bc   :  { %v13708_v31 = vadd.f32 %v8766_v61, %v5373_v18  ;;  %v10907_v40 = vpop.f32.mrb[23].mxu1 }
 0x7be   :  { %v5378_v51 = vmul.f32 %v13708_v31, %v13708_v31  ;;  %v5377_v29 = vmul.f32 0.5, %v13708_v31 }
 0x7c0   :  { %v5379_v9 = vmul.f32 %v13708_v31, %v5378_v51 }
 0x7c2   :  { %v5380_v42 = vmul.f32 0.044715, %v5379_v9 }
 0x7c4   :  { %v5381_v6 = vadd.f32 %v13708_v31, %v5380_v42  ;;  %v6069_v42 = vld [vmem:[#allocation13 + $0x50] sm:$0xff] }
 0x7c5   :  { %v6073_v31 = vld [vmem:[#allocation13 + $0x70] sm:$0xff] }
 0x7c6   :  { %v5382_v14 = vmul.f32 0.7978846, %v5381_v6 }
 0x7c8   :  { %13824 = vtanh.f32 %v5382_v14 }
 0x7d2   :  { %v13825_v10 = vpop.eup %13824 }
 0x7d3   :  { %v5384_v23 = vadd.f32 1.0, %v13825_v10  ;;  %v6068_v10 = vld [vmem:[#allocation13 + $0x48] sm:$0xff] }
 0x7d5   :  { %v5385_v50 = vmul.f32 %v5384_v23, %v5377_v29 }
 0x7d7   :  { %v16655_v46 = vand.u32 4294901760, %v5385_v50 }
 0x7d9   :  { %v5491_v37 = vsub.f32 %v5385_v50, %v16655_v46  ;;  %v6066_v50 = vld [vmem:[#allocation13 + $0x38] sm:$0xff] }
 0x7da   :  { %v6104_v23 = vand.u32 4294901760, %v6066_v50 }
 0x7db   :  { %v5492_v55 = vand.u32 4294901760, %v5491_v37 }
 0x7dd   :  { %v5493_v63 = vsub.f32 %v5491_v37, %v5492_v55 }
 0x7df   :  { %v5494_v48 = vand.u32 4294901760, %v5493_v63 }
 0x7e1   :  { %10941 = vmatmul.mubr.f32.vlgmr.msra.gmra.mrb[22].mxu0 %v5494_v48  ;;  %v13084_v48 = vpack.c.bf16 %v5524_v5, %v5517_v32  ;;  %v18315_v32 = vand.u32 4294901760, %v16542_v3  ;;  %v18316_v5 = vand.u32 4294901760, %v16544_v25  ;;  %v18321_v3 = vand.u32 4294901760, %v16559_v45  ;;  %v6064_v45 = vld [vmem:[#allocation13 + $0x28] sm:$0xff] }
 0x7e2   :  { %13010 = vmatpush3.bf16.msra.mxu0 %v16582_v49  ;;  %10975 = vmatprep.mubr.msk.f32.mxu0 %vm14103_vm1, %v14104_v44  ;;  %v13081_v49 = vpack.c.bf16 %v5510_v24, %v5503_v60  ;;  %v13087_v60 = vpack.c.bf16 %v18312_v36, %v18311_v19  ;;  %v18313_v24 = vand.u32 4294901760, %v16538_v62  ;;  %v18319_v62 = vand.u32 4294901760, %v16552_v59 }
 0x7e3   :  { %13011 = vmatprep.subr.bf16.mxu0 %v14102_v17  ;;  %v13093_v63 = vpack.c.bf16 %v18316_v5, %v18315_v32  ;;  %v18322_v25 = vand.u32 4294901760, %v16564_v15  ;;  %v6098_v15 = vand.u32 4294901760, %v6064_v45  ;;  %v6125_v5 = vand.u32 4294901760, %v6073_v31 }
 0x7e4   :  { %v13090_v53 = vpack.c.bf16 %v18314_v11, %v18313_v24 }
 0x7e5   :  { %v16798_v51 = vsub.f32 %v6064_v45, %v6098_v15 }
 0x7e6   :  { %13013 = vmatpush3.bf16.msra.mxu0 %v16586_v20  ;;  %v13096_v20 = vpack.c.bf16 %v18318_v13, %v18317_v1 }
 0x7e7   :  { %13014 = vmatprep.subr.bf16.mxu0 %v14102_v17 }
 0x7ea   :  { %13016 = vmatpush3.bf16.msra.mxu0 %v16596_v41 }
 0x7eb   :  { %13017 = vmatprep.subr.bf16.mxu0 %v14102_v17 }
 0x7ee   :  { %13019 = vmatpush3.bf16.msra.mxu0 %v13018_v47 }
 0x7ef   :  { %13020 = vmatprep.subr.bf16.mxu0 %v14102_v17 }
 0x7f2   :  { %13022 = vmatpush3.bf16.msra.mxu0 %v13021_v27  ;;  %v6067_v27 = vld [vmem:[#allocation13 + $0x40] sm:$0xff] }
 0x7f3   :  { %13023 = vmatprep.subr.bf16.mxu0 %v14102_v17  ;;  %v6107_v14 = vand.u32 4294901760, %v6067_v27 }
 0x7f5   :  { %v16804_v19 = vsub.f32 %v6067_v27, %v6107_v14 }
 0x7f6   :  { %13025 = vmatpush3.bf16.msra.mxu0 %v13024_v8  ;;  %v6110_v8 = vand.u32 4294901760, %v6068_v10 }
 0x7f7   :  { %13026 = vmatprep.subr.bf16.mxu0 %v14102_v17 }
 0x7f8   :  { %v16780_v6 = vpack.c.bf16 %v6110_v8, %v6107_v14  ;;  %v16806_v36 = vsub.f32 %v6068_v10, %v6110_v8 }
 0x7fa   :  { %13028 = vmatpush3.bf16.msra.mxu0 %v13027_v21  ;;  %v6070_v21 = vld [vmem:[#allocation13 + $0x58] sm:$0xff] }
 0x7fb   :  { %13029 = vmatprep.subr.bf16.mxu0 %v14102_v17 }
 0x7fe   :  { %13031 = vmatpush3.bf16.msra.mxu0 %v13030_v38  ;;  %v6113_v38 = vand.u32 4294901760, %v6069_v42 }
 0x7ff   :  { %13032 = vmatprep.subr.bf16.mxu0 %v14102_v17 }
 0x801   :  { %10976 = vmatmul.mubr.f32.vlgmr.msra.gmra.mrb[22].mxu0 %v16655_v46 }
 0x802   :  { %13034 = vmatpush3.bf16.msra.mxu0 %v13033_v16  ;;  %11010 = vmatprep.mubr.msk.f32.mxu0 %vm14103_vm1, %v14104_v44  ;;  %v6116_v16 = vand.u32 4294901760, %v6070_v21 }
 0x803   :  { %13035 = vmatprep.subr.bf16.mxu0 %v14102_v17 }
 0x804   :  { %v16810_v24 = vsub.f32 %v6070_v21, %v6116_v16  ;;  %v18040_v21 = vand.u32 4294901760, %v16804_v19 }
 0x806   :  { %13037 = vmatpush3.bf16.msra.mxu0 %v13036_v22  ;;  %v16784_v22 = vpack.c.bf16 %v6116_v16, %v6113_v38 }
 0x807   :  { %13038 = vmatprep.subr.bf16.mxu0 %v14102_v17 }
 0x80a   :  { %13040 = vmatpush3.bf16.msra.mxu0 %v13039_v58  ;;  %v6071_v58 = vld [vmem:[#allocation13 + $0x60] sm:$0xff] }
 0x80b   :  { %13041 = vmatprep.subr.bf16.mxu0 %v14102_v17 }
 0x80e   :  { %13043 = vmatpush3.bf16.msra.mxu0 %v13042_v28  ;;  %v6072_v28 = vld [vmem:[#allocation13 + $0x68] sm:$0xff] }
 0x80f   :  { %13044 = vmatprep.subr.bf16.mxu0 %v14102_v17 }
 0x812   :  { %13046 = vmatpush3.bf16.msra.mxu0 %v13045_v39  ;;  %v6119_v39 = vand.u32 4294901760, %v6071_v58 }
 0x813   :  { %13047 = vmatprep.subr.bf16.mxu0 %v14102_v17 }
 0x816   :  { %13049 = vmatpush3.bf16.msra.mxu0 %v13048_v52  ;;  %v6122_v52 = vand.u32 4294901760, %v6072_v28 }
 0x817   :  { %13050 = vmatprep.subr.bf16.mxu0 %v14102_v17 }
 0x818   :  { %v16812_v11 = vpack.c.bf16 %v6122_v52, %v6119_v39  ;;  %v16816_v32 = vsub.f32 %v6072_v28, %v6122_v52 }
 0x81a   :  { %13052 = vmatpush3.bf16.msra.mxu0 %v13051_v43 }
 0x81b   :  { %13053 = vmatprep.subr.bf16.mxu0 %v14102_v17 }
 0x81e   :  { %13055 = vmatpush3.bf16.msra.mxu0 %v13054_v2 }
 0x81f   :  { %13056 = vmatprep.subr.bf16.mxu0 %v14102_v17 }
 0x821   :  { %11011 = vmatmul.mubr.f32.vlgmr.msra.gmra.mrb[22].mxu0 %v5491_v37  ;;  %v13102_v37 = vpack.c.bf16 %v18322_v25, %v18321_v3 }
 0x822   :  { %13058 = vmatpush3.bf16.msra.mxu0 %v16502_v4  ;;  %11045 = vmatprep.mubr.msk.f32.mxu0 %vm14103_vm1, %v14104_v44 }
 0x823   :  { %13059 = vmatprep.subr.bf16.mxu0 %v14102_v17 }
 0x826   :  { %13061 = vmatpush3.bf16.msra.mxu0 %v16506_v26 }
 0x827   :  { %13062 = vmatprep.subr.bf16.mxu0 %v14102_v17 }
 0x82a   :  { %13064 = vmatpush3.bf16.msra.mxu0 %v16510_v12 }
 0x82b   :  { %13065 = vmatprep.subr.bf16.mxu0 %v14102_v17 }
 0x82e   :  { %13067 = vmatpush3.bf16.msra.mxu0 %v16514_v30 }
 0x82f   :  { %13068 = vmatprep.subr.bf16.mxu0 %v14102_v17 }
 0x832   :  { %13070 = vmatpush3.bf16.msra.mxu0 %v16518_v54 }
 0x833   :  { %13071 = vmatprep.subr.bf16.mxu0 %v14102_v17 }
 0x836   :  { %13073 = vmatpush3.bf16.msra.mxu0 %v16522_v57 }
 0x837   :  { %13074 = vmatprep.subr.bf16.mxu0 %v14102_v17 }
 0x83a   :  { %13076 = vmatpush3.bf16.msra.mxu0 %v16550_v34 }
 0x83b   :  { %13077 = vmatprep.subr.bf16.mxu0 %v14102_v17 }
 0x83e   :  { %13079 = vmatpush3.bf16.msra.mxu0 %v16562_v0 }
 0x83f   :  { %13080 = vmatprep.subr.bf16.mxu0 %v14102_v17 }
 0x841   :  { %11046 = vmatmul.mubr.f32.vlgmr.msra.gmra.mrb[22].mxu0 %v5492_v55  ;;  %v13099_v55 = vpack.c.bf16 %v18320_v56, %v18319_v62 }
 0x842   :  { %13082 = vmatpush3.bf16.msra.mxu0 %v13081_v49  ;;  %11080 = vmatprep.mubr.msk.f32.mxu0 %vm14103_vm1, %v14104_v44  ;;  %v16802_v49 = vsub.f32 %v6066_v50, %v6104_v23 }
 0x843   :  { %13083 = vmatprep.subr.bf16.mxu0 %v14102_v17 }
 0x846   :  { %13085 = vmatpush3.bf16.msra.mxu0 %v13084_v48  ;;  %v6074_v48 = vld [vmem:[#allocation13 + $0x78] sm:$0xff] }
 0x847   :  { %13086 = vmatprep.subr.bf16.mxu0 %v14102_v17 }
 0x84a   :  { %13088 = vmatpush3.bf16.msra.mxu0 %v13087_v60  ;;  %v16808_v60 = vsub.f32 %v6069_v42, %v6113_v38  ;;  %v18039_v38 = vand.u32 4294901760, %v16806_v36 }
 0x84b   :  { %13089 = vmatprep.subr.bf16.mxu0 %v14102_v17 }
 0x84c   :  { %v6240_v28 = vsub.f32 %v16806_v36, %v18039_v38 }
 0x84e   :  { %13091 = vmatpush3.bf16.msra.mxu0 %v13090_v53  ;;  %v16814_v53 = vsub.f32 %v6071_v58, %v6119_v39  ;;  %v6233_v58 = vsub.f32 %v16804_v19, %v18040_v21  ;;  %v6241_v52 = vand.u32 4294901760, %v6240_v28 }
 0x84f   :  { %13092 = vmatprep.subr.bf16.mxu0 %v14102_v17 }
 0x850   :  { %v6234_v39 = vand.u32 4294901760, %v6233_v58 }
 0x852   :  { %13094 = vmatpush3.bf16.msra.mxu0 %v13093_v63  ;;  %v6128_v63 = vand.u32 4294901760, %v6074_v48 }
 0x853   :  { %13095 = vmatprep.subr.bf16.mxu0 %v14102_v17 }
 0x854   :  { %v16824_v62 = vpack.c.bf16 %v6128_v63, %v6125_v5  ;;  %v16826_v56 = vsub.f32 %v6074_v48, %v6128_v63  ;;  %v18037_v48 = vand.u32 4294901760, %v16810_v24 }
 0x856   :  { %13097 = vmatpush3.bf16.msra.mxu0 %v13096_v20  ;;  %v16821_v20 = vsub.f32 %v6073_v31, %v6125_v5  ;;  %v18038_v31 = vand.u32 4294901760, %v16808_v60  ;;  %v13165_v5 = vpack.c.bf16 %v6241_v52, %v6234_v39 }
 0x857   :  { %13098 = vmatprep.subr.bf16.mxu0 %v14102_v17 }
 0x858   :  { %v6247_v63 = vsub.f32 %v16808_v60, %v18038_v31 }
 0x85a   :  { %13100 = vmatpush3.bf16.msra.mxu0 %v13099_v55 }
 0x85b   :  { %13101 = vmatprep.subr.bf16.mxu0 %v14102_v17 }
 0x85e   :  { %13103 = vmatpush3.bf16.msra.mxu0 %v13102_v37 }
 0x85f   :  { %13104 = vmatprep.subr.bf16.mxu0 %v14102_v17 }
 0x861   :  { %11081 = vmatmul.mubr.f32.vlgmr.msra.gmra.mrb[22].mxu0 %v16655_v46 }
 0x862   :  { %13106 = vmatpush3.bf16.msra.mxu0 %v16502_v4  ;;  %11115 = vmatprep.mubr.msk.f32.mxu0 %vm14103_vm1, %v14104_v44  ;;  %v6059_v4 = vld [vmem:[#allocation13] sm:$0xff] }
 0x863   :  { %13107 = vmatprep.subr.bf16.mxu0 %v14102_v17 }
 0x866   :  { %13109 = vmatpush3.bf16.msra.mxu0 %v16506_v26  ;;  %v6060_v26 = vld [vmem:[#allocation13 + $0x8] sm:$0xff] }
 0x867   :  { %13110 = vmatprep.subr.bf16.mxu0 %v14102_v17 }
 0x86a   :  { %13112 = vmatpush3.bf16.msra.mxu0 %v16510_v12  ;;  %v6083_v12 = vand.u32 4294901760, %v6059_v4 }
 0x86b   :  { %13113 = vmatprep.subr.bf16.mxu0 %v14102_v17 }
 0x86c   :  { %v16788_v43 = vsub.f32 %v6059_v4, %v6083_v12 }
 0x86e   :  { %13115 = vmatpush3.bf16.msra.mxu0 %v16514_v30  ;;  %v6086_v30 = vand.u32 4294901760, %v6060_v26  ;;  %v6176_v1 = vand.u32 4294901760, %v16788_v43 }
 0x86f   :  { %13116 = vmatprep.subr.bf16.mxu0 %v14102_v17 }
 0x870   :  { %v16790_v2 = vsub.f32 %v6060_v26, %v6086_v30  ;;  %v6177_v55 = vsub.f32 %v16788_v43, %v6176_v1 }
 0x872   :  { %13118 = vmatpush3.bf16.msra.mxu0 %v16518_v54  ;;  %v16764_v54 = vpack.c.bf16 %v6086_v30, %v6083_v12  ;;  %v6183_v13 = vand.u32 4294901760, %v16790_v2  ;;  %v6178_v4 = vand.u32 4294901760, %v6177_v55  ;;  %v6254_v55 = vsub.f32 %v16810_v24, %v18037_v48 }
 0x873   :  { %13119 = vmatprep.subr.bf16.mxu0 %v14102_v17  ;;  %v13177_v39 = vpack.c.bf16 %v16790_v2, %v16788_v43 }
 0x874   :  { %13130 = vmatpush3.bf16.msra.mxu1 %v16764_v54  ;;  %v6184_v3 = vsub.f32 %v16790_v2, %v6183_v13  ;;  %v18324_v2 = vand.u32 4294901760, %v16798_v51 }
 0x875   :  { %13131 = vmatprep.subr.bf16.mxu1 %v14102_v17 }
 0x876   :  { %13121 = vmatpush3.bf16.msra.mxu0 %v16522_v57  ;;  %v6061_v57 = vld [vmem:[#allocation13 + $0x10] sm:$0xff]  ;;  %v6185_v26 = vand.u32 4294901760, %v6184_v3  ;;  %v6248_v3 = vand.u32 4294901760, %v6247_v63 }
 0x877   :  { %13122 = vmatprep.subr.bf16.mxu0 %v14102_v17  ;;  %v6089_v33 = vand.u32 4294901760, %v6061_v57 }
 0x879   :  { %v16792_v61 = vsub.f32 %v6061_v57, %v6089_v33  ;;  %v16844_v57 = vpack.c.bf16 %v6185_v26, %v6178_v4  ;;  %v6255_v4 = vand.u32 4294901760, %v6254_v55  ;;  %v18036_v26 = vand.u32 4294901760, %v16814_v53 }
 0x87a   :  { %13124 = vmatpush3.bf16.msra.mxu0 %v16550_v34  ;;  %v6092_v34 = vand.u32 4294901760, %v6062_v7 }
 0x87b   :  { %13125 = vmatprep.subr.bf16.mxu0 %v14102_v17  ;;  %v6190_v25 = vand.u32 4294901760, %v16792_v61 }
 0x87c   :  { %v16768_v59 = vpack.c.bf16 %v6092_v34, %v6089_v33  ;;  %v16794_v18 = vsub.f32 %v6062_v7, %v6092_v34 }
 0x87d   :  { %v6191_v12 = vsub.f32 %v16792_v61, %v6190_v25 }
 0x87e   :  { %13127 = vmatpush3.bf16.msra.mxu0 %v16562_v0  ;;  %13133 = vmatpush3.bf16.msra.mxu1 %v16768_v59  ;;  %v6095_v0 = vand.u32 4294901760, %v6063_v35  ;;  %v6197_v37 = vand.u32 4294901760, %v16794_v18  ;;  %v13180_v52 = vpack.c.bf16 %v16794_v18, %v16792_v61  ;;  %v18326_v61 = vand.u32 4294901760, %v16802_v49 }
 0x87f   :  { %13272 = vmatprep.subr.bf16.mxu0 %v14102_v17  ;;  %13134 = vmatprep.subr.bf16.mxu1 %v14102_v17  ;;  %v6192_v7 = vand.u32 4294901760, %v6191_v12  ;;  %v18035_v12 = vand.u32 4294901760, %v16816_v32 }
 0x880   :  { %v16772_v41 = vpack.c.bf16 %v6098_v15, %v6095_v0  ;;  %v16796_v40 = vsub.f32 %v6063_v35, %v6095_v0  ;;  %v6198_v30 = vsub.f32 %v16794_v18, %v6197_v37  ;;  %v18043_v35 = vand.u32 4294901760, %v16798_v51 }
 0x881   :  { %11116 = vmatmul.mubr.f32.vlgmr.msra.gmra.mrb[22].mxu0 %v16655_v46  ;;  %v6065_v46 = vld [vmem:[#allocation13 + $0x30] sm:$0xff] }
 0x882   :  { %11360 = vmatprep.mubr.msk.f32.mxu0 %vm14103_vm1, %v14104_v44  ;;  %13136 = vmatpush3.bf16.msra.mxu1 %v16772_v41  ;;  %v6101_v47 = vand.u32 4294901760, %v6065_v46  ;;  %v6199_v33 = vand.u32 4294901760, %v6198_v30  ;;  %v18044_v34 = vand.u32 4294901760, %v16796_v40  ;;  %v6212_v15 = vsub.f32 %v16798_v51, %v18043_v35 }
 0x883   :  { %13137 = vmatprep.subr.bf16.mxu1 %v14102_v17  ;;  %v13168_v30 = vpack.c.bf16 %v6255_v4, %v6248_v3  ;;  %v13183_v63 = vpack.c.bf16 %v16798_v51, %v16796_v40  ;;  %v13189_v3 = vpack.c.bf16 %v16806_v36, %v16804_v19  ;;  %v13192_v4 = vpack.c.bf16 %v16810_v24, %v16808_v60 }
 0x884   :  { %v16776_v29 = vpack.c.bf16 %v6104_v23, %v6101_v47  ;;  %v16800_v9 = vsub.f32 %v6065_v46, %v6101_v47  ;;  %v16848_v45 = vpack.c.bf16 %v6199_v33, %v6192_v7  ;;  %v6205_v0 = vsub.f32 %v16796_v40, %v18044_v34 }
 0x885   :  { %v6213_v50 = vand.u32 4294901760, %v6212_v15  ;;  %v18041_v23 = vand.u32 4294901760, %v16802_v49  ;;  %v6261_v7 = vsub.f32 %v16814_v53, %v18036_v26  ;;  %v6268_v33 = vsub.f32 %v16816_v32, %v18035_v12 }
 0x886   :  { %13139 = vmatpush3.bf16.msra.mxu1 %v16776_v29  ;;  %v6206_v46 = vand.u32 4294901760, %v6205_v0  ;;  %v18042_v47 = vand.u32 4294901760, %v16800_v9  ;;  %v13186_v55 = vpack.c.bf16 %v16802_v49, %v16800_v9  ;;  %v18323_v43 = vand.u32 4294901760, %v16796_v40 }
 0x887   :  { %13140 = vmatprep.subr.bf16.mxu1 %v14102_v17  ;;  %v6226_v14 = vsub.f32 %v16802_v49, %v18041_v23  ;;  %v6262_v0 = vand.u32 4294901760, %v6261_v7  ;;  %v6269_v15 = vand.u32 4294901760, %v6268_v33  ;;  %v13195_v7 = vpack.c.bf16 %v16816_v32, %v16814_v53 }
 0x888   :  { %v16858_v27 = vpack.c.bf16 %v6213_v50, %v6206_v46  ;;  %v6219_v10 = vsub.f32 %v16800_v9, %v18042_v47  ;;  %v18034_v46 = vand.u32 4294901760, %v16821_v20  ;;  %v18033_v50 = vand.u32 4294901760, %v16826_v56 }
 0x889   :  { %v6227_v42 = vand.u32 4294901760, %v6226_v14  ;;  %v13198_v33 = vpack.c.bf16 %v16826_v56, %v16821_v20  ;;  %v18329_v40 = vand.u32 4294901760, %v16808_v60  ;;  %v18330_v51 = vand.u32 4294901760, %v16810_v24  ;;  %v6735_v60 = vld [vmem:[#allocation14 + $0x18] sm:$0xff] }
 0x88a   :  { %13142 = vmatpush3.bf16.msra.mxu1 %v16780_v6  ;;  %v6220_v8 = vand.u32 4294901760, %v6219_v10  ;;  %v13171_v10 = vpack.c.bf16 %v6269_v15, %v6262_v0  ;;  %v6275_v14 = vsub.f32 %v16821_v20, %v18034_v46  ;;  %v8767_v0 = vld [vmem:[%s17831_s10] ss:$0 sm:$0xff]  ;;  %v18332_v49 = vand.u32 4294901760, %v16816_v32  ;;  %v6736_v32 = vld [vmem:[#allocation14 + $0x20] sm:$0xff] }
 0x88b   :  { %13143 = vmatprep.subr.bf16.mxu1 %v14102_v17 }
 0x88c   :  { %v13162_v16 = vpack.c.bf16 %v6227_v42, %v6220_v8  ;;  %v6282_v8 = vsub.f32 %v16826_v56, %v18033_v50  ;;  %v6276_v42 = vand.u32 4294901760, %v6275_v14 }
 0x88e   :  { %13145 = vmatpush3.bf16.msra.mxu1 %v16784_v22  ;;  %v6283_v58 = vand.u32 4294901760, %v6282_v8 }
 0x88f   :  { %13146 = vmatprep.subr.bf16.mxu1 %v14102_v17 }
 0x890   :  { %v13174_v28 = vpack.c.bf16 %v6283_v58, %v6276_v42 }
 0x892   :  { %13148 = vmatpush3.bf16.msra.mxu1 %v16812_v11 }
 0x893   :  { %13149 = vmatprep.subr.bf16.mxu1 %v14102_v17 }
 0x896   :  { %13151 = vmatpush3.bf16.msra.mxu1 %v16824_v62 }
 0x897   :  { %13152 = vmatprep.subr.bf16.mxu1 %v14102_v17 }
 0x954   :  { %v6046_v15 = vpop.f32.mrb[22].mxu0 }
 0x955   :  { %v13709_v14 = vadd.f32 %v8767_v0, %v6046_v15  ;;  %v11117_v8 = vpop.f32.mrb[23].mxu0 }
 0x957   :  { %v6051_v42 = vmul.f32 %v13709_v14, %v13709_v14  ;;  %v6050_v48 = vmul.f32 0.5, %v13709_v14 }
 0x959   :  { %v6052_v58 = vmul.f32 %v13709_v14, %v6051_v42 }
 0x95b   :  { %v6053_v50 = vmul.f32 0.044715, %v6052_v58 }
 0x95d   :  { %v6054_v46 = vadd.f32 %v13709_v14, %v6053_v50  ;;  %v6742_v50 = vld [vmem:[#allocation14 + $0x50] sm:$0xff] }
 0x95e   :  { %v6746_v14 = vld [vmem:[#allocation14 + $0x70] sm:$0xff] }
 0x95f   :  { %v6055_v12 = vmul.f32 0.7978846, %v6054_v46 }
 0x961   :  { %13826 = vtanh.f32 %v6055_v12 }
 0x96b   :  { %v13827_v26 = vpop.eup %13826 }
 0x96c   :  { %v6057_v31 = vadd.f32 1.0, %v13827_v26  ;;  %v6741_v26 = vld [vmem:[#allocation14 + $0x48] sm:$0xff] }
 0x96e   :  { %v6058_v38 = vmul.f32 %v6057_v31, %v6050_v48 }
 0x970   :  { %v16917_v21 = vand.u32 4294901760, %v6058_v38 }
 0x972   :  { %v6164_v23 = vsub.f32 %v6058_v38, %v16917_v21  ;;  %v6739_v38 = vld [vmem:[#allocation14 + $0x38] sm:$0xff] }
 0x973   :  { %v6777_v31 = vand.u32 4294901760, %v6739_v38 }
 0x974   :  { %v6165_v47 = vand.u32 4294901760, %v6164_v23 }
 0x976   :  { %v6166_v35 = vsub.f32 %v6164_v23, %v6165_v47 }
 0x978   :  { %v6167_v34 = vand.u32 4294901760, %v6166_v35 }
 0x97a   :  { %11151 = vmatmul.mubr.f32.vlgmr.msra.gmra.mrb[24].mxu1 %v6167_v34  ;;  %v13228_v34 = vpack.c.bf16 %v6197_v37, %v6190_v25  ;;  %v18327_v25 = vand.u32 4294901760, %v16804_v19  ;;  %v18328_v37 = vand.u32 4294901760, %v16806_v36  ;;  %v18333_v19 = vand.u32 4294901760, %v16821_v20  ;;  %v6737_v20 = vld [vmem:[#allocation14 + $0x28] sm:$0xff] }
 0x97b   :  { %13154 = vmatpush3.bf16.msra.mxu1 %v16844_v57  ;;  %11185 = vmatprep.mubr.msk.f32.mxu1 %vm14103_vm1, %v14104_v44  ;;  %v13225_v57 = vpack.c.bf16 %v6183_v13, %v6176_v1  ;;  %v13231_v1 = vpack.c.bf16 %v18324_v2, %v18323_v43  ;;  %v18325_v13 = vand.u32 4294901760, %v16800_v9  ;;  %v18331_v9 = vand.u32 4294901760, %v16814_v53 }
 0x97c   :  { %13155 = vmatprep.subr.bf16.mxu1 %v14102_v17  ;;  %v13237_v35 = vpack.c.bf16 %v18328_v37, %v18327_v25  ;;  %v18334_v36 = vand.u32 4294901760, %v16826_v56  ;;  %v6771_v56 = vand.u32 4294901760, %v6737_v20  ;;  %v6798_v37 = vand.u32 4294901760, %v6746_v14 }
 0x97d   :  { %v13234_v18 = vpack.c.bf16 %v18326_v61, %v18325_v13 }
 0x97e   :  { %v17060_v42 = vsub.f32 %v6737_v20, %v6771_v56 }
 0x97f   :  { %13157 = vmatpush3.bf16.msra.mxu1 %v16848_v45  ;;  %v13240_v45 = vpack.c.bf16 %v18330_v51, %v18329_v40 }
 0x980   :  { %13158 = vmatprep.subr.bf16.mxu1 %v14102_v17 }
 0x983   :  { %13160 = vmatpush3.bf16.msra.mxu1 %v16858_v27 }
 0x984   :  { %13161 = vmatprep.subr.bf16.mxu1 %v14102_v17 }
 0x987   :  { %13163 = vmatpush3.bf16.msra.mxu1 %v13162_v16 }
 0x988   :  { %13164 = vmatprep.subr.bf16.mxu1 %v14102_v17 }
 0x98b   :  { %13166 = vmatpush3.bf16.msra.mxu1 %v13165_v5  ;;  %v6740_v5 = vld [vmem:[#allocation14 + $0x40] sm:$0xff] }
 0x98c   :  { %13167 = vmatprep.subr.bf16.mxu1 %v14102_v17  ;;  %v6780_v12 = vand.u32 4294901760, %v6740_v5 }
 0x98e   :  { %v17066_v43 = vsub.f32 %v6740_v5, %v6780_v12 }
 0x98f   :  { %13169 = vmatpush3.bf16.msra.mxu1 %v13168_v30  ;;  %v6783_v30 = vand.u32 4294901760, %v6741_v26 }
 0x990   :  { %13170 = vmatprep.subr.bf16.mxu1 %v14102_v17 }
 0x991   :  { %v17042_v46 = vpack.c.bf16 %v6783_v30, %v6780_v12  ;;  %v17068_v2 = vsub.f32 %v6741_v26, %v6783_v30 }
 0x993   :  { %13172 = vmatpush3.bf16.msra.mxu1 %v13171_v10  ;;  %v6743_v10 = vld [vmem:[#allocation14 + $0x58] sm:$0xff] }
 0x994   :  { %13173 = vmatprep.subr.bf16.mxu1 %v14102_v17 }
 0x997   :  { %13175 = vmatpush3.bf16.msra.mxu1 %v13174_v28  ;;  %v6786_v28 = vand.u32 4294901760, %v6742_v50 }
 0x998   :  { %13176 = vmatprep.subr.bf16.mxu1 %v14102_v17 }
 0x99a   :  { %11186 = vmatmul.mubr.f32.vlgmr.msra.gmra.mrb[24].mxu1 %v16917_v21 }
 0x99b   :  { %13178 = vmatpush3.bf16.msra.mxu1 %v13177_v39  ;;  %11220 = vmatprep.mubr.msk.f32.mxu1 %vm14103_vm1, %v14104_v44  ;;  %v6789_v39 = vand.u32 4294901760, %v6743_v10 }
 0x99c   :  { %13179 = vmatprep.subr.bf16.mxu1 %v14102_v17 }
 0x99d   :  { %v17072_v13 = vsub.f32 %v6743_v10, %v6789_v39  ;;  %v18052_v10 = vand.u32 4294901760, %v17066_v43 }
 0x99f   :  { %13181 = vmatpush3.bf16.msra.mxu1 %v13180_v52  ;;  %v17046_v52 = vpack.c.bf16 %v6789_v39, %v6786_v28 }
 0x9a0   :  { %13182 = vmatprep.subr.bf16.mxu1 %v14102_v17 }
 0x9a3   :  { %13184 = vmatpush3.bf16.msra.mxu1 %v13183_v63  ;;  %v6744_v63 = vld [vmem:[#allocation14 + $0x60] sm:$0xff] }
 0x9a4   :  { %13185 = vmatprep.subr.bf16.mxu1 %v14102_v17 }
 0x9a7   :  { %13187 = vmatpush3.bf16.msra.mxu1 %v13186_v55  ;;  %v6745_v55 = vld [vmem:[#allocation14 + $0x68] sm:$0xff] }
 0x9a8   :  { %13188 = vmatprep.subr.bf16.mxu1 %v14102_v17 }
 0x9ab   :  { %13190 = vmatpush3.bf16.msra.mxu1 %v13189_v3  ;;  %v6792_v3 = vand.u32 4294901760, %v6744_v63 }
 0x9ac   :  { %13191 = vmatprep.subr.bf16.mxu1 %v14102_v17 }
 0x9af   :  { %13193 = vmatpush3.bf16.msra.mxu1 %v13192_v4  ;;  %v6795_v4 = vand.u32 4294901760, %v6745_v55 }
 0x9b0   :  { %13194 = vmatprep.subr.bf16.mxu1 %v14102_v17 }
 0x9b1   :  { %v17074_v61 = vpack.c.bf16 %v6795_v4, %v6792_v3  ;;  %v17078_v25 = vsub.f32 %v6745_v55, %v6795_v4 }
 0x9b3   :  { %13196 = vmatpush3.bf16.msra.mxu1 %v13195_v7 }
 0x9b4   :  { %13197 = vmatprep.subr.bf16.mxu1 %v14102_v17 }
 0x9b7   :  { %13199 = vmatpush3.bf16.msra.mxu1 %v13198_v33 }
 0x9b8   :  { %13200 = vmatprep.subr.bf16.mxu1 %v14102_v17 }
 0x9ba   :  { %11221 = vmatmul.mubr.f32.vlgmr.msra.gmra.mrb[24].mxu1 %v6164_v23  ;;  %v13246_v23 = vpack.c.bf16 %v18334_v36, %v18333_v19 }
 0x9bb   :  { %13202 = vmatpush3.bf16.msra.mxu1 %v16764_v54  ;;  %11255 = vmatprep.mubr.msk.f32.mxu1 %vm14103_vm1, %v14104_v44 }
 0x9bc   :  { %13203 = vmatprep.subr.bf16.mxu1 %v14102_v17 }
 0x9bf   :  { %13205 = vmatpush3.bf16.msra.mxu1 %v16768_v59 }
 0x9c0   :  { %13206 = vmatprep.subr.bf16.mxu1 %v14102_v17 }
 0x9c3   :  { %13208 = vmatpush3.bf16.msra.mxu1 %v16772_v41 }
 0x9c4   :  { %13209 = vmatprep.subr.bf16.mxu1 %v14102_v17 }
 0x9c7   :  { %13211 = vmatpush3.bf16.msra.mxu1 %v16776_v29 }
 0x9c8   :  { %13212 = vmatprep.subr.bf16.mxu1 %v14102_v17 }
 0x9cb   :  { %13214 = vmatpush3.bf16.msra.mxu1 %v16780_v6 }
 0x9cc   :  { %13215 = vmatprep.subr.bf16.mxu1 %v14102_v17 }
 0x9cf   :  { %13217 = vmatpush3.bf16.msra.mxu1 %v16784_v22 }
 0x9d0   :  { %13218 = vmatprep.subr.bf16.mxu1 %v14102_v17 }
 0x9d3   :  { %13220 = vmatpush3.bf16.msra.mxu1 %v16812_v11 }
 0x9d4   :  { %13221 = vmatprep.subr.bf16.mxu1 %v14102_v17 }
 0x9d7   :  { %13223 = vmatpush3.bf16.msra.mxu1 %v16824_v62 }
 0x9d8   :  { %13224 = vmatprep.subr.bf16.mxu1 %v14102_v17 }
 0x9da   :  { %11256 = vmatmul.mubr.f32.vlgmr.msra.gmra.mrb[24].mxu1 %v6165_v47  ;;  %v13243_v47 = vpack.c.bf16 %v18332_v49, %v18331_v9 }
 0x9db   :  { %13226 = vmatpush3.bf16.msra.mxu1 %v13225_v57  ;;  %11290 = vmatprep.mubr.msk.f32.mxu1 %vm14103_vm1, %v14104_v44  ;;  %v17064_v57 = vsub.f32 %v6739_v38, %v6777_v31 }
 0x9dc   :  { %13227 = vmatprep.subr.bf16.mxu1 %v14102_v17 }
 0x9df   :  { %13229 = vmatpush3.bf16.msra.mxu1 %v13228_v34  ;;  %v6747_v34 = vld [vmem:[#allocation14 + $0x78] sm:$0xff] }
 0x9e0   :  { %13230 = vmatprep.subr.bf16.mxu1 %v14102_v17 }
 0x9e3   :  { %13232 = vmatpush3.bf16.msra.mxu1 %v13231_v1  ;;  %v17070_v1 = vsub.f32 %v6742_v50, %v6786_v28  ;;  %v18051_v28 = vand.u32 4294901760, %v17068_v2 }
 0x9e4   :  { %13233 = vmatprep.subr.bf16.mxu1 %v14102_v17 }
 0x9e5   :  { %v6913_v55 = vsub.f32 %v17068_v2, %v18051_v28 }
 0x9e7   :  { %13235 = vmatpush3.bf16.msra.mxu1 %v13234_v18  ;;  %v17076_v18 = vsub.f32 %v6744_v63, %v6792_v3  ;;  %v6906_v63 = vsub.f32 %v17066_v43, %v18052_v10  ;;  %v6914_v4 = vand.u32 4294901760, %v6913_v55 }
 0x9e8   :  { %13236 = vmatprep.subr.bf16.mxu1 %v14102_v17 }
 0x9e9   :  { %v6907_v3 = vand.u32 4294901760, %v6906_v63 }
 0x9eb   :  { %13238 = vmatpush3.bf16.msra.mxu1 %v13237_v35  ;;  %v6801_v35 = vand.u32 4294901760, %v6747_v34 }
 0x9ec   :  { %13239 = vmatprep.subr.bf16.mxu1 %v14102_v17 }
 0x9ed   :  { %v17086_v9 = vpack.c.bf16 %v6801_v35, %v6798_v37  ;;  %v17088_v49 = vsub.f32 %v6747_v34, %v6801_v35  ;;  %v18049_v34 = vand.u32 4294901760, %v17072_v13 }
 0x9ef   :  { %13241 = vmatpush3.bf16.msra.mxu1 %v13240_v45  ;;  %v17083_v45 = vsub.f32 %v6746_v14, %v6798_v37  ;;  %v18050_v14 = vand.u32 4294901760, %v17070_v1  ;;  %v13309_v37 = vpack.c.bf16 %v6914_v4, %v6907_v3 }
 0x9f0   :  { %13242 = vmatprep.subr.bf16.mxu1 %v14102_v17 }
 0x9f1   :  { %v6920_v35 = vsub.f32 %v17070_v1, %v18050_v14 }
 0x9f3   :  { %13244 = vmatpush3.bf16.msra.mxu1 %v13243_v47 }
 0x9f4   :  { %13245 = vmatprep.subr.bf16.mxu1 %v14102_v17 }
 0x9f7   :  { %13247 = vmatpush3.bf16.msra.mxu1 %v13246_v23 }
 0x9f8   :  { %13248 = vmatprep.subr.bf16.mxu1 %v14102_v17 }
 0x9fa   :  { %11291 = vmatmul.mubr.f32.vlgmr.msra.gmra.mrb[24].mxu1 %v16917_v21 }
 0x9fb   :  { %13250 = vmatpush3.bf16.msra.mxu1 %v16764_v54  ;;  %11325 = vmatprep.mubr.msk.f32.mxu1 %vm14103_vm1, %v14104_v44  ;;  %v6732_v54 = vld [vmem:[#allocation14] sm:$0xff] }
 0x9fc   :  { %13251 = vmatprep.subr.bf16.mxu1 %v14102_v17 }
 0x9ff   :  { %13253 = vmatpush3.bf16.msra.mxu1 %v16768_v59  ;;  %v6733_v59 = vld [vmem:[#allocation14 + $0x8] sm:$0xff] }
 0xa00   :  { %13254 = vmatprep.subr.bf16.mxu1 %v14102_v17 }
 0xa03   :  { %13256 = vmatpush3.bf16.msra.mxu1 %v16772_v41  ;;  %v6756_v41 = vand.u32 4294901760, %v6732_v54 }
 0xa04   :  { %13257 = vmatprep.subr.bf16.mxu1 %v14102_v17 }
 0xa05   :  { %v17050_v7 = vsub.f32 %v6732_v54, %v6756_v41 }
 0xa07   :  { %13259 = vmatpush3.bf16.msra.mxu1 %v16776_v29  ;;  %v6759_v29 = vand.u32 4294901760, %v6733_v59  ;;  %v6849_v40 = vand.u32 4294901760, %v17050_v7 }
 0xa08   :  { %13260 = vmatprep.subr.bf16.mxu1 %v14102_v17 }
 0xa09   :  { %v17052_v33 = vsub.f32 %v6733_v59, %v6759_v29  ;;  %v6850_v47 = vsub.f32 %v17050_v7, %v6849_v40 }
 0xa0b   :  { %13262 = vmatpush3.bf16.msra.mxu1 %v16780_v6  ;;  %v17026_v6 = vpack.c.bf16 %v6759_v29, %v6756_v41  ;;  %v6856_v51 = vand.u32 4294901760, %v17052_v33  ;;  %v6851_v54 = vand.u32 4294901760, %v6850_v47  ;;  %v6927_v47 = vsub.f32 %v17072_v13, %v18049_v34 }
 0xa0c   :  { %13263 = vmatprep.subr.bf16.mxu1 %v14102_v17  ;;  %v13321_v3 = vpack.c.bf16 %v17052_v33, %v17050_v7 }
 0xa0d   :  { %13274 = vmatpush3.bf16.msra.mxu0 %v17026_v6  ;;  %v6857_v19 = vsub.f32 %v17052_v33, %v6856_v51  ;;  %v18336_v33 = vand.u32 4294901760, %v17060_v42 }
 0xa0e   :  { %13275 = vmatprep.subr.bf16.mxu0 %v14102_v17 }
 0xa0f   :  { %13265 = vmatpush3.bf16.msra.mxu1 %v16784_v22  ;;  %v6734_v22 = vld [vmem:[#allocation14 + $0x10] sm:$0xff]  ;;  %v6858_v59 = vand.u32 4294901760, %v6857_v19  ;;  %v6921_v19 = vand.u32 4294901760, %v6920_v35 }
 0xa10   :  { %13266 = vmatprep.subr.bf16.mxu1 %v14102_v17  ;;  %v6762_v24 = vand.u32 4294901760, %v6734_v22 }
 0xa12   :  { %v17054_v0 = vsub.f32 %v6734_v22, %v6762_v24  ;;  %v17106_v22 = vpack.c.bf16 %v6858_v59, %v6851_v54  ;;  %v6928_v54 = vand.u32 4294901760, %v6927_v47  ;;  %v18048_v59 = vand.u32 4294901760, %v17076_v18 }
 0xa13   :  { %13268 = vmatpush3.bf16.msra.mxu1 %v16812_v11  ;;  %v6765_v11 = vand.u32 4294901760, %v6735_v60 }
 0xa14   :  { %13269 = vmatprep.subr.bf16.mxu1 %v14102_v17  ;;  %v6863_v36 = vand.u32 4294901760, %v17054_v0 }
 0xa15   :  { %v17030_v53 = vpack.c.bf16 %v6765_v11, %v6762_v24  ;;  %v17056_v15 = vsub.f32 %v6735_v60, %v6765_v11 }
 0xa16   :  { %v6864_v41 = vsub.f32 %v17054_v0, %v6863_v36 }
 0xa17   :  { %13271 = vmatpush3.bf16.msra.mxu1 %v16824_v62  ;;  %13277 = vmatpush3.bf16.msra.mxu0 %v17030_v53  ;;  %v6768_v62 = vand.u32 4294901760, %v6736_v32  ;;  %v6870_v23 = vand.u32 4294901760, %v17056_v15  ;;  %v13324_v4 = vpack.c.bf16 %v17056_v15, %v17054_v0  ;;  %v18338_v0 = vand.u32 4294901760, %v17064_v57 }
 0xa18   :  { %13416 = vmatprep.subr.bf16.mxu1 %v14102_v17  ;;  %13278 = vmatprep.subr.bf16.mxu0 %v14102_v17  ;;  %v6865_v60 = vand.u32 4294901760, %v6864_v41  ;;  %v18047_v41 = vand.u32 4294901760, %v17078_v25 }
 0xa19   :  { %v17034_v27 = vpack.c.bf16 %v6771_v56, %v6768_v62  ;;  %v17058_v8 = vsub.f32 %v6736_v32, %v6768_v62  ;;  %v6871_v29 = vsub.f32 %v17056_v15, %v6870_v23  ;;  %v18055_v32 = vand.u32 4294901760, %v17060_v42 }
 0xa1a   :  { %11326 = vmatmul.mubr.f32.vlgmr.msra.gmra.mrb[24].mxu1 %v16917_v21  ;;  %v6738_v21 = vld [vmem:[#allocation14 + $0x30] sm:$0xff] }
 0xa1b   :  { %11570 = vmatprep.mubr.msk.f32.mxu1 %vm14103_vm1, %v14104_v44  ;;  %13280 = vmatpush3.bf16.msra.mxu0 %v17034_v27  ;;  %v6774_v16 = vand.u32 4294901760, %v6738_v21  ;;  %v6872_v24 = vand.u32 4294901760, %v6871_v29  ;;  %v18056_v11 = vand.u32 4294901760, %v17058_v8  ;;  %v6885_v56 = vsub.f32 %v17060_v42, %v18055_v32 }
 0xa1c   :  { %13281 = vmatprep.subr.bf16.mxu0 %v14102_v17  ;;  %v13312_v29 = vpack.c.bf16 %v6928_v54, %v6921_v19  ;;  %v13327_v35 = vpack.c.bf16 %v17060_v42, %v17058_v8  ;;  %v13333_v19 = vpack.c.bf16 %v17068_v2, %v17066_v43  ;;  %v13336_v54 = vpack.c.bf16 %v17072_v13, %v17070_v1 }
 0xa1d   :  { %v17038_v48 = vpack.c.bf16 %v6777_v31, %v6774_v16  ;;  %v17062_v58 = vsub.f32 %v6738_v21, %v6774_v16  ;;  %v17110_v20 = vpack.c.bf16 %v6872_v24, %v6865_v60  ;;  %v6878_v62 = vsub.f32 %v17058_v8, %v18056_v11 }
 0xa1e   :  { %v6886_v38 = vand.u32 4294901760, %v6885_v56  ;;  %v18053_v31 = vand.u32 4294901760, %v17064_v57  ;;  %v6934_v60 = vsub.f32 %v17076_v18, %v18048_v59  ;;  %v6941_v24 = vsub.f32 %v17078_v25, %v18047_v41 }
 0xa1f   :  { %13283 = vmatpush3.bf16.msra.mxu0 %v17038_v48  ;;  %v6879_v21 = vand.u32 4294901760, %v6878_v62  ;;  %v18054_v16 = vand.u32 4294901760, %v17062_v58  ;;  %v13330_v47 = vpack.c.bf16 %v17064_v57, %v17062_v58  ;;  %v18335_v7 = vand.u32 4294901760, %v17058_v8 }
 0xa20   :  { %13284 = vmatprep.subr.bf16.mxu0 %v14102_v17  ;;  %v6899_v12 = vsub.f32 %v17064_v57, %v18053_v31  ;;  %v6935_v62 = vand.u32 4294901760, %v6934_v60  ;;  %v6942_v56 = vand.u32 4294901760, %v6941_v24  ;;  %v13339_v60 = vpack.c.bf16 %v17078_v25, %v17076_v18 }
 0xa21   :  { %v17120_v5 = vpack.c.bf16 %v6886_v38, %v6879_v21  ;;  %v6892_v26 = vsub.f32 %v17062_v58, %v18054_v16  ;;  %v18046_v21 = vand.u32 4294901760, %v17083_v45  ;;  %v18045_v38 = vand.u32 4294901760, %v17088_v49 }
 0xa22   :  { %v6900_v50 = vand.u32 4294901760, %v6899_v12  ;;  %v13342_v24 = vpack.c.bf16 %v17088_v49, %v17083_v45  ;;  %v18341_v8 = vand.u32 4294901760, %v17070_v1  ;;  %v18342_v42 = vand.u32 4294901760, %v17072_v13  ;;  %v7408_v1 = vld [vmem:[#allocation16 + $0x18] sm:$0xff] }
 0xa23   :  { %13286 = vmatpush3.bf16.msra.mxu0 %v17042_v46  ;;  %v6893_v30 = vand.u32 4294901760, %v6892_v26  ;;  %v13315_v26 = vpack.c.bf16 %v6942_v56, %v6935_v62  ;;  %v6948_v12 = vsub.f32 %v17083_v45, %v18046_v21  ;;  %v8768_v62 = vld [vmem:[%s17833_s12] ss:$0 sm:$0xff]  ;;  %v18344_v57 = vand.u32 4294901760, %v17078_v25  ;;  %v7409_v25 = vld [vmem:[#allocation16 + $0x20] sm:$0xff] }
 0xa24   :  { %13287 = vmatprep.subr.bf16.mxu0 %v14102_v17 }
 0xa25   :  { %v13306_v39 = vpack.c.bf16 %v6900_v50, %v6893_v30  ;;  %v6955_v30 = vsub.f32 %v17088_v49, %v18045_v38  ;;  %v6949_v50 = vand.u32 4294901760, %v6948_v12 }
 0xa27   :  { %13289 = vmatpush3.bf16.msra.mxu0 %v17046_v52  ;;  %v6956_v63 = vand.u32 4294901760, %v6955_v30 }
 0xa28   :  { %13290 = vmatprep.subr.bf16.mxu0 %v14102_v17 }
 0xa29   :  { %v13318_v55 = vpack.c.bf16 %v6956_v63, %v6949_v50 }
 0xa2b   :  { %13292 = vmatpush3.bf16.msra.mxu0 %v17074_v61 }
 0xa2c   :  { %13293 = vmatprep.subr.bf16.mxu0 %v14102_v17 }
 0xa2f   :  { %13295 = vmatpush3.bf16.msra.mxu0 %v17086_v9 }
 0xa30   :  { %13296 = vmatprep.subr.bf16.mxu0 %v14102_v17 }
 0xaed   :  { %v6719_v56 = vpop.f32.mrb[24].mxu1 }
 0xaee   :  { %v13710_v12 = vadd.f32 %v8768_v62, %v6719_v56  ;;  %v11327_v30 = vpop.f32.mrb[25].mxu1 }
 0xaf0   :  { %v6724_v50 = vmul.f32 %v13710_v12, %v13710_v12  ;;  %v6723_v34 = vmul.f32 0.5, %v13710_v12 }
 0xaf2   :  { %v6725_v63 = vmul.f32 %v13710_v12, %v6724_v50 }
 0xaf4   :  { %v6726_v38 = vmul.f32 0.044715, %v6725_v63 }
 0xaf6   :  { %v6727_v21 = vadd.f32 %v13710_v12, %v6726_v38  ;;  %v7415_v38 = vld [vmem:[#allocation16 + $0x50] sm:$0xff] }
 0xaf7   :  { %v7419_v12 = vld [vmem:[#allocation16 + $0x70] sm:$0xff] }
 0xaf8   :  { %v6728_v41 = vmul.f32 0.7978846, %v6727_v21 }
 0xafa   :  { %13828 = vtanh.f32 %v6728_v41 }
 0xb04   :  { %v13829_v59 = vpop.eup %13828 }
 0xb05   :  { %v6730_v14 = vadd.f32 1.0, %v13829_v59  ;;  %v7414_v59 = vld [vmem:[#allocation16 + $0x48] sm:$0xff] }
 0xb07   :  { %v6731_v28 = vmul.f32 %v6730_v14, %v6723_v34 }
 0xb09   :  { %v17179_v10 = vand.u32 4294901760, %v6731_v28 }
 0xb0b   :  { %v6837_v31 = vsub.f32 %v6731_v28, %v17179_v10  ;;  %v7412_v28 = vld [vmem:[#allocation16 + $0x38] sm:$0xff] }
 0xb0c   :  { %v7450_v14 = vand.u32 4294901760, %v7412_v28 }
 0xb0d   :  { %v6838_v16 = vand.u32 4294901760, %v6837_v31 }
 0xb0f   :  { %v6839_v32 = vsub.f32 %v6837_v31, %v6838_v16 }
 0xb11   :  { %v6840_v11 = vand.u32 4294901760, %v6839_v32 }
 0xb13   :  { %11361 = vmatmul.mubr.f32.vlgmr.msra.gmra.mrb[24].mxu0 %v6840_v11  ;;  %v13372_v11 = vpack.c.bf16 %v6870_v23, %v6863_v36  ;;  %v18339_v36 = vand.u32 4294901760, %v17066_v43  ;;  %v18340_v23 = vand.u32 4294901760, %v17068_v2  ;;  %v18345_v43 = vand.u32 4294901760, %v17083_v45  ;;  %v7410_v45 = vld [vmem:[#allocation16 + $0x28] sm:$0xff] }
 0xb14   :  { %13298 = vmatpush3.bf16.msra.mxu0 %v17106_v22  ;;  %11395 = vmatprep.mubr.msk.f32.mxu0 %vm14103_vm1, %v14104_v44  ;;  %v13369_v22 = vpack.c.bf16 %v6856_v51, %v6849_v40  ;;  %v13375_v40 = vpack.c.bf16 %v18336_v33, %v18335_v7  ;;  %v18337_v51 = vand.u32 4294901760, %v17062_v58  ;;  %v18343_v58 = vand.u32 4294901760, %v17076_v18 }
 0xb15   :  { %13299 = vmatprep.subr.bf16.mxu0 %v14102_v17  ;;  %v13381_v32 = vpack.c.bf16 %v18340_v23, %v18339_v36  ;;  %v18346_v2 = vand.u32 4294901760, %v17088_v49  ;;  %v7444_v49 = vand.u32 4294901760, %v7410_v45  ;;  %v7471_v23 = vand.u32 4294901760, %v7419_v12 }
 0xb16   :  { %v13378_v15 = vpack.c.bf16 %v18338_v0, %v18337_v51 }
 0xb17   :  { %v17322_v50 = vsub.f32 %v7410_v45, %v7444_v49 }
 0xb18   :  { %13301 = vmatpush3.bf16.msra.mxu0 %v17110_v20  ;;  %v13384_v20 = vpack.c.bf16 %v18342_v42, %v18341_v8 }
 0xb19   :  { %13302 = vmatprep.subr.bf16.mxu0 %v14102_v17 }
 0xb1c   :  { %13304 = vmatpush3.bf16.msra.mxu0 %v17120_v5 }
 0xb1d   :  { %13305 = vmatprep.subr.bf16.mxu0 %v14102_v17 }
 0xb20   :  { %13307 = vmatpush3.bf16.msra.mxu0 %v13306_v39 }
 0xb21   :  { %13308 = vmatprep.subr.bf16.mxu0 %v14102_v17 }
 0xb24   :  { %13310 = vmatpush3.bf16.msra.mxu0 %v13309_v37  ;;  %v7413_v37 = vld [vmem:[#allocation16 + $0x40] sm:$0xff] }
 0xb25   :  { %13311 = vmatprep.subr.bf16.mxu0 %v14102_v17  ;;  %v7453_v41 = vand.u32 4294901760, %v7413_v37 }
 0xb27   :  { %v17328_v7 = vsub.f32 %v7413_v37, %v7453_v41 }
 0xb28   :  { %13313 = vmatpush3.bf16.msra.mxu0 %v13312_v29  ;;  %v7456_v29 = vand.u32 4294901760, %v7414_v59 }
 0xb29   :  { %13314 = vmatprep.subr.bf16.mxu0 %v14102_v17 }
 0xb2a   :  { %v17304_v21 = vpack.c.bf16 %v7456_v29, %v7453_v41  ;;  %v17330_v33 = vsub.f32 %v7414_v59, %v7456_v29 }
 0xb2c   :  { %13316 = vmatpush3.bf16.msra.mxu0 %v13315_v26  ;;  %v7416_v26 = vld [vmem:[#allocation16 + $0x58] sm:$0xff] }
 0xb2d   :  { %13317 = vmatprep.subr.bf16.mxu0 %v14102_v17 }
 0xb30   :  { %13319 = vmatpush3.bf16.msra.mxu0 %v13318_v55  ;;  %v7459_v55 = vand.u32 4294901760, %v7415_v38 }
 0xb31   :  { %13320 = vmatprep.subr.bf16.mxu0 %v14102_v17 }
 0xb33   :  { %11396 = vmatmul.mubr.f32.vlgmr.msra.gmra.mrb[24].mxu0 %v17179_v10 }
 0xb34   :  { %13322 = vmatpush3.bf16.msra.mxu0 %v13321_v3  ;;  %11430 = vmatprep.mubr.msk.f32.mxu0 %vm14103_vm1, %v14104_v44  ;;  %v7462_v3 = vand.u32 4294901760, %v7416_v26 }
 0xb35   :  { %13323 = vmatprep.subr.bf16.mxu0 %v14102_v17 }
 0xb36   :  { %v17334_v51 = vsub.f32 %v7416_v26, %v7462_v3  ;;  %v18064_v26 = vand.u32 4294901760, %v17328_v7 }
 0xb38   :  { %13325 = vmatpush3.bf16.msra.mxu0 %v13324_v4  ;;  %v17308_v4 = vpack.c.bf16 %v7462_v3, %v7459_v55 }
 0xb39   :  { %13326 = vmatprep.subr.bf16.mxu0 %v14102_v17 }
 0xb3c   :  { %13328 = vmatpush3.bf16.msra.mxu0 %v13327_v35  ;;  %v7417_v35 = vld [vmem:[#allocation16 + $0x60] sm:$0xff] }
 0xb3d   :  { %13329 = vmatprep.subr.bf16.mxu0 %v14102_v17 }
 0xb40   :  { %13331 = vmatpush3.bf16.msra.mxu0 %v13330_v47  ;;  %v7418_v47 = vld [vmem:[#allocation16 + $0x68] sm:$0xff] }
 0xb41   :  { %13332 = vmatprep.subr.bf16.mxu0 %v14102_v17 }
 0xb44   :  { %13334 = vmatpush3.bf16.msra.mxu0 %v13333_v19  ;;  %v7465_v19 = vand.u32 4294901760, %v7417_v35 }
 0xb45   :  { %13335 = vmatprep.subr.bf16.mxu0 %v14102_v17 }
 0xb48   :  { %13337 = vmatpush3.bf16.msra.mxu0 %v13336_v54  ;;  %v7468_v54 = vand.u32 4294901760, %v7418_v47 }
 0xb49   :  { %13338 = vmatprep.subr.bf16.mxu0 %v14102_v17 }
 0xb4a   :  { %v17336_v0 = vpack.c.bf16 %v7468_v54, %v7465_v19  ;;  %v17340_v36 = vsub.f32 %v7418_v47, %v7468_v54 }
 0xb4c   :  { %13340 = vmatpush3.bf16.msra.mxu0 %v13339_v60 }
 0xb4d   :  { %13341 = vmatprep.subr.bf16.mxu0 %v14102_v17 }
 0xb50   :  { %13343 = vmatpush3.bf16.msra.mxu0 %v13342_v24 }
 0xb51   :  { %13344 = vmatprep.subr.bf16.mxu0 %v14102_v17 }
 0xb53   :  { %11431 = vmatmul.mubr.f32.vlgmr.msra.gmra.mrb[24].mxu0 %v6837_v31  ;;  %v13390_v31 = vpack.c.bf16 %v18346_v2, %v18345_v43 }
 0xb54   :  { %13346 = vmatpush3.bf16.msra.mxu0 %v17026_v6  ;;  %11465 = vmatprep.mubr.msk.f32.mxu0 %vm14103_vm1, %v14104_v44 }
 0xb55   :  { %13347 = vmatprep.subr.bf16.mxu0 %v14102_v17 }
 0xb58   :  { %13349 = vmatpush3.bf16.msra.mxu0 %v17030_v53 }
 0xb59   :  { %13350 = vmatprep.subr.bf16.mxu0 %v14102_v17 }
 0xb5c   :  { %13352 = vmatpush3.bf16.msra.mxu0 %v17034_v27 }
 0xb5d   :  { %13353 = vmatprep.subr.bf16.mxu0 %v14102_v17 }
 0xb60   :  { %13355 = vmatpush3.bf16.msra.mxu0 %v17038_v48 }
 0xb61   :  { %13356 = vmatprep.subr.bf16.mxu0 %v14102_v17 }
 0xb64   :  { %13358 = vmatpush3.bf16.msra.mxu0 %v17042_v46 }
 0xb65   :  { %13359 = vmatprep.subr.bf16.mxu0 %v14102_v17 }
 0xb68   :  { %13361 = vmatpush3.bf16.msra.mxu0 %v17046_v52 }
 0xb69   :  { %13362 = vmatprep.subr.bf16.mxu0 %v14102_v17 }
 0xb6c   :  { %13364 = vmatpush3.bf16.msra.mxu0 %v17074_v61 }
 0xb6d   :  { %13365 = vmatprep.subr.bf16.mxu0 %v14102_v17 }
 0xb70   :  { %13367 = vmatpush3.bf16.msra.mxu0 %v17086_v9 }
 0xb71   :  { %13368 = vmatprep.subr.bf16.mxu0 %v14102_v17 }
 0xb73   :  { %11466 = vmatmul.mubr.f32.vlgmr.msra.gmra.mrb[24].mxu0 %v6838_v16  ;;  %v13387_v16 = vpack.c.bf16 %v18344_v57, %v18343_v58 }
 0xb74   :  { %13370 = vmatpush3.bf16.msra.mxu0 %v13369_v22  ;;  %11500 = vmatprep.mubr.msk.f32.mxu0 %vm14103_vm1, %v14104_v44  ;;  %v17326_v22 = vsub.f32 %v7412_v28, %v7450_v14 }
 0xb75   :  { %13371 = vmatprep.subr.bf16.mxu0 %v14102_v17 }
 0xb78   :  { %13373 = vmatpush3.bf16.msra.mxu0 %v13372_v11  ;;  %v7420_v11 = vld [vmem:[#allocation16 + $0x78] sm:$0xff] }
 0xb79   :  { %13374 = vmatprep.subr.bf16.mxu0 %v14102_v17 }
 0xb7c   :  { %13376 = vmatpush3.bf16.msra.mxu0 %v13375_v40  ;;  %v17332_v40 = vsub.f32 %v7415_v38, %v7459_v55  ;;  %v18063_v55 = vand.u32 4294901760, %v17330_v33 }
 0xb7d   :  { %13377 = vmatprep.subr.bf16.mxu0 %v14102_v17 }
 0xb7e   :  { %v7586_v47 = vsub.f32 %v17330_v33, %v18063_v55 }
 0xb80   :  { %13379 = vmatpush3.bf16.msra.mxu0 %v13378_v15  ;;  %v17338_v15 = vsub.f32 %v7417_v35, %v7465_v19  ;;  %v7579_v35 = vsub.f32 %v17328_v7, %v18064_v26  ;;  %v7587_v54 = vand.u32 4294901760, %v7586_v47 }
 0xb81   :  { %13380 = vmatprep.subr.bf16.mxu0 %v14102_v17 }
 0xb82   :  { %v7580_v19 = vand.u32 4294901760, %v7579_v35 }
 0xb84   :  { %13382 = vmatpush3.bf16.msra.mxu0 %v13381_v32  ;;  %v7474_v32 = vand.u32 4294901760, %v7420_v11 }
 0xb85   :  { %13383 = vmatprep.subr.bf16.mxu0 %v14102_v17 }
 0xb86   :  { %v17348_v58 = vpack.c.bf16 %v7474_v32, %v7471_v23  ;;  %v17350_v57 = vsub.f32 %v7420_v11, %v7474_v32  ;;  %v18061_v11 = vand.u32 4294901760, %v17334_v51 }
 0xb88   :  { %13385 = vmatpush3.bf16.msra.mxu0 %v13384_v20  ;;  %v17345_v20 = vsub.f32 %v7419_v12, %v7471_v23  ;;  %v18062_v12 = vand.u32 4294901760, %v17332_v40  ;;  %v13453_v23 = vpack.c.bf16 %v7587_v54, %v7580_v19 }
 0xb89   :  { %13386 = vmatprep.subr.bf16.mxu0 %v14102_v17 }
 0xb8a   :  { %v7593_v32 = vsub.f32 %v17332_v40, %v18062_v12 }
 0xb8c   :  { %13388 = vmatpush3.bf16.msra.mxu0 %v13387_v16 }
 0xb8d   :  { %13389 = vmatprep.subr.bf16.mxu0 %v14102_v17 }
 0xb90   :  { %13391 = vmatpush3.bf16.msra.mxu0 %v13390_v31 }
 0xb91   :  { %13392 = vmatprep.subr.bf16.mxu0 %v14102_v17 }
 0xb93   :  { %11501 = vmatmul.mubr.f32.vlgmr.msra.gmra.mrb[24].mxu0 %v17179_v10 }
 0xb94   :  { %13394 = vmatpush3.bf16.msra.mxu0 %v17026_v6  ;;  %11535 = vmatprep.mubr.msk.f32.mxu0 %vm14103_vm1, %v14104_v44  ;;  %v7405_v6 = vld [vmem:[#allocation16] sm:$0xff] }
 0xb95   :  { %13395 = vmatprep.subr.bf16.mxu0 %v14102_v17 }
 0xb98   :  { %13397 = vmatpush3.bf16.msra.mxu0 %v17030_v53  ;;  %v7406_v53 = vld [vmem:[#allocation16 + $0x8] sm:$0xff] }
 0xb99   :  { %13398 = vmatprep.subr.bf16.mxu0 %v14102_v17 }
 0xb9c   :  { %13400 = vmatpush3.bf16.msra.mxu0 %v17034_v27  ;;  %v7429_v27 = vand.u32 4294901760, %v7405_v6 }
 0xb9d   :  { %13401 = vmatprep.subr.bf16.mxu0 %v14102_v17 }
 0xb9e   :  { %v17312_v60 = vsub.f32 %v7405_v6, %v7429_v27 }
 0xba0   :  { %13403 = vmatpush3.bf16.msra.mxu0 %v17038_v48  ;;  %v7432_v48 = vand.u32 4294901760, %v7406_v53  ;;  %v7522_v8 = vand.u32 4294901760, %v17312_v60 }
 0xba1   :  { %13404 = vmatprep.subr.bf16.mxu0 %v14102_v17 }
 0xba2   :  { %v17314_v24 = vsub.f32 %v7406_v53, %v7432_v48  ;;  %v7523_v16 = vsub.f32 %v17312_v60, %v7522_v8 }
 0xba4   :  { %13406 = vmatpush3.bf16.msra.mxu0 %v17042_v46  ;;  %v17288_v46 = vpack.c.bf16 %v7432_v48, %v7429_v27  ;;  %v7529_v42 = vand.u32 4294901760, %v17314_v24  ;;  %v7524_v6 = vand.u32 4294901760, %v7523_v16  ;;  %v7600_v16 = vsub.f32 %v17334_v51, %v18061_v11 }
 0xba5   :  { %13407 = vmatprep.subr.bf16.mxu0 %v14102_v17  ;;  %v13465_v19 = vpack.c.bf16 %v17314_v24, %v17312_v60 }
 0xba6   :  { %13418 = vmatpush3.bf16.msra.mxu1 %v17288_v46  ;;  %v7530_v43 = vsub.f32 %v17314_v24, %v7529_v42  ;;  %v18348_v24 = vand.u32 4294901760, %v17322_v50 }
 0xba7   :  { %13419 = vmatprep.subr.bf16.mxu1 %v14102_v17 }
 0xba8   :  { %13409 = vmatpush3.bf16.msra.mxu0 %v17046_v52  ;;  %v7407_v52 = vld [vmem:[#allocation16 + $0x10] sm:$0xff]  ;;  %v7531_v53 = vand.u32 4294901760, %v7530_v43  ;;  %v7594_v43 = vand.u32 4294901760, %v7593_v32 }
 0xba9   :  { %13410 = vmatprep.subr.bf16.mxu0 %v14102_v17  ;;  %v7435_v13 = vand.u32 4294901760, %v7407_v52 }
 0xbab   :  { %v17316_v62 = vsub.f32 %v7407_v52, %v7435_v13  ;;  %v17368_v52 = vpack.c.bf16 %v7531_v53, %v7524_v6  ;;  %v7601_v6 = vand.u32 4294901760, %v7600_v16  ;;  %v18060_v53 = vand.u32 4294901760, %v17338_v15 }
 0xbac   :  { %13412 = vmatpush3.bf16.msra.mxu0 %v17074_v61  ;;  %v7438_v61 = vand.u32 4294901760, %v7408_v1 }
 0xbad   :  { %13413 = vmatprep.subr.bf16.mxu0 %v14102_v17  ;;  %v7536_v2 = vand.u32 4294901760, %v17316_v62 }
 0xbae   :  { %v17292_v18 = vpack.c.bf16 %v7438_v61, %v7435_v13  ;;  %v17318_v56 = vsub.f32 %v7408_v1, %v7438_v61 }
 0xbaf   :  { %v7537_v27 = vsub.f32 %v17316_v62, %v7536_v2 }
 0xbb0   :  { %13415 = vmatpush3.bf16.msra.mxu0 %v17086_v9  ;;  %13421 = vmatpush3.bf16.msra.mxu1 %v17292_v18  ;;  %v7441_v9 = vand.u32 4294901760, %v7409_v25  ;;  %v7543_v31 = vand.u32 4294901760, %v17318_v56  ;;  %v13468_v54 = vpack.c.bf16 %v17318_v56, %v17316_v62  ;;  %v18350_v62 = vand.u32 4294901760, %v17326_v22 }
 0xbb1   :  { %13560 = vmatprep.subr.bf16.mxu0 %v14102_v17  ;;  %13422 = vmatprep.subr.bf16.mxu1 %v14102_v17  ;;  %v7538_v1 = vand.u32 4294901760, %v7537_v27  ;;  %v18059_v27 = vand.u32 4294901760, %v17340_v36 }
 0xbb2   :  { %v17296_v5 = vpack.c.bf16 %v7444_v49, %v7441_v9  ;;  %v17320_v30 = vsub.f32 %v7409_v25, %v7441_v9  ;;  %v7544_v48 = vsub.f32 %v17318_v56, %v7543_v31  ;;  %v18067_v25 = vand.u32 4294901760, %v17322_v50 }
 0xbb3   :  { %11536 = vmatmul.mubr.f32.vlgmr.msra.gmra.mrb[24].mxu0 %v17179_v10  ;;  %v7411_v10 = vld [vmem:[#allocation16 + $0x30] sm:$0xff] }
 0xbb4   :  { %11780 = vmatprep.mubr.msk.f32.mxu0 %vm14103_vm1, %v14104_v44  ;;  %13424 = vmatpush3.bf16.msra.mxu1 %v17296_v5  ;;  %v7447_v39 = vand.u32 4294901760, %v7411_v10  ;;  %v7545_v13 = vand.u32 4294901760, %v7544_v48  ;;  %v18068_v61 = vand.u32 4294901760, %v17320_v30  ;;  %v7558_v49 = vsub.f32 %v17322_v50, %v18067_v25 }
 0xbb5   :  { %13425 = vmatprep.subr.bf16.mxu1 %v14102_v17  ;;  %v13456_v48 = vpack.c.bf16 %v7601_v6, %v7594_v43  ;;  %v13471_v32 = vpack.c.bf16 %v17322_v50, %v17320_v30  ;;  %v13477_v43 = vpack.c.bf16 %v17330_v33, %v17328_v7  ;;  %v13480_v6 = vpack.c.bf16 %v17334_v51, %v17332_v40 }
 0xbb6   :  { %v17300_v34 = vpack.c.bf16 %v7450_v14, %v7447_v39  ;;  %v17324_v63 = vsub.f32 %v7411_v10, %v7447_v39  ;;  %v17372_v45 = vpack.c.bf16 %v7545_v13, %v7538_v1  ;;  %v7551_v9 = vsub.f32 %v17320_v30, %v18068_v61 }
 0xbb7   :  { %v7559_v28 = vand.u32 4294901760, %v7558_v49  ;;  %v18065_v14 = vand.u32 4294901760, %v17326_v22  ;;  %v7607_v1 = vsub.f32 %v17338_v15, %v18060_v53  ;;  %v7614_v13 = vsub.f32 %v17340_v36, %v18059_v27 }
 0xbb8   :  { %13427 = vmatpush3.bf16.msra.mxu1 %v17300_v34  ;;  %v7552_v10 = vand.u32 4294901760, %v7551_v9  ;;  %v18066_v39 = vand.u32 4294901760, %v17324_v63  ;;  %v13474_v16 = vpack.c.bf16 %v17326_v22, %v17324_v63  ;;  %v18347_v60 = vand.u32 4294901760, %v17320_v30 }
 0xbb9   :  { %13428 = vmatprep.subr.bf16.mxu1 %v14102_v17  ;;  %v7572_v41 = vsub.f32 %v17326_v22, %v18065_v14  ;;  %v7608_v9 = vand.u32 4294901760, %v7607_v1  ;;  %v7615_v49 = vand.u32 4294901760, %v7614_v13  ;;  %v13483_v1 = vpack.c.bf16 %v17340_v36, %v17338_v15 }
 0xbba   :  { %v17382_v37 = vpack.c.bf16 %v7559_v28, %v7552_v10  ;;  %v7565_v59 = vsub.f32 %v17324_v63, %v18066_v39  ;;  %v18058_v10 = vand.u32 4294901760, %v17345_v20  ;;  %v18057_v28 = vand.u32 4294901760, %v17350_v57 }
 0xbbb   :  { %v7573_v38 = vand.u32 4294901760, %v7572_v41  ;;  %v13486_v13 = vpack.c.bf16 %v17350_v57, %v17345_v20  ;;  %v18353_v30 = vand.u32 4294901760, %v17332_v40  ;;  %v18354_v50 = vand.u32 4294901760, %v17334_v51  ;;  %v8081_v51 = vld [vmem:[#allocation17 + $0x18] sm:$0xff] }
 0xbbc   :  { %13430 = vmatpush3.bf16.msra.mxu1 %v17304_v21  ;;  %v7566_v29 = vand.u32 4294901760, %v7565_v59  ;;  %v13459_v59 = vpack.c.bf16 %v7615_v49, %v7608_v9  ;;  %v7621_v41 = vsub.f32 %v17345_v20, %v18058_v10  ;;  %v8769_v9 = vld [vmem:[%s17835_s14] ss:$0 sm:$0xff]  ;;  %v18356_v22 = vand.u32 4294901760, %v17340_v36  ;;  %v8082_v36 = vld [vmem:[#allocation17 + $0x20] sm:$0xff] }
 0xbbd   :  { %13431 = vmatprep.subr.bf16.mxu1 %v14102_v17 }
 0xbbe   :  { %v13450_v3 = vpack.c.bf16 %v7573_v38, %v7566_v29  ;;  %v7628_v29 = vsub.f32 %v17350_v57, %v18057_v28  ;;  %v7622_v38 = vand.u32 4294901760, %v7621_v41 }
 0xbc0   :  { %13433 = vmatpush3.bf16.msra.mxu1 %v17308_v4  ;;  %v7629_v35 = vand.u32 4294901760, %v7628_v29 }
 0xbc1   :  { %13434 = vmatprep.subr.bf16.mxu1 %v14102_v17 }
 0xbc2   :  { %v13462_v47 = vpack.c.bf16 %v7629_v35, %v7622_v38 }
 0xbc4   :  { %13436 = vmatpush3.bf16.msra.mxu1 %v17336_v0 }
 0xbc5   :  { %13437 = vmatprep.subr.bf16.mxu1 %v14102_v17 }
 0xbc8   :  { %13439 = vmatpush3.bf16.msra.mxu1 %v17348_v58 }
 0xbc9   :  { %13440 = vmatprep.subr.bf16.mxu1 %v14102_v17 }
 0xc86   :  { %v7392_v49 = vpop.f32.mrb[24].mxu0 }
 0xc87   :  { %v13711_v41 = vadd.f32 %v8769_v9, %v7392_v49  ;;  %v11537_v29 = vpop.f32.mrb[25].mxu0 }
 0xc89   :  { %v7397_v38 = vmul.f32 %v13711_v41, %v13711_v41  ;;  %v7396_v11 = vmul.f32 0.5, %v13711_v41 }
 0xc8b   :  { %v7398_v35 = vmul.f32 %v13711_v41, %v7397_v38 }
 0xc8d   :  { %v7399_v28 = vmul.f32 0.044715, %v7398_v35 }
 0xc8f   :  { %v7400_v10 = vadd.f32 %v13711_v41, %v7399_v28  ;;  %v8088_v28 = vld [vmem:[#allocation17 + $0x50] sm:$0xff] }
 0xc90   :  { %v8092_v41 = vld [vmem:[#allocation17 + $0x70] sm:$0xff] }
 0xc91   :  { %v7401_v27 = vmul.f32 0.7978846, %v7400_v10 }
 0xc93   :  { %13830 = vtanh.f32 %v7401_v27 }
 0xc9d   :  { %v13831_v53 = vpop.eup %13830 }
 0xc9e   :  { %v7403_v12 = vadd.f32 1.0, %v13831_v53  ;;  %v8087_v53 = vld [vmem:[#allocation17 + $0x48] sm:$0xff] }
 0xca0   :  { %v7404_v55 = vmul.f32 %v7403_v12, %v7396_v11 }
 0xca2   :  { %v17441_v26 = vand.u32 4294901760, %v7404_v55 }
 0xca4   :  { %v7510_v14 = vsub.f32 %v7404_v55, %v17441_v26  ;;  %v8085_v55 = vld [vmem:[#allocation17 + $0x38] sm:$0xff] }
 0xca5   :  { %v8123_v12 = vand.u32 4294901760, %v8085_v55 }
 0xca6   :  { %v7511_v39 = vand.u32 4294901760, %v7510_v14 }
 0xca8   :  { %v7512_v25 = vsub.f32 %v7510_v14, %v7511_v39 }
 0xcaa   :  { %v7513_v61 = vand.u32 4294901760, %v7512_v25 }
 0xcac   :  { %11571 = vmatmul.mubr.f32.vlgmr.msra.gmra.mrb[26].mxu1 %v7513_v61  ;;  %v13516_v61 = vpack.c.bf16 %v7543_v31, %v7536_v2  ;;  %v18351_v2 = vand.u32 4294901760, %v17328_v7  ;;  %v18352_v31 = vand.u32 4294901760, %v17330_v33  ;;  %v18357_v7 = vand.u32 4294901760, %v17345_v20  ;;  %v8083_v20 = vld [vmem:[#allocation17 + $0x28] sm:$0xff] }
 0xcad   :  { %13442 = vmatpush3.bf16.msra.mxu1 %v17368_v52  ;;  %11605 = vmatprep.mubr.msk.f32.mxu1 %vm14103_vm1, %v14104_v44  ;;  %v13513_v52 = vpack.c.bf16 %v7529_v42, %v7522_v8  ;;  %v13519_v8 = vpack.c.bf16 %v18348_v24, %v18347_v60  ;;  %v18349_v42 = vand.u32 4294901760, %v17324_v63  ;;  %v18355_v63 = vand.u32 4294901760, %v17338_v15 }
 0xcae   :  { %13443 = vmatprep.subr.bf16.mxu1 %v14102_v17  ;;  %v13525_v25 = vpack.c.bf16 %v18352_v31, %v18351_v2  ;;  %v18358_v33 = vand.u32 4294901760, %v17350_v57  ;;  %v8111_v15 = vand.u32 4294901760, %v8081_v51  ;;  %v8117_v57 = vand.u32 4294901760, %v8083_v20 }
 0xcaf   :  { %v13522_v56 = vpack.c.bf16 %v18350_v62, %v18349_v42  ;;  %v8144_v31 = vand.u32 4294901760, %v8092_v41 }
 0xcb0   :  { %v17577_v49 = vsub.f32 %v8081_v51, %v8111_v15  ;;  %v17581_v38 = vsub.f32 %v8083_v20, %v8117_v57 }
 0xcb1   :  { %13445 = vmatpush3.bf16.msra.mxu1 %v17372_v45  ;;  %v13528_v45 = vpack.c.bf16 %v18354_v50, %v18353_v30 }
 0xcb2   :  { %13446 = vmatprep.subr.bf16.mxu1 %v14102_v17 }
 0xcb5   :  { %13448 = vmatpush3.bf16.msra.mxu1 %v17382_v37 }
 0xcb6   :  { %13449 = vmatprep.subr.bf16.mxu1 %v14102_v17 }
 0xcb9   :  { %13451 = vmatpush3.bf16.msra.mxu1 %v13450_v3 }
 0xcba   :  { %13452 = vmatprep.subr.bf16.mxu1 %v14102_v17 }
 0xcbd   :  { %13454 = vmatpush3.bf16.msra.mxu1 %v13453_v23  ;;  %v8086_v23 = vld [vmem:[#allocation17 + $0x40] sm:$0xff] }
 0xcbe   :  { %13455 = vmatprep.subr.bf16.mxu1 %v14102_v17  ;;  %v8126_v27 = vand.u32 4294901760, %v8086_v23 }
 0xcc0   :  { %v17587_v60 = vsub.f32 %v8086_v23, %v8126_v27 }
 0xcc1   :  { %13457 = vmatpush3.bf16.msra.mxu1 %v13456_v48  ;;  %v8129_v48 = vand.u32 4294901760, %v8087_v53 }
 0xcc2   :  { %13458 = vmatprep.subr.bf16.mxu1 %v14102_v17 }
 0xcc3   :  { %v17563_v10 = vpack.c.bf16 %v8129_v48, %v8126_v27  ;;  %v17589_v24 = vsub.f32 %v8087_v53, %v8129_v48 }
 0xcc5   :  { %13460 = vmatpush3.bf16.msra.mxu1 %v13459_v59  ;;  %v8089_v59 = vld [vmem:[#allocation17 + $0x58] sm:$0xff] }
 0xcc6   :  { %13461 = vmatprep.subr.bf16.mxu1 %v14102_v17 }
 0xcc9   :  { %13463 = vmatpush3.bf16.msra.mxu1 %v13462_v47  ;;  %v8132_v47 = vand.u32 4294901760, %v8088_v28 }
 0xcca   :  { %13464 = vmatprep.subr.bf16.mxu1 %v14102_v17 }
 0xccc   :  { %11606 = vmatmul.mubr.f32.vlgmr.msra.gmra.mrb[26].mxu1 %v17441_v26 }
 0xccd   :  { %13466 = vmatpush3.bf16.msra.mxu1 %v13465_v19  ;;  %11640 = vmatprep.mubr.msk.f32.mxu1 %vm14103_vm1, %v14104_v44  ;;  %v8135_v19 = vand.u32 4294901760, %v8089_v59 }
 0xcce   :  { %13467 = vmatprep.subr.bf16.mxu1 %v14102_v17 }
 0xccf   :  { %v17593_v42 = vsub.f32 %v8089_v59, %v8135_v19  ;;  %v18076_v59 = vand.u32 4294901760, %v17587_v60 }
 0xcd1   :  { %13469 = vmatpush3.bf16.msra.mxu1 %v13468_v54  ;;  %v17567_v54 = vpack.c.bf16 %v8135_v19, %v8132_v47 }
 0xcd2   :  { %13470 = vmatprep.subr.bf16.mxu1 %v14102_v17 }
 0xcd5   :  { %13472 = vmatpush3.bf16.msra.mxu1 %v13471_v32  ;;  %v8090_v32 = vld [vmem:[#allocation17 + $0x60] sm:$0xff] }
 0xcd6   :  { %13473 = vmatprep.subr.bf16.mxu1 %v14102_v17 }
 0xcd9   :  { %13475 = vmatpush3.bf16.msra.mxu1 %v13474_v16  ;;  %v8091_v16 = vld [vmem:[#allocation17 + $0x68] sm:$0xff] }
 0xcda   :  { %13476 = vmatprep.subr.bf16.mxu1 %v14102_v17 }
 0xcdd   :  { %13478 = vmatpush3.bf16.msra.mxu1 %v13477_v43  ;;  %v8138_v43 = vand.u32 4294901760, %v8090_v32 }
 0xcde   :  { %13479 = vmatprep.subr.bf16.mxu1 %v14102_v17 }
 0xce1   :  { %13481 = vmatpush3.bf16.msra.mxu1 %v13480_v6  ;;  %v8141_v6 = vand.u32 4294901760, %v8091_v16 }
 0xce2   :  { %13482 = vmatprep.subr.bf16.mxu1 %v14102_v17 }
 0xce3   :  { %v17595_v62 = vpack.c.bf16 %v8141_v6, %v8138_v43  ;;  %v17599_v2 = vsub.f32 %v8091_v16, %v8141_v6 }
 0xce5   :  { %13484 = vmatpush3.bf16.msra.mxu1 %v13483_v1 }
 0xce6   :  { %13485 = vmatprep.subr.bf16.mxu1 %v14102_v17 }
 0xce9   :  { %13487 = vmatpush3.bf16.msra.mxu1 %v13486_v13 }
 0xcea   :  { %13488 = vmatprep.subr.bf16.mxu1 %v14102_v17 }
 0xcec   :  { %11641 = vmatmul.mubr.f32.vlgmr.msra.gmra.mrb[26].mxu1 %v7510_v14  ;;  %v13534_v14 = vpack.c.bf16 %v18358_v33, %v18357_v7 }
 0xced   :  { %13490 = vmatpush3.bf16.msra.mxu1 %v17288_v46  ;;  %11675 = vmatprep.mubr.msk.f32.mxu1 %vm14103_vm1, %v14104_v44 }
 0xcee   :  { %13491 = vmatprep.subr.bf16.mxu1 %v14102_v17 }
 0xcf1   :  { %13493 = vmatpush3.bf16.msra.mxu1 %v17292_v18 }
 0xcf2   :  { %13494 = vmatprep.subr.bf16.mxu1 %v14102_v17 }
 0xcf5   :  { %13496 = vmatpush3.bf16.msra.mxu1 %v17296_v5 }
 0xcf6   :  { %13497 = vmatprep.subr.bf16.mxu1 %v14102_v17 }
 0xcf9   :  { %13499 = vmatpush3.bf16.msra.mxu1 %v17300_v34 }
 0xcfa   :  { %13500 = vmatprep.subr.bf16.mxu1 %v14102_v17 }
 0xcfd   :  { %13502 = vmatpush3.bf16.msra.mxu1 %v17304_v21 }
 0xcfe   :  { %13503 = vmatprep.subr.bf16.mxu1 %v14102_v17 }
 0xd01   :  { %13505 = vmatpush3.bf16.msra.mxu1 %v17308_v4 }
 0xd02   :  { %13506 = vmatprep.subr.bf16.mxu1 %v14102_v17 }
 0xd05   :  { %13508 = vmatpush3.bf16.msra.mxu1 %v17336_v0 }
 0xd06   :  { %13509 = vmatprep.subr.bf16.mxu1 %v14102_v17 }
 0xd09   :  { %13511 = vmatpush3.bf16.msra.mxu1 %v17348_v58 }
 0xd0a   :  { %13512 = vmatprep.subr.bf16.mxu1 %v14102_v17 }
 0xd0c   :  { %11676 = vmatmul.mubr.f32.vlgmr.msra.gmra.mrb[26].mxu1 %v7511_v39  ;;  %v13531_v39 = vpack.c.bf16 %v18356_v22, %v18355_v63 }
 0xd0d   :  { %13514 = vmatpush3.bf16.msra.mxu1 %v13513_v52  ;;  %11710 = vmatprep.mubr.msk.f32.mxu1 %vm14103_vm1, %v14104_v44  ;;  %v17585_v52 = vsub.f32 %v8085_v55, %v8123_v12 }
 0xd0e   :  { %13515 = vmatprep.subr.bf16.mxu1 %v14102_v17 }
 0xd11   :  { %13517 = vmatpush3.bf16.msra.mxu1 %v13516_v61  ;;  %v8093_v61 = vld [vmem:[#allocation17 + $0x78] sm:$0xff] }
 0xd12   :  { %13518 = vmatprep.subr.bf16.mxu1 %v14102_v17 }
 0xd15   :  { %13520 = vmatpush3.bf16.msra.mxu1 %v13519_v8  ;;  %v17591_v8 = vsub.f32 %v8088_v28, %v8132_v47  ;;  %v18075_v47 = vand.u32 4294901760, %v17589_v24 }
 0xd16   :  { %13521 = vmatprep.subr.bf16.mxu1 %v14102_v17 }
 0xd17   :  { %v8259_v16 = vsub.f32 %v17589_v24, %v18075_v47 }
 0xd19   :  { %13523 = vmatpush3.bf16.msra.mxu1 %v13522_v56  ;;  %v17597_v56 = vsub.f32 %v8090_v32, %v8138_v43  ;;  %v8252_v32 = vsub.f32 %v17587_v60, %v18076_v59  ;;  %v8260_v6 = vand.u32 4294901760, %v8259_v16 }
 0xd1a   :  { %13524 = vmatprep.subr.bf16.mxu1 %v14102_v17 }
 0xd1b   :  { %v8253_v43 = vand.u32 4294901760, %v8252_v32 }
 0xd1d   :  { %13526 = vmatpush3.bf16.msra.mxu1 %v13525_v25  ;;  %v8147_v25 = vand.u32 4294901760, %v8093_v61 }
 0xd1e   :  { %13527 = vmatprep.subr.bf16.mxu1 %v14102_v17 }
 0xd1f   :  { %v17607_v63 = vpack.c.bf16 %v8147_v25, %v8144_v31  ;;  %v17609_v22 = vsub.f32 %v8093_v61, %v8147_v25  ;;  %v18073_v61 = vand.u32 4294901760, %v17593_v42 }
 0xd21   :  { %13529 = vmatpush3.bf16.msra.mxu1 %v13528_v45  ;;  %v17604_v45 = vsub.f32 %v8092_v41, %v8144_v31  ;;  %v18074_v41 = vand.u32 4294901760, %v17591_v8  ;;  %v13597_v31 = vpack.c.bf16 %v8260_v6, %v8253_v43 }
 0xd22   :  { %13530 = vmatprep.subr.bf16.mxu1 %v14102_v17 }
 0xd23   :  { %v8266_v25 = vsub.f32 %v17591_v8, %v18074_v41 }
 0xd25   :  { %13532 = vmatpush3.bf16.msra.mxu1 %v13531_v39 }
 0xd26   :  { %13533 = vmatprep.subr.bf16.mxu1 %v14102_v17 }
 0xd29   :  { %13535 = vmatpush3.bf16.msra.mxu1 %v13534_v14  ;;  %v8216_v14 = vand.u32 4294901760, %v17577_v49 }
 0xd2a   :  { %13536 = vmatprep.subr.bf16.mxu1 %v14102_v17 }
 0xd2c   :  { %11711 = vmatmul.mubr.f32.vlgmr.msra.gmra.mrb[26].mxu1 %v17441_v26 }
 0xd2d   :  { %13538 = vmatpush3.bf16.msra.mxu1 %v17288_v46  ;;  %11745 = vmatprep.mubr.msk.f32.mxu1 %vm14103_vm1, %v14104_v44  ;;  %v8078_v46 = vld [vmem:[#allocation17] sm:$0xff] }
 0xd2e   :  { %13539 = vmatprep.subr.bf16.mxu1 %v14102_v17 }
 0xd31   :  { %13541 = vmatpush3.bf16.msra.mxu1 %v17292_v18  ;;  %v8079_v18 = vld [vmem:[#allocation17 + $0x8] sm:$0xff] }
 0xd32   :  { %13542 = vmatprep.subr.bf16.mxu1 %v14102_v17 }
 0xd35   :  { %13544 = vmatpush3.bf16.msra.mxu1 %v17296_v5  ;;  %v8102_v5 = vand.u32 4294901760, %v8078_v46 }
 0xd36   :  { %13545 = vmatprep.subr.bf16.mxu1 %v14102_v17 }
 0xd37   :  { %v17571_v1 = vsub.f32 %v8078_v46, %v8102_v5 }
 0xd39   :  { %13547 = vmatpush3.bf16.msra.mxu1 %v17300_v34  ;;  %v8105_v34 = vand.u32 4294901760, %v8079_v18  ;;  %v8195_v30 = vand.u32 4294901760, %v17571_v1 }
 0xd3a   :  { %13548 = vmatprep.subr.bf16.mxu1 %v14102_v17 }
 0xd3b   :  { %v17547_v40 = vpack.c.bf16 %v8105_v34, %v8102_v5  ;;  %v17573_v13 = vsub.f32 %v8079_v18, %v8105_v34  ;;  %v8196_v39 = vsub.f32 %v17571_v1, %v8195_v30  ;;  %v8217_v34 = vsub.f32 %v17577_v49, %v8216_v14 }
 0xd3d   :  { %13550 = vmatpush3.bf16.msra.mxu1 %v17304_v21  ;;  %v8080_v21 = vld [vmem:[#allocation17 + $0x10] sm:$0xff]  ;;  %13562 = vmatpush3.bf16.msra.mxu0 %v17547_v40  ;;  %v8202_v50 = vand.u32 4294901760, %v17573_v13  ;;  %v8197_v46 = vand.u32 4294901760, %v8196_v39  ;;  %v8273_v39 = vsub.f32 %v17593_v42, %v18073_v61  ;;  %v13609_v43 = vpack.c.bf16 %v17573_v13, %v17571_v1 }
 0xd3e   :  { %13551 = vmatprep.subr.bf16.mxu1 %v14102_v17  ;;  %13563 = vmatprep.subr.bf16.mxu0 %v14102_v17 }
 0xd3f   :  { %v8203_v7 = vsub.f32 %v17573_v13, %v8202_v50  ;;  %v18360_v13 = vand.u32 4294901760, %v17581_v38 }
 0xd41   :  { %13553 = vmatpush3.bf16.msra.mxu1 %v17308_v4  ;;  %v8108_v4 = vand.u32 4294901760, %v8080_v21  ;;  %v8204_v18 = vand.u32 4294901760, %v8203_v7  ;;  %v8267_v7 = vand.u32 4294901760, %v8266_v25 }
 0xd42   :  { %13554 = vmatprep.subr.bf16.mxu1 %v14102_v17 }
 0xd43   :  { %v17575_v9 = vsub.f32 %v8080_v21, %v8108_v4  ;;  %v17627_v21 = vpack.c.bf16 %v8204_v18, %v8197_v46  ;;  %v8274_v46 = vand.u32 4294901760, %v8273_v39  ;;  %v18072_v18 = vand.u32 4294901760, %v17597_v56 }
 0xd45   :  { %13556 = vmatpush3.bf16.msra.mxu1 %v17336_v0  ;;  %v17551_v0 = vpack.c.bf16 %v8111_v15, %v8108_v4  ;;  %v8209_v33 = vand.u32 4294901760, %v17575_v9  ;;  %v8218_v4 = vand.u32 4294901760, %v8217_v34  ;;  %v13600_v34 = vpack.c.bf16 %v8274_v46, %v8267_v7 }
 0xd46   :  { %13557 = vmatprep.subr.bf16.mxu1 %v14102_v17  ;;  %v13612_v6 = vpack.c.bf16 %v17577_v49, %v17575_v9  ;;  %v13621_v7 = vpack.c.bf16 %v17589_v24, %v17587_v60  ;;  %v13624_v46 = vpack.c.bf16 %v17593_v42, %v17591_v8 }
 0xd47   :  { %13565 = vmatpush3.bf16.msra.mxu0 %v17551_v0  ;;  %v8210_v5 = vsub.f32 %v17575_v9, %v8209_v33  ;;  %v18362_v9 = vand.u32 4294901760, %v17585_v52 }
 0xd48   :  { %13566 = vmatprep.subr.bf16.mxu0 %v14102_v17 }
 0xd49   :  { %13559 = vmatpush3.bf16.msra.mxu1 %v17348_v58  ;;  %v8114_v58 = vand.u32 4294901760, %v8082_v36  ;;  %v8211_v51 = vand.u32 4294901760, %v8210_v5  ;;  %v18071_v5 = vand.u32 4294901760, %v17599_v2 }
 0xd4b   :  { %v17555_v37 = vpack.c.bf16 %v8117_v57, %v8114_v58  ;;  %v17579_v29 = vsub.f32 %v8082_v36, %v8114_v58  ;;  %v18079_v36 = vand.u32 4294901760, %v17581_v38  ;;  %v17631_v20 = vpack.c.bf16 %v8218_v4, %v8211_v51 }
 0xd4c   :  { %11746 = vmatmul.mubr.f32.vlgmr.msra.gmra.mrb[26].mxu1 %v17441_v26  ;;  %v8084_v26 = vld [vmem:[#allocation17 + $0x30] sm:$0xff]  ;;  %v8280_v51 = vsub.f32 %v17597_v56, %v18072_v18  ;;  %v8287_v4 = vsub.f32 %v17599_v2, %v18071_v5 }
 0xd4d   :  { %13568 = vmatpush3.bf16.msra.mxu0 %v17555_v37  ;;  %v8120_v3 = vand.u32 4294901760, %v8084_v26  ;;  %v18080_v15 = vand.u32 4294901760, %v17579_v29  ;;  %v8231_v57 = vsub.f32 %v17581_v38, %v18079_v36  ;;  %v13615_v25 = vpack.c.bf16 %v17581_v38, %v17579_v29 }
 0xd4e   :  { %13569 = vmatprep.subr.bf16.mxu0 %v14102_v17  ;;  %v18359_v1 = vand.u32 4294901760, %v17579_v29  ;;  %v18366_v38 = vand.u32 4294901760, %v17593_v42 }
 0xd4f   :  { %v17559_v11 = vpack.c.bf16 %v8123_v12, %v8120_v3  ;;  %v17583_v35 = vsub.f32 %v8084_v26, %v8120_v3  ;;  %v8224_v58 = vsub.f32 %v17579_v29, %v18080_v15  ;;  %v8232_v55 = vand.u32 4294901760, %v8231_v57 }
 0xd50   :  { %v18077_v12 = vand.u32 4294901760, %v17585_v52  ;;  %v8288_v57 = vand.u32 4294901760, %v8287_v4  ;;  %v13630_v4 = vpack.c.bf16 %v17609_v22, %v17604_v45  ;;  %v18365_v29 = vand.u32 4294901760, %v17591_v8 }
 0xd51   :  { %13571 = vmatpush3.bf16.msra.mxu0 %v17559_v11  ;;  %v8225_v26 = vand.u32 4294901760, %v8224_v58  ;;  %v18078_v3 = vand.u32 4294901760, %v17583_v35  ;;  %v8281_v58 = vand.u32 4294901760, %v8280_v51  ;;  %v13618_v39 = vpack.c.bf16 %v17585_v52, %v17583_v35 }
 0xd52   :  { %13572 = vmatprep.subr.bf16.mxu0 %v14102_v17  ;;  %v8245_v27 = vsub.f32 %v17585_v52, %v18077_v12  ;;  %v13627_v51 = vpack.c.bf16 %v17599_v2, %v17597_v56  ;;  %v18368_v52 = vand.u32 4294901760, %v17599_v2 }
 0xd53   :  { %v17641_v23 = vpack.c.bf16 %v8232_v55, %v8225_v26  ;;  %v8238_v53 = vsub.f32 %v17583_v35, %v18078_v3  ;;  %v18070_v26 = vand.u32 4294901760, %v17604_v45  ;;  %v18069_v55 = vand.u32 4294901760, %v17609_v22 }
 0xd54   :  { %v8246_v28 = vand.u32 4294901760, %v8245_v27 }
 0xd55   :  { %13574 = vmatpush3.bf16.msra.mxu0 %v17563_v10  ;;  %v8239_v48 = vand.u32 4294901760, %v8238_v53  ;;  %v13603_v53 = vpack.c.bf16 %v8288_v57, %v8281_v58  ;;  %v8294_v27 = vsub.f32 %v17604_v45, %v18070_v26  ;;  %v8770_v58 = vld [vmem:[%s17837_s16] ss:$0 sm:$0xff] }
 0xd56   :  { %13575 = vmatprep.subr.bf16.mxu0 %v14102_v17 }
 0xd57   :  { %v13594_v19 = vpack.c.bf16 %v8246_v28, %v8239_v48  ;;  %v8301_v48 = vsub.f32 %v17609_v22, %v18069_v55  ;;  %v8295_v28 = vand.u32 4294901760, %v8294_v27 }
 0xd59   :  { %13577 = vmatpush3.bf16.msra.mxu0 %v17567_v54  ;;  %v8302_v32 = vand.u32 4294901760, %v8301_v48 }
 0xd5a   :  { %13578 = vmatprep.subr.bf16.mxu0 %v14102_v17 }
 0xd5b   :  { %v13606_v16 = vpack.c.bf16 %v8302_v32, %v8295_v28 }
 0xd5d   :  { %13580 = vmatpush3.bf16.msra.mxu0 %v17595_v62 }
 0xd5e   :  { %13581 = vmatprep.subr.bf16.mxu0 %v14102_v17 }
 0xd61   :  { %13583 = vmatpush3.bf16.msra.mxu0 %v17607_v63 }
 0xd62   :  { %13584 = vmatprep.subr.bf16.mxu0 %v14102_v17 }
 0xe1f   :  { %v8065_v57 = vpop.f32.mrb[26].mxu1 }
 0xe20   :  { %v13712_v27 = vadd.f32 %v8770_v58, %v8065_v57  ;;  %v11747_v48 = vpop.f32.mrb[27].mxu1 }
 0xe22   :  { %v8070_v28 = vmul.f32 %v13712_v27, %v13712_v27  ;;  %v8069_v61 = vmul.f32 0.5, %v13712_v27 }
 0xe24   :  { %v8071_v32 = vmul.f32 %v13712_v27, %v8070_v28 }
 0xe26   :  { %v8072_v55 = vmul.f32 0.044715, %v8071_v32 }
 0xe28   :  { %v8073_v26 = vadd.f32 %v13712_v27, %v8072_v55 }
 0xe2a   :  { %v8074_v5 = vmul.f32 0.7978846, %v8073_v26 }
 0xe2c   :  { %13832 = vtanh.f32 %v8074_v5 }
 0xe36   :  { %v13833_v18 = vpop.eup %13832 }
 0xe37   :  { %v8076_v41 = vadd.f32 1.0, %v13833_v18 }
 0xe39   :  { %v8077_v47 = vmul.f32 %v8076_v41, %v8069_v61 }
 0xe3b   :  { %v17700_v59 = vand.u32 4294901760, %v8077_v47 }
 0xe3d   :  { %v8183_v12 = vsub.f32 %v8077_v47, %v17700_v59 }
 0xe3f   :  { %v8184_v3 = vand.u32 4294901760, %v8183_v12 }
 0xe41   :  { %v8185_v36 = vsub.f32 %v8183_v12, %v8184_v3 }
 0xe43   :  { %v8186_v15 = vand.u32 4294901760, %v8185_v36 }
 0xe45   :  { %11781 = vmatmul.mubr.f32.vlgmr.msra.gmra.mrb[26].mxu0 %v8186_v15  ;;  %v13660_v15 = vpack.c.bf16 %v8216_v14, %v8209_v33  ;;  %v18363_v33 = vand.u32 4294901760, %v17587_v60  ;;  %v18364_v14 = vand.u32 4294901760, %v17589_v24  ;;  %v18369_v60 = vand.u32 4294901760, %v17604_v45 }
 0xe46   :  { %13586 = vmatpush3.bf16.msra.mxu0 %v17627_v21  ;;  %11815 = vmatprep.mubr.msk.f32.mxu0 %vm14103_vm1, %v14104_v44  ;;  %v13657_v21 = vpack.c.bf16 %v8202_v50, %v8195_v30  ;;  %v13663_v30 = vpack.c.bf16 %v18360_v13, %v18359_v1  ;;  %v18361_v50 = vand.u32 4294901760, %v17583_v35  ;;  %v18367_v35 = vand.u32 4294901760, %v17597_v56 }
 0xe47   :  { %13587 = vmatprep.subr.bf16.mxu0 %v14102_v17  ;;  %v13669_v36 = vpack.c.bf16 %v18364_v14, %v18363_v33  ;;  %v18370_v24 = vand.u32 4294901760, %v17609_v22 }
 0xe48   :  { %v13666_v49 = vpack.c.bf16 %v18362_v9, %v18361_v50 }
 0xe4a   :  { %13589 = vmatpush3.bf16.msra.mxu0 %v17631_v20  ;;  %v13672_v20 = vpack.c.bf16 %v18366_v38, %v18365_v29 }
 0xe4b   :  { %13590 = vmatprep.subr.bf16.mxu0 %v14102_v17 }
 0xe4e   :  { %13592 = vmatpush3.bf16.msra.mxu0 %v17641_v23 }
 0xe4f   :  { %13593 = vmatprep.subr.bf16.mxu0 %v14102_v17 }
 0xe52   :  { %13595 = vmatpush3.bf16.msra.mxu0 %v13594_v19 }
 0xe53   :  { %13596 = vmatprep.subr.bf16.mxu0 %v14102_v17 }
 0xe56   :  { %13598 = vmatpush3.bf16.msra.mxu0 %v13597_v31 }
 0xe57   :  { %13599 = vmatprep.subr.bf16.mxu0 %v14102_v17 }
 0xe5a   :  { %13601 = vmatpush3.bf16.msra.mxu0 %v13600_v34 }
 0xe5b   :  { %13602 = vmatprep.subr.bf16.mxu0 %v14102_v17 }
 0xe5e   :  { %13604 = vmatpush3.bf16.msra.mxu0 %v13603_v53 }
 0xe5f   :  { %13605 = vmatprep.subr.bf16.mxu0 %v14102_v17 }
 0xe62   :  { %13607 = vmatpush3.bf16.msra.mxu0 %v13606_v16 }
 0xe63   :  { %13608 = vmatprep.subr.bf16.mxu0 %v14102_v17 }
 0xe65   :  { %11816 = vmatmul.mubr.f32.vlgmr.msra.gmra.mrb[26].mxu0 %v17700_v59 }
 0xe66   :  { %13610 = vmatpush3.bf16.msra.mxu0 %v13609_v43  ;;  %11850 = vmatprep.mubr.msk.f32.mxu0 %vm14103_vm1, %v14104_v44 }
 0xe67   :  { %13611 = vmatprep.subr.bf16.mxu0 %v14102_v17 }
 0xe6a   :  { %13613 = vmatpush3.bf16.msra.mxu0 %v13612_v6 }
 0xe6b   :  { %13614 = vmatprep.subr.bf16.mxu0 %v14102_v17 }
 0xe6e   :  { %13616 = vmatpush3.bf16.msra.mxu0 %v13615_v25 }
 0xe6f   :  { %13617 = vmatprep.subr.bf16.mxu0 %v14102_v17 }
 0xe72   :  { %13619 = vmatpush3.bf16.msra.mxu0 %v13618_v39 }
 0xe73   :  { %13620 = vmatprep.subr.bf16.mxu0 %v14102_v17 }
 0xe76   :  { %13622 = vmatpush3.bf16.msra.mxu0 %v13621_v7 }
 0xe77   :  { %13623 = vmatprep.subr.bf16.mxu0 %v14102_v17 }
 0xe7a   :  { %13625 = vmatpush3.bf16.msra.mxu0 %v13624_v46 }
 0xe7b   :  { %13626 = vmatprep.subr.bf16.mxu0 %v14102_v17 }
 0xe7e   :  { %13628 = vmatpush3.bf16.msra.mxu0 %v13627_v51 }
 0xe7f   :  { %13629 = vmatprep.subr.bf16.mxu0 %v14102_v17 }
 0xe82   :  { %13631 = vmatpush3.bf16.msra.mxu0 %v13630_v4 }
 0xe83   :  { %13632 = vmatprep.subr.bf16.mxu0 %v14102_v17 }
 0xe85   :  { %11851 = vmatmul.mubr.f32.vlgmr.msra.gmra.mrb[26].mxu0 %v8183_v12  ;;  %v13678_v12 = vpack.c.bf16 %v18370_v24, %v18369_v60 }
 0xe86   :  { %13634 = vmatpush3.bf16.msra.mxu0 %v17547_v40  ;;  %11885 = vmatprep.mubr.msk.f32.mxu0 %vm14103_vm1, %v14104_v44 }
 0xe87   :  { %13635 = vmatprep.subr.bf16.mxu0 %v14102_v17 }
 0xe8a   :  { %13637 = vmatpush3.bf16.msra.mxu0 %v17551_v0 }
 0xe8b   :  { %13638 = vmatprep.subr.bf16.mxu0 %v14102_v17 }
 0xe8e   :  { %13640 = vmatpush3.bf16.msra.mxu0 %v17555_v37 }
 0xe8f   :  { %13641 = vmatprep.subr.bf16.mxu0 %v14102_v17 }
 0xe92   :  { %13643 = vmatpush3.bf16.msra.mxu0 %v17559_v11 }
 0xe93   :  { %13644 = vmatprep.subr.bf16.mxu0 %v14102_v17 }
 0xe96   :  { %13646 = vmatpush3.bf16.msra.mxu0 %v17563_v10 }
 0xe97   :  { %13647 = vmatprep.subr.bf16.mxu0 %v14102_v17 }
 0xe9a   :  { %13649 = vmatpush3.bf16.msra.mxu0 %v17567_v54 }
 0xe9b   :  { %13650 = vmatprep.subr.bf16.mxu0 %v14102_v17 }
 0xe9e   :  { %13652 = vmatpush3.bf16.msra.mxu0 %v17595_v62 }
 0xe9f   :  { %13653 = vmatprep.subr.bf16.mxu0 %v14102_v17 }
 0xea2   :  { %13655 = vmatpush3.bf16.msra.mxu0 %v17607_v63 }
 0xea3   :  { %13656 = vmatprep.subr.bf16.mxu0 %v14102_v17 }
 0xea5   :  { %11886 = vmatmul.mubr.f32.vlgmr.msra.gmra.mrb[26].mxu0 %v8184_v3  ;;  %v13675_v3 = vpack.c.bf16 %v18368_v52, %v18367_v35 }
 0xea6   :  { %13658 = vmatpush3.bf16.msra.mxu0 %v13657_v21  ;;  %11920 = vmatprep.mubr.msk.f32.mxu0 %vm14103_vm1, %v14104_v44 }
 0xea7   :  { %13659 = vmatprep.subr.bf16.mxu0 %v14102_v17 }
 0xeaa   :  { %13661 = vmatpush3.bf16.msra.mxu0 %v13660_v15 }
 0xeab   :  { %13662 = vmatprep.subr.bf16.mxu0 %v14102_v17 }
 0xeae   :  { %13664 = vmatpush3.bf16.msra.mxu0 %v13663_v30 }
 0xeaf   :  { %13665 = vmatprep.subr.bf16.mxu0 %v14102_v17 }
 0xeb2   :  { %13667 = vmatpush3.bf16.msra.mxu0 %v13666_v49 }
 0xeb3   :  { %13668 = vmatprep.subr.bf16.mxu0 %v14102_v17 }
 0xeb6   :  { %13670 = vmatpush3.bf16.msra.mxu0 %v13669_v36 }
 0xeb7   :  { %13671 = vmatprep.subr.bf16.mxu0 %v14102_v17 }
 0xeba   :  { %13673 = vmatpush3.bf16.msra.mxu0 %v13672_v20 }
 0xebb   :  { %13674 = vmatprep.subr.bf16.mxu0 %v14102_v17 }
 0xebe   :  { %13676 = vmatpush3.bf16.msra.mxu0 %v13675_v3 }
 0xebf   :  { %13677 = vmatprep.subr.bf16.mxu0 %v14102_v17 }
 0xec2   :  { %13679 = vmatpush3.bf16.msra.mxu0 %v13678_v12 }
 0xec3   :  { %13680 = vmatprep.subr.bf16.mxu0 %v14102_v17 }
 0xec5   :  { %11921 = vmatmul.mubr.f32.vlgmr.msra.gmra.mrb[26].mxu0 %v17700_v59 }
 0xec6   :  { %13682 = vmatpush3.bf16.msra.mxu0 %v17547_v40  ;;  %11955 = vmatprep.mubr.msk.f32.mxu0 %vm14103_vm1, %v14104_v44  ;;  %v8771_v44 = vld [vmem:[%s18371_s20] ss:$0 sm:$0xff] }
 0xec7   :  { %13683 = vmatprep.subr.bf16.mxu0 %v14102_v17 }
 0xeca   :  { %13685 = vmatpush3.bf16.msra.mxu0 %v17551_v0 }
 0xecb   :  { %13686 = vmatprep.subr.bf16.mxu0 %v14102_v17 }
 0xece   :  { %13688 = vmatpush3.bf16.msra.mxu0 %v17555_v37 }
 0xecf   :  { %13689 = vmatprep.subr.bf16.mxu0 %v14102_v17 }
 0xed2   :  { %13691 = vmatpush3.bf16.msra.mxu0 %v17559_v11 }
 0xed3   :  { %13692 = vmatprep.subr.bf16.mxu0 %v14102_v17 }
 0xed6   :  { %13694 = vmatpush3.bf16.msra.mxu0 %v17563_v10 }
 0xed7   :  { %13695 = vmatprep.subr.bf16.mxu0 %v14102_v17 }
 0xeda   :  { %13697 = vmatpush3.bf16.msra.mxu0 %v17567_v54 }
 0xedb   :  { %13698 = vmatprep.subr.bf16.mxu0 %v14102_v17 }
 0xede   :  { %13700 = vmatpush3.bf16.msra.mxu0 %v17595_v62 }
 0xedf   :  { %13701 = vmatprep.subr.bf16.mxu0 %v14102_v17 }
 0xee2   :  { %13703 = vmatpush3.bf16.msra.mxu0 %v17607_v63 }
 0xee5   :  { %11956 = vmatmul.mubr.f32.vlgmr.msra.gmra.mrb[26].mxu0 %v17700_v59 }
 0xfb8   :  { %v8738_v40 = vpop.f32.mrb[26].mxu0 }
 0xfb9   :  { %v13713_v0 = vadd.f32 %v8771_v44, %v8738_v40  ;;  %v11957_v37 = vpop.f32.mrb[27].mxu0 }
 0xfbb   :  { %8742 = vst [vmem:[#allocation19] sm:$0xff] %v13713_v0 }
 0xfbc   :  { %14065 = shalt.err (!%p14062_p0)
}
 0xfbd   :  { %s18372_s7 = sld [smem:[#allocation44_spill]] }
 0xfc3   :  { %s14066_s9 = scalar_lea.hbm %s18372_s7, 128 }
 0xfc4   :  { %p14067_p1 = scmp.ne.s32.totalorder %s18372_s7, %s14066_s9  ;;  %p14070_p2 = scmp.lt.u32.totalorder %s14066_s9, %s18372_s7 }
 0xfc6   :  { %p14072_p3 = pnand %p14070_p2, %p14067_p1 }
 0xfc8   :  { %14075 = shalt.err (!%p14072_p3)
}
 0xfc9   :  { %8752 = dma.vmem_to_hbm [thread:$0]  %s8750_s19, 128, %s18372_s7, [#allocation4]  }
 0xfca   :  { %14088 = dma.done.wait [#allocation4], 128  }
 0xfcb   :  { %14089 = vsyncadd [#allocation4], 4294967168 }
 0xfcc   :  { %8756 = vsyncpa [#allocation3], 1 }
 0xfcd   :  { %8757 = vsyncpa [#allocation6], 1 }
 0xfce   :  { %8758 = vsyncpa [#allocation9], 1 }
 0xfcf   :  { %8759 = vsyncpa [#allocation12], 1 }
 0xfd0   :  { %8760 = vsyncpa [#allocation15], 1 }
 0xfd1   :  { %8761 = vsyncpa [#allocation18], 1 }
 0xfd2   :  { %8762 = vsyncpa [#allocation4], 1 }

</bundles_post_ra>
